<compile_context>
chip_gen: v5e
topology: v5e:2x2
jax: 0.10.0
libtpu: 0.0.40
codegen_flags: <defaults>
</compile_context>

<pallas_src>
import numpy as np
import jax
import jax.numpy as jnp
from jax import lax
from jax.experimental import pallas as pl
from jax.experimental.pallas import tpu as pltpu


def _round_up(x, m):
    return (x + m - 1) // m * m


def upconv_resize(x_nchw, weight, bias):
    """Forward of nn.ConvTranspose2d(Cin, Cout, kernel_size=K, stride=1).

    x_nchw: (N, Cin, H, W) float32
    weight: (Cin, Cout, K, K) float32   (PyTorch ConvTranspose2d layout)
    bias:   (Cout,) float32
    returns (N, Cout, H+K-1, W+K-1) float32 (NCHW).
    """
    N, Cin, H, W = x_nchw.shape
    Cin_w, Cout, K, K2 = weight.shape
    assert Cin_w == Cin and K == K2

    pad = K - 1
    Hout, Wout = H + pad, W + pad
    Hpad, Wpad = H + 2 * pad, W + 2 * pad

    LANE = 128
    Cout_pad = _round_up(Cout, 8)                 # sublane-aligned channel dim
    L_out = _round_up(Hout * Wpad, LANE)          # flat spatial length per batch
    max_shift = pad * (Wpad + 1)                  # largest static window shift
    L_in = _round_up(L_out + max_shift, LANE)     # flat padded-input length per batch
    R = K * K * Cin                               # fused contraction dim (im2col rows)

    # ---- glue: spatial zero-pad in NCHW, flatten spatial, pad tail ----
    xp = jnp.pad(x_nchw, ((0, 0), (0, 0), (pad, pad), (pad, pad)))   # (N,Cin,Hpad,Wpad)
    x_flat = xp.reshape(N, Cin, Hpad * Wpad)
    x_flat = jnp.pad(x_flat, ((0, 0), (0, 0), (0, L_in - Hpad * Wpad)))

    # Transposed conv == correlation of the padded input with the spatially
    # flipped kernel.  Weight slab (Cout_pad, K*K*Cin): column (kh*K+kw)*Cin+ci
    # holds w_flip[ci, co, kh, kw] -- must match the im2col slab row ordering.
    w_flip = jnp.flip(weight, axis=(2, 3))                           # (Cin,Cout,K,K)
    w_t = jnp.transpose(w_flip, (1, 2, 3, 0)).reshape(Cout, R)       # (Cout, K*K*Cin)
    w_t = jnp.pad(w_t, ((0, Cout_pad - Cout), (0, 0)))               # (Cout_pad, R)
    b_t = jnp.pad(bias.reshape(Cout, 1), ((0, Cout_pad - Cout), (0, 0)))

    def kernel(x_ref, w_ref, b_ref, o_ref, slab_ref):
        # x_ref:    (Cin, L_in)        flat padded input of one batch element
        # w_ref:    (Cout_pad, R)      fused weight slab (lane-dense)
        # b_ref:    (Cout_pad, 1)
        # o_ref:    (Cout_pad, L_out)
        # slab_ref: (R, L_out)         VMEM im2col scratch
        # Build the im2col slab once per grid step: row block (kh*K+kw)*Cin..+Cin
        # holds the flat input shifted by kh*Wpad + kw.
        for kh in range(K):
            for kw in range(K):
                idx = kh * K + kw
                shift = kh * Wpad + kw                              # static offset
                slab_ref[idx * Cin:(idx + 1) * Cin, :] = x_ref[:, shift:shift + L_out]
        # Single fused GEMM: (Cout_pad, R) @ (R, L_out), contraction dim R=256.
        acc = lax.dot_general(
            w_ref[...], slab_ref[...],
            dimension_numbers=(((1,), (0,)), ((), ())),
            preferred_element_type=jnp.float32)
        o_ref[...] = (acc + b_ref[...]).astype(o_ref.dtype)

    flops = 2 * N * Cout_pad * L_out * R
    bytes_accessed = 4 * (x_flat.size + w_t.size + b_t.size + N * Cout_pad * L_out)

    out_big = pl.pallas_call(
        kernel,
        out_shape=jax.ShapeDtypeStruct((N, Cout_pad, L_out), x_nchw.dtype),
        grid_spec=pltpu.PrefetchScalarGridSpec(
            num_scalar_prefetch=0,
            grid=(N,),
            in_specs=[
                pl.BlockSpec((None, Cin, L_in), lambda n: (n, 0, 0)),   # per-batch input
                pl.BlockSpec((Cout_pad, R), lambda n: (0, 0)),          # weights (resident)
                pl.BlockSpec((Cout_pad, 1), lambda n: (0, 0)),          # bias (resident)
            ],
            out_specs=pl.BlockSpec((None, Cout_pad, L_out), lambda n: (n, 0, 0)),
            scratch_shapes=[pltpu.VMEM((R, L_out), jnp.float32)],       # im2col slab
        ),
        compiler_params=pltpu.CompilerParams(
            dimension_semantics=("parallel",)),
        cost_estimate=pl.CostEstimate(flops=flops, transcendentals=0,
                                      bytes_accessed=bytes_accessed),
    )(x_flat, w_t, b_t)

    # small post-kernel slice/reshape; channel-major output is NCHW for free
    out = out_big[:, :Cout, :Hout * Wpad].reshape(N, Cout, Hout, Wpad)
    return out[:, :, :, :Wout]


def _reference_conv_transpose(x, w, b):
    """Independent NumPy reference of PyTorch ConvTranspose2d (stride=1, pad=0)."""
    N, Cin, H, W = x.shape
    _, Cout, K, _ = w.shape
    Hout, Wout = H + K - 1, W + K - 1
    out = np.zeros((N, Cout, Hout, Wout), dtype=np.float64)
    for iy in range(H):
        for ix in range(W):
            out[:, :, iy:iy + K, ix:ix + K] += np.einsum(
                'nc,cokl->nokl', x[:, :, iy, ix], w)
    out += b[None, :, None, None]
    return out.astype(np.float32)


if __name__ == "__main__":
    key = jax.random.PRNGKey(0)
    k_x, k_w, k_b = jax.random.split(key, 3)

    N, Cin, Cout, H, W, K = 2, 4, 8, 16, 16, 8

    x = jax.random.normal(k_x, (N, Cin, H, W), dtype=jnp.float32)
    bound = 1.0 / np.sqrt(Cin * K * K)
    weight = jax.random.uniform(k_w, (Cin, Cout, K, K), jnp.float32,
                                minval=-bound, maxval=bound)
    bias = jax.random.uniform(k_b, (Cout,), jnp.float32,
                              minval=-bound, maxval=bound)

    out = jax.block_until_ready(upconv_resize(x, weight, bias))
    assert out.shape == (N, Cout, H + K - 1, W + K - 1), out.shape

    ref = _reference_conv_transpose(np.asarray(x), np.asarray(weight),
                                    np.asarray(bias))
    np.testing.assert_allclose(np.asarray(out), ref, rtol=1e-4, atol=1e-4)

    print("KERNEL_OK")
</pallas_src>

<mosaic_0001>
module attributes {stable_mosaic.version = 11 : i64} {
  func.func @kernel(%arg0: i32, %arg1: memref<1x4x1024xf32, #tpu.memory_space<vmem>>, %arg2: memref<8x256xf32, #tpu.memory_space<vmem>>, %arg3: memref<8x1xf32, #tpu.memory_space<vmem>>, %arg4: memref<1x8x768xf32, #tpu.memory_space<vmem>>, %arg5: memref<256x768xf32, #tpu.memory_space<vmem>>) attributes {dimension_semantics = [#tpu.dimension_semantics<parallel>], iteration_bounds = array<i64: 2>, scalar_prefetch = 0 : i64, scratch_operands = 1 : i64, tpu.core_type = #tpu.core_type<tc>, window_params = [{transform_indices = @transform_0, window_bounds = array<i64: 1, 4, 1024>}, {pipeline_mode = #tpu.pipeline_mode<synchronous>, transform_indices = @transform_1, window_bounds = array<i64: 8, 256>}, {pipeline_mode = #tpu.pipeline_mode<synchronous>, transform_indices = @transform_2, window_bounds = array<i64: 8, 1>}, {transform_indices = @transform_3, window_bounds = array<i64: 1, 8, 768>}]} {
    %c0 = arith.constant 0 : index
    %c0_0 = arith.constant 0 : index
    %c0_1 = arith.constant 0 : index
    %0 = vector.load %arg1[%c0, %c0_0, %c0_1] : memref<1x4x1024xf32, #tpu.memory_space<vmem>>, vector<1x4x768xf32>
    %1 = vector.shape_cast %0 : vector<1x4x768xf32> to vector<4x768xf32>
    %c0_2 = arith.constant 0 : index
    %c0_3 = arith.constant 0 : index
    %2 = vector.load %arg5[%c0_2, %c0_3] : memref<256x768xf32, #tpu.memory_space<vmem>>, vector<4x768xf32>
    tpu.vector_store %arg5[%c0_2, %c0_3], %1 {strides = array<i32>} : memref<256x768xf32, #tpu.memory_space<vmem>>, vector<4x768xf32>,
    %c0_4 = arith.constant 0 : index
    %c0_5 = arith.constant 0 : index
    %c1 = arith.constant 1 : index
    %3 = vector.load %arg1[%c0_4, %c0_5, %c1] : memref<1x4x1024xf32, #tpu.memory_space<vmem>>, vector<1x4x768xf32>
    %4 = vector.shape_cast %3 : vector<1x4x768xf32> to vector<4x768xf32>
    %c4 = arith.constant 4 : index
    %c0_6 = arith.constant 0 : index
    %5 = vector.load %arg5[%c4, %c0_6] : memref<256x768xf32, #tpu.memory_space<vmem>>, vector<4x768xf32>
    tpu.vector_store %arg5[%c4, %c0_6], %4 {strides = array<i32>} : memref<256x768xf32, #tpu.memory_space<vmem>>, vector<4x768xf32>,
    %c0_7 = arith.constant 0 : index
    %c0_8 = arith.constant 0 : index
    %c2 = arith.constant 2 : index
    %6 = vector.load %arg1[%c0_7, %c0_8, %c2] : memref<1x4x1024xf32, #tpu.memory_space<vmem>>, vector<1x4x768xf32>
    %7 = vector.shape_cast %6 : vector<1x4x768xf32> to vector<4x768xf32>
    %c8 = arith.constant 8 : index
    %c0_9 = arith.constant 0 : index
    %8 = vector.load %arg5[%c8, %c0_9] : memref<256x768xf32, #tpu.memory_space<vmem>>, vector<4x768xf32>
    tpu.vector_store %arg5[%c8, %c0_9], %7 {strides = array<i32>} : memref<256x768xf32, #tpu.memory_space<vmem>>, vector<4x768xf32>,
    %c0_10 = arith.constant 0 : index
    %c0_11 = arith.constant 0 : index
    %c3 = arith.constant 3 : index
    %9 = vector.load %arg1[%c0_10, %c0_11, %c3] : memref<1x4x1024xf32, #tpu.memory_space<vmem>>, vector<1x4x768xf32>
    %10 = vector.shape_cast %9 : vector<1x4x768xf32> to vector<4x768xf32>
    %c12 = arith.constant 12 : index
    %c0_12 = arith.constant 0 : index
    %11 = vector.load %arg5[%c12, %c0_12] : memref<256x768xf32, #tpu.memory_space<vmem>>, vector<4x768xf32>
    tpu.vector_store %arg5[%c12, %c0_12], %10 {strides = array<i32>} : memref<256x768xf32, #tpu.memory_space<vmem>>, vector<4x768xf32>,
    %c0_13 = arith.constant 0 : index
    %c0_14 = arith.constant 0 : index
    %c4_15 = arith.constant 4 : index
    %12 = vector.load %arg1[%c0_13, %c0_14, %c4_15] : memref<1x4x1024xf32, #tpu.memory_space<vmem>>, vector<1x4x768xf32>
    %13 = vector.shape_cast %12 : vector<1x4x768xf32> to vector<4x768xf32>
    %c16 = arith.constant 16 : index
    %c0_16 = arith.constant 0 : index
    %14 = vector.load %arg5[%c16, %c0_16] : memref<256x768xf32, #tpu.memory_space<vmem>>, vector<4x768xf32>
    tpu.vector_store %arg5[%c16, %c0_16], %13 {strides = array<i32>} : memref<256x768xf32, #tpu.memory_space<vmem>>, vector<4x768xf32>,
    %c0_17 = arith.constant 0 : index
    %c0_18 = arith.constant 0 : index
    %c5 = arith.constant 5 : index
    %15 = vector.load %arg1[%c0_17, %c0_18, %c5] : memref<1x4x1024xf32, #tpu.memory_space<vmem>>, vector<1x4x768xf32>
    %16 = vector.shape_cast %15 : vector<1x4x768xf32> to vector<4x768xf32>
    %c20 = arith.constant 20 : index
    %c0_19 = arith.constant 0 : index
    %17 = vector.load %arg5[%c20, %c0_19] : memref<256x768xf32, #tpu.memory_space<vmem>>, vector<4x768xf32>
    tpu.vector_store %arg5[%c20, %c0_19], %16 {strides = array<i32>} : memref<256x768xf32, #tpu.memory_space<vmem>>, vector<4x768xf32>,
    %c0_20 = arith.constant 0 : index
    %c0_21 = arith.constant 0 : index
    %c6 = arith.constant 6 : index
    %18 = vector.load %arg1[%c0_20, %c0_21, %c6] : memref<1x4x1024xf32, #tpu.memory_space<vmem>>, vector<1x4x768xf32>
    %19 = vector.shape_cast %18 : vector<1x4x768xf32> to vector<4x768xf32>
    %c24 = arith.constant 24 : index
    %c0_22 = arith.constant 0 : index
    %20 = vector.load %arg5[%c24, %c0_22] : memref<256x768xf32, #tpu.memory_space<vmem>>, vector<4x768xf32>
    tpu.vector_store %arg5[%c24, %c0_22], %19 {strides = array<i32>} : memref<256x768xf32, #tpu.memory_space<vmem>>, vector<4x768xf32>,
    %c0_23 = arith.constant 0 : index
    %c0_24 = arith.constant 0 : index
    %c7 = arith.constant 7 : index
    %21 = vector.load %arg1[%c0_23, %c0_24, %c7] : memref<1x4x1024xf32, #tpu.memory_space<vmem>>, vector<1x4x768xf32>
    %22 = vector.shape_cast %21 : vector<1x4x768xf32> to vector<4x768xf32>
    %c28 = arith.constant 28 : index
    %c0_25 = arith.constant 0 : index
    %23 = vector.load %arg5[%c28, %c0_25] : memref<256x768xf32, #tpu.memory_space<vmem>>, vector<4x768xf32>
    tpu.vector_store %arg5[%c28, %c0_25], %22 {strides = array<i32>} : memref<256x768xf32, #tpu.memory_space<vmem>>, vector<4x768xf32>,
    %c0_26 = arith.constant 0 : index
    %c0_27 = arith.constant 0 : index
    %c30 = arith.constant 30 : index
    %24 = vector.load %arg1[%c0_26, %c0_27, %c30] : memref<1x4x1024xf32, #tpu.memory_space<vmem>>, vector<1x4x768xf32>
    %25 = vector.shape_cast %24 : vector<1x4x768xf32> to vector<4x768xf32>
    %c32 = arith.constant 32 : index
    %c0_28 = arith.constant 0 : index
    %26 = vector.load %arg5[%c32, %c0_28] : memref<256x768xf32, #tpu.memory_space<vmem>>, vector<4x768xf32>
    tpu.vector_store %arg5[%c32, %c0_28], %25 {strides = array<i32>} : memref<256x768xf32, #tpu.memory_space<vmem>>, vector<4x768xf32>,
    %c0_29 = arith.constant 0 : index
    %c0_30 = arith.constant 0 : index
    %c31 = arith.constant 31 : index
    %27 = vector.load %arg1[%c0_29, %c0_30, %c31] : memref<1x4x1024xf32, #tpu.memory_space<vmem>>, vector<1x4x768xf32>
    %28 = vector.shape_cast %27 : vector<1x4x768xf32> to vector<4x768xf32>
    %c36 = arith.constant 36 : index
    %c0_31 = arith.constant 0 : index
    %29 = vector.load %arg5[%c36, %c0_31] : memref<256x768xf32, #tpu.memory_space<vmem>>, vector<4x768xf32>
    tpu.vector_store %arg5[%c36, %c0_31], %28 {strides = array<i32>} : memref<256x768xf32, #tpu.memory_space<vmem>>, vector<4x768xf32>,
    %c0_32 = arith.constant 0 : index
    %c0_33 = arith.constant 0 : index
    %c32_34 = arith.constant 32 : index
    %30 = vector.load %arg1[%c0_32, %c0_33, %c32_34] : memref<1x4x1024xf32, #tpu.memory_space<vmem>>, vector<1x4x768xf32>
    %31 = vector.shape_cast %30 : vector<1x4x768xf32> to vector<4x768xf32>
    %c40 = arith.constant 40 : index
    %c0_35 = arith.constant 0 : index
    %32 = vector.load %arg5[%c40, %c0_35] : memref<256x768xf32, #tpu.memory_space<vmem>>, vector<4x768xf32>
    tpu.vector_store %arg5[%c40, %c0_35], %31 {strides = array<i32>} : memref<256x768xf32, #tpu.memory_space<vmem>>, vector<4x768xf32>,
    %c0_36 = arith.constant 0 : index
    %c0_37 = arith.constant 0 : index
    %c33 = arith.constant 33 : index
    %33 = vector.load %arg1[%c0_36, %c0_37, %c33] : memref<1x4x1024xf32, #tpu.memory_space<vmem>>, vector<1x4x768xf32>
    %34 = vector.shape_cast %33 : vector<1x4x768xf32> to vector<4x768xf32>
    %c44 = arith.constant 44 : index
    %c0_38 = arith.constant 0 : index
    %35 = vector.load %arg5[%c44, %c0_38] : memref<256x768xf32, #tpu.memory_space<vmem>>, vector<4x768xf32>
    tpu.vector_store %arg5[%c44, %c0_38], %34 {strides = array<i32>} : memref<256x768xf32, #tpu.memory_space<vmem>>, vector<4x768xf32>,
    %c0_39 = arith.constant 0 : index
    %c0_40 = arith.constant 0 : index
    %c34 = arith.constant 34 : index
    %36 = vector.load %arg1[%c0_39, %c0_40, %c34] : memref<1x4x1024xf32, #tpu.memory_space<vmem>>, vector<1x4x768xf32>
    %37 = vector.shape_cast %36 : vector<1x4x768xf32> to vector<4x768xf32>
    %c48 = arith.constant 48 : index
    %c0_41 = arith.constant 0 : index
    %38 = vector.load %arg5[%c48, %c0_41] : memref<256x768xf32, #tpu.memory_space<vmem>>, vector<4x768xf32>
    tpu.vector_store %arg5[%c48, %c0_41], %37 {strides = array<i32>} : memref<256x768xf32, #tpu.memory_space<vmem>>, vector<4x768xf32>,
    %c0_42 = arith.constant 0 : index
    %c0_43 = arith.constant 0 : index
    %c35 = arith.constant 35 : index
    %39 = vector.load %arg1[%c0_42, %c0_43, %c35] : memref<1x4x1024xf32, #tpu.memory_space<vmem>>, vector<1x4x768xf32>
    %40 = vector.shape_cast %39 : vector<1x4x768xf32> to vector<4x768xf32>
    %c52 = arith.constant 52 : index
    %c0_44 = arith.constant 0 : index
    %41 = vector.load %arg5[%c52, %c0_44] : memref<256x768xf32, #tpu.memory_space<vmem>>, vector<4x768xf32>
    tpu.vector_store %arg5[%c52, %c0_44], %40 {strides = array<i32>} : memref<256x768xf32, #tpu.memory_space<vmem>>, vector<4x768xf32>,
    %c0_45 = arith.constant 0 : index
    %c0_46 = arith.constant 0 : index
    %c36_47 = arith.constant 36 : index
    %42 = vector.load %arg1[%c0_45, %c0_46, %c36_47] : memref<1x4x1024xf32, #tpu.memory_space<vmem>>, vector<1x4x768xf32>
    %43 = vector.shape_cast %42 : vector<1x4x768xf32> to vector<4x768xf32>
    %c56 = arith.constant 56 : index
    %c0_48 = arith.constant 0 : index
    %44 = vector.load %arg5[%c56, %c0_48] : memref<256x768xf32, #tpu.memory_space<vmem>>, vector<4x768xf32>
    tpu.vector_store %arg5[%c56, %c0_48], %43 {strides = array<i32>} : memref<256x768xf32, #tpu.memory_space<vmem>>, vector<4x768xf32>,
    %c0_49 = arith.constant 0 : index
    %c0_50 = arith.constant 0 : index
    %c37 = arith.constant 37 : index
    %45 = vector.load %arg1[%c0_49, %c0_50, %c37] : memref<1x4x1024xf32, #tpu.memory_space<vmem>>, vector<1x4x768xf32>
    %46 = vector.shape_cast %45 : vector<1x4x768xf32> to vector<4x768xf32>
    %c60 = arith.constant 60 : index
    %c0_51 = arith.constant 0 : index
    %47 = vector.load %arg5[%c60, %c0_51] : memref<256x768xf32, #tpu.memory_space<vmem>>, vector<4x768xf32>
    tpu.vector_store %arg5[%c60, %c0_51], %46 {strides = array<i32>} : memref<256x768xf32, #tpu.memory_space<vmem>>, vector<4x768xf32>,
    %c0_52 = arith.constant 0 : index
    %c0_53 = arith.constant 0 : index
    %c60_54 = arith.constant 60 : index
    %48 = vector.load %arg1[%c0_52, %c0_53, %c60_54] : memref<1x4x1024xf32, #tpu.memory_space<vmem>>, vector<1x4x768xf32>
    %49 = vector.shape_cast %48 : vector<1x4x768xf32> to vector<4x768xf32>
    %c64 = arith.constant 64 : index
    %c0_55 = arith.constant 0 : index
    %50 = vector.load %arg5[%c64, %c0_55] : memref<256x768xf32, #tpu.memory_space<vmem>>, vector<4x768xf32>
    tpu.vector_store %arg5[%c64, %c0_55], %49 {strides = array<i32>} : memref<256x768xf32, #tpu.memory_space<vmem>>, vector<4x768xf32>,
    %c0_56 = arith.constant 0 : index
    %c0_57 = arith.constant 0 : index
    %c61 = arith.constant 61 : index
    %51 = vector.load %arg1[%c0_56, %c0_57, %c61] : memref<1x4x1024xf32, #tpu.memory_space<vmem>>, vector<1x4x768xf32>
    %52 = vector.shape_cast %51 : vector<1x4x768xf32> to vector<4x768xf32>
    %c68 = arith.constant 68 : index
    %c0_58 = arith.constant 0 : index
    %53 = vector.load %arg5[%c68, %c0_58] : memref<256x768xf32, #tpu.memory_space<vmem>>, vector<4x768xf32>
    tpu.vector_store %arg5[%c68, %c0_58], %52 {strides = array<i32>} : memref<256x768xf32, #tpu.memory_space<vmem>>, vector<4x768xf32>,
    %c0_59 = arith.constant 0 : index
    %c0_60 = arith.constant 0 : index
    %c62 = arith.constant 62 : index
    %54 = vector.load %arg1[%c0_59, %c0_60, %c62] : memref<1x4x1024xf32, #tpu.memory_space<vmem>>, vector<1x4x768xf32>
    %55 = vector.shape_cast %54 : vector<1x4x768xf32> to vector<4x768xf32>
    %c72 = arith.constant 72 : index
    %c0_61 = arith.constant 0 : index
    %56 = vector.load %arg5[%c72, %c0_61] : memref<256x768xf32, #tpu.memory_space<vmem>>, vector<4x768xf32>
    tpu.vector_store %arg5[%c72, %c0_61], %55 {strides = array<i32>} : memref<256x768xf32, #tpu.memory_space<vmem>>, vector<4x768xf32>,
    %c0_62 = arith.constant 0 : index
    %c0_63 = arith.constant 0 : index
    %c63 = arith.constant 63 : index
    %57 = vector.load %arg1[%c0_62, %c0_63, %c63] : memref<1x4x1024xf32, #tpu.memory_space<vmem>>, vector<1x4x768xf32>
    %58 = vector.shape_cast %57 : vector<1x4x768xf32> to vector<4x768xf32>
    %c76 = arith.constant 76 : index
    %c0_64 = arith.constant 0 : index
    %59 = vector.load %arg5[%c76, %c0_64] : memref<256x768xf32, #tpu.memory_space<vmem>>, vector<4x768xf32>
    tpu.vector_store %arg5[%c76, %c0_64], %58 {strides = array<i32>} : memref<256x768xf32, #tpu.memory_space<vmem>>, vector<4x768xf32>,
    %c0_65 = arith.constant 0 : index
    %c0_66 = arith.constant 0 : index
    %c64_67 = arith.constant 64 : index
    %60 = vector.load %arg1[%c0_65, %c0_66, %c64_67] : memref<1x4x1024xf32, #tpu.memory_space<vmem>>, vector<1x4x768xf32>
    %61 = vector.shape_cast %60 : vector<1x4x768xf32> to vector<4x768xf32>
    %c80 = arith.constant 80 : index
    %c0_68 = arith.constant 0 : index
    %62 = vector.load %arg5[%c80, %c0_68] : memref<256x768xf32, #tpu.memory_space<vmem>>, vector<4x768xf32>
    tpu.vector_store %arg5[%c80, %c0_68], %61 {strides = array<i32>} : memref<256x768xf32, #tpu.memory_space<vmem>>, vector<4x768xf32>,
    %c0_69 = arith.constant 0 : index
    %c0_70 = arith.constant 0 : index
    %c65 = arith.constant 65 : index
    %63 = vector.load %arg1[%c0_69, %c0_70, %c65] : memref<1x4x1024xf32, #tpu.memory_space<vmem>>, vector<1x4x768xf32>
    %64 = vector.shape_cast %63 : vector<1x4x768xf32> to vector<4x768xf32>
    %c84 = arith.constant 84 : index
    %c0_71 = arith.constant 0 : index
    %65 = vector.load %arg5[%c84, %c0_71] : memref<256x768xf32, #tpu.memory_space<vmem>>, vector<4x768xf32>
    tpu.vector_store %arg5[%c84, %c0_71], %64 {strides = array<i32>} : memref<256x768xf32, #tpu.memory_space<vmem>>, vector<4x768xf32>,
    %c0_72 = arith.constant 0 : index
    %c0_73 = arith.constant 0 : index
    %c66 = arith.constant 66 : index
    %66 = vector.load %arg1[%c0_72, %c0_73, %c66] : memref<1x4x1024xf32, #tpu.memory_space<vmem>>, vector<1x4x768xf32>
    %67 = vector.shape_cast %66 : vector<1x4x768xf32> to vector<4x768xf32>
    %c88 = arith.constant 88 : index
    %c0_74 = arith.constant 0 : index
    %68 = vector.load %arg5[%c88, %c0_74] : memref<256x768xf32, #tpu.memory_space<vmem>>, vector<4x768xf32>
    tpu.vector_store %arg5[%c88, %c0_74], %67 {strides = array<i32>} : memref<256x768xf32, #tpu.memory_space<vmem>>, vector<4x768xf32>,
    %c0_75 = arith.constant 0 : index
    %c0_76 = arith.constant 0 : index
    %c67 = arith.constant 67 : index
    %69 = vector.load %arg1[%c0_75, %c0_76, %c67] : memref<1x4x1024xf32, #tpu.memory_space<vmem>>, vector<1x4x768xf32>
    %70 = vector.shape_cast %69 : vector<1x4x768xf32> to vector<4x768xf32>
    %c92 = arith.constant 92 : index
    %c0_77 = arith.constant 0 : index
    %71 = vector.load %arg5[%c92, %c0_77] : memref<256x768xf32, #tpu.memory_space<vmem>>, vector<4x768xf32>
    tpu.vector_store %arg5[%c92, %c0_77], %70 {strides = array<i32>} : memref<256x768xf32, #tpu.memory_space<vmem>>, vector<4x768xf32>,
    %c0_78 = arith.constant 0 : index
    %c0_79 = arith.constant 0 : index
    %c90 = arith.constant 90 : index
    %72 = vector.load %arg1[%c0_78, %c0_79, %c90] : memref<1x4x1024xf32, #tpu.memory_space<vmem>>, vector<1x4x768xf32>
    %73 = vector.shape_cast %72 : vector<1x4x768xf32> to vector<4x768xf32>
    %c96 = arith.constant 96 : index
    %c0_80 = arith.constant 0 : index
    %74 = vector.load %arg5[%c96, %c0_80] : memref<256x768xf32, #tpu.memory_space<vmem>>, vector<4x768xf32>
    tpu.vector_store %arg5[%c96, %c0_80], %73 {strides = array<i32>} : memref<256x768xf32, #tpu.memory_space<vmem>>, vector<4x768xf32>,
    %c0_81 = arith.constant 0 : index
    %c0_82 = arith.constant 0 : index
    %c91 = arith.constant 91 : index
    %75 = vector.load %arg1[%c0_81, %c0_82, %c91] : memref<1x4x1024xf32, #tpu.memory_space<vmem>>, vector<1x4x768xf32>
    %76 = vector.shape_cast %75 : vector<1x4x768xf32> to vector<4x768xf32>
    %c100 = arith.constant 100 : index
    %c0_83 = arith.constant 0 : index
    %77 = vector.load %arg5[%c100, %c0_83] : memref<256x768xf32, #tpu.memory_space<vmem>>, vector<4x768xf32>
    tpu.vector_store %arg5[%c100, %c0_83], %76 {strides = array<i32>} : memref<256x768xf32, #tpu.memory_space<vmem>>, vector<4x768xf32>,
    %c0_84 = arith.constant 0 : index
    %c0_85 = arith.constant 0 : index
    %c92_86 = arith.constant 92 : index
    %78 = vector.load %arg1[%c0_84, %c0_85, %c92_86] : memref<1x4x1024xf32, #tpu.memory_space<vmem>>, vector<1x4x768xf32>
    %79 = vector.shape_cast %78 : vector<1x4x768xf32> to vector<4x768xf32>
    %c104 = arith.constant 104 : index
    %c0_87 = arith.constant 0 : index
    %80 = vector.load %arg5[%c104, %c0_87] : memref<256x768xf32, #tpu.memory_space<vmem>>, vector<4x768xf32>
    tpu.vector_store %arg5[%c104, %c0_87], %79 {strides = array<i32>} : memref<256x768xf32, #tpu.memory_space<vmem>>, vector<4x768xf32>,
    %c0_88 = arith.constant 0 : index
    %c0_89 = arith.constant 0 : index
    %c93 = arith.constant 93 : index
    %81 = vector.load %arg1[%c0_88, %c0_89, %c93] : memref<1x4x1024xf32, #tpu.memory_space<vmem>>, vector<1x4x768xf32>
    %82 = vector.shape_cast %81 : vector<1x4x768xf32> to vector<4x768xf32>
    %c108 = arith.constant 108 : index
    %c0_90 = arith.constant 0 : index
    %83 = vector.load %arg5[%c108, %c0_90] : memref<256x768xf32, #tpu.memory_space<vmem>>, vector<4x768xf32>
    tpu.vector_store %arg5[%c108, %c0_90], %82 {strides = array<i32>} : memref<256x768xf32, #tpu.memory_space<vmem>>, vector<4x768xf32>,
    %c0_91 = arith.constant 0 : index
    %c0_92 = arith.constant 0 : index
    %c94 = arith.constant 94 : index
    %84 = vector.load %arg1[%c0_91, %c0_92, %c94] : memref<1x4x1024xf32, #tpu.memory_space<vmem>>, vector<1x4x768xf32>
    %85 = vector.shape_cast %84 : vector<1x4x768xf32> to vector<4x768xf32>
    %c112 = arith.constant 112 : index
    %c0_93 = arith.constant 0 : index
    %86 = vector.load %arg5[%c112, %c0_93] : memref<256x768xf32, #tpu.memory_space<vmem>>, vector<4x768xf32>
    tpu.vector_store %arg5[%c112, %c0_93], %85 {strides = array<i32>} : memref<256x768xf32, #tpu.memory_space<vmem>>, vector<4x768xf32>,
    %c0_94 = arith.constant 0 : index
    %c0_95 = arith.constant 0 : index
    %c95 = arith.constant 95 : index
    %87 = vector.load %arg1[%c0_94, %c0_95, %c95] : memref<1x4x1024xf32, #tpu.memory_space<vmem>>, vector<1x4x768xf32>
    %88 = vector.shape_cast %87 : vector<1x4x768xf32> to vector<4x768xf32>
    %c116 = arith.constant 116 : index
    %c0_96 = arith.constant 0 : index
    %89 = vector.load %arg5[%c116, %c0_96] : memref<256x768xf32, #tpu.memory_space<vmem>>, vector<4x768xf32>
    tpu.vector_store %arg5[%c116, %c0_96], %88 {strides = array<i32>} : memref<256x768xf32, #tpu.memory_space<vmem>>, vector<4x768xf32>,
    %c0_97 = arith.constant 0 : index
    %c0_98 = arith.constant 0 : index
    %c96_99 = arith.constant 96 : index
    %90 = vector.load %arg1[%c0_97, %c0_98, %c96_99] : memref<1x4x1024xf32, #tpu.memory_space<vmem>>, vector<1x4x768xf32>
    %91 = vector.shape_cast %90 : vector<1x4x768xf32> to vector<4x768xf32>
    %c120 = arith.constant 120 : index
    %c0_100 = arith.constant 0 : index
    %92 = vector.load %arg5[%c120, %c0_100] : memref<256x768xf32, #tpu.memory_space<vmem>>, vector<4x768xf32>
    tpu.vector_store %arg5[%c120, %c0_100], %91 {strides = array<i32>} : memref<256x768xf32, #tpu.memory_space<vmem>>, vector<4x768xf32>,
    %c0_101 = arith.constant 0 : index
    %c0_102 = arith.constant 0 : index
    %c97 = arith.constant 97 : index
    %93 = vector.load %arg1[%c0_101, %c0_102, %c97] : memref<1x4x1024xf32, #tpu.memory_space<vmem>>, vector<1x4x768xf32>
    %94 = vector.shape_cast %93 : vector<1x4x768xf32> to vector<4x768xf32>
    %c124 = arith.constant 124 : index
    %c0_103 = arith.constant 0 : index
    %95 = vector.load %arg5[%c124, %c0_103] : memref<256x768xf32, #tpu.memory_space<vmem>>, vector<4x768xf32>
    tpu.vector_store %arg5[%c124, %c0_103], %94 {strides = array<i32>} : memref<256x768xf32, #tpu.memory_space<vmem>>, vector<4x768xf32>,
    %c0_104 = arith.constant 0 : index
    %c0_105 = arith.constant 0 : index
    %c120_106 = arith.constant 120 : index
    %96 = vector.load %arg1[%c0_104, %c0_105, %c120_106] : memref<1x4x1024xf32, #tpu.memory_space<vmem>>, vector<1x4x768xf32>
    %97 = vector.shape_cast %96 : vector<1x4x768xf32> to vector<4x768xf32>
    %c128 = arith.constant 128 : index
    %c0_107 = arith.constant 0 : index
    %98 = vector.load %arg5[%c128, %c0_107] : memref<256x768xf32, #tpu.memory_space<vmem>>, vector<4x768xf32>
    tpu.vector_store %arg5[%c128, %c0_107], %97 {strides = array<i32>} : memref<256x768xf32, #tpu.memory_space<vmem>>, vector<4x768xf32>,
    %c0_108 = arith.constant 0 : index
    %c0_109 = arith.constant 0 : index
    %c121 = arith.constant 121 : index
    %99 = vector.load %arg1[%c0_108, %c0_109, %c121] : memref<1x4x1024xf32, #tpu.memory_space<vmem>>, vector<1x4x768xf32>
    %100 = vector.shape_cast %99 : vector<1x4x768xf32> to vector<4x768xf32>
    %c132 = arith.constant 132 : index
    %c0_110 = arith.constant 0 : index
    %101 = vector.load %arg5[%c132, %c0_110] : memref<256x768xf32, #tpu.memory_space<vmem>>, vector<4x768xf32>
    tpu.vector_store %arg5[%c132, %c0_110], %100 {strides = array<i32>} : memref<256x768xf32, #tpu.memory_space<vmem>>, vector<4x768xf32>,
    %c0_111 = arith.constant 0 : index
    %c0_112 = arith.constant 0 : index
    %c122 = arith.constant 122 : index
    %102 = vector.load %arg1[%c0_111, %c0_112, %c122] : memref<1x4x1024xf32, #tpu.memory_space<vmem>>, vector<1x4x768xf32>
    %103 = vector.shape_cast %102 : vector<1x4x768xf32> to vector<4x768xf32>
    %c136 = arith.constant 136 : index
    %c0_113 = arith.constant 0 : index
    %104 = vector.load %arg5[%c136, %c0_113] : memref<256x768xf32, #tpu.memory_space<vmem>>, vector<4x768xf32>
    tpu.vector_store %arg5[%c136, %c0_113], %103 {strides = array<i32>} : memref<256x768xf32, #tpu.memory_space<vmem>>, vector<4x768xf32>,
    %c0_114 = arith.constant 0 : index
    %c0_115 = arith.constant 0 : index
    %c123 = arith.constant 123 : index
    %105 = vector.load %arg1[%c0_114, %c0_115, %c123] : memref<1x4x1024xf32, #tpu.memory_space<vmem>>, vector<1x4x768xf32>
    %106 = vector.shape_cast %105 : vector<1x4x768xf32> to vector<4x768xf32>
    %c140 = arith.constant 140 : index
    %c0_116 = arith.constant 0 : index
    %107 = vector.load %arg5[%c140, %c0_116] : memref<256x768xf32, #tpu.memory_space<vmem>>, vector<4x768xf32>
    tpu.vector_store %arg5[%c140, %c0_116], %106 {strides = array<i32>} : memref<256x768xf32, #tpu.memory_space<vmem>>, vector<4x768xf32>,
    %c0_117 = arith.constant 0 : index
    %c0_118 = arith.constant 0 : index
    %c124_119 = arith.constant 124 : index
    %108 = vector.load %arg1[%c0_117, %c0_118, %c124_119] : memref<1x4x1024xf32, #tpu.memory_space<vmem>>, vector<1x4x768xf32>
    %109 = vector.shape_cast %108 : vector<1x4x768xf32> to vector<4x768xf32>
    %c144 = arith.constant 144 : index
    %c0_120 = arith.constant 0 : index
    %110 = vector.load %arg5[%c144, %c0_120] : memref<256x768xf32, #tpu.memory_space<vmem>>, vector<4x768xf32>
    tpu.vector_store %arg5[%c144, %c0_120], %109 {strides = array<i32>} : memref<256x768xf32, #tpu.memory_space<vmem>>, vector<4x768xf32>,
    %c0_121 = arith.constant 0 : index
    %c0_122 = arith.constant 0 : index
    %c125 = arith.constant 125 : index
    %111 = vector.load %arg1[%c0_121, %c0_122, %c125] : memref<1x4x1024xf32, #tpu.memory_space<vmem>>, vector<1x4x768xf32>
    %112 = vector.shape_cast %111 : vector<1x4x768xf32> to vector<4x768xf32>
    %c148 = arith.constant 148 : index
    %c0_123 = arith.constant 0 : index
    %113 = vector.load %arg5[%c148, %c0_123] : memref<256x768xf32, #tpu.memory_space<vmem>>, vector<4x768xf32>
    tpu.vector_store %arg5[%c148, %c0_123], %112 {strides = array<i32>} : memref<256x768xf32, #tpu.memory_space<vmem>>, vector<4x768xf32>,
    %c0_124 = arith.constant 0 : index
    %c0_125 = arith.constant 0 : index
    %c126 = arith.constant 126 : index
    %114 = vector.load %arg1[%c0_124, %c0_125, %c126] : memref<1x4x1024xf32, #tpu.memory_space<vmem>>, vector<1x4x768xf32>
    %115 = vector.shape_cast %114 : vector<1x4x768xf32> to vector<4x768xf32>
    %c152 = arith.constant 152 : index
    %c0_126 = arith.constant 0 : index
    %116 = vector.load %arg5[%c152, %c0_126] : memref<256x768xf32, #tpu.memory_space<vmem>>, vector<4x768xf32>
    tpu.vector_store %arg5[%c152, %c0_126], %115 {strides = array<i32>} : memref<256x768xf32, #tpu.memory_space<vmem>>, vector<4x768xf32>,
    %c0_127 = arith.constant 0 : index
    %c0_128 = arith.constant 0 : index
    %c127 = arith.constant 127 : index
    %117 = vector.load %arg1[%c0_127, %c0_128, %c127] : memref<1x4x1024xf32, #tpu.memory_space<vmem>>, vector<1x4x768xf32>
    %118 = vector.shape_cast %117 : vector<1x4x768xf32> to vector<4x768xf32>
    %c156 = arith.constant 156 : index
    %c0_129 = arith.constant 0 : index
    %119 = vector.load %arg5[%c156, %c0_129] : memref<256x768xf32, #tpu.memory_space<vmem>>, vector<4x768xf32>
    tpu.vector_store %arg5[%c156, %c0_129], %118 {strides = array<i32>} : memref<256x768xf32, #tpu.memory_space<vmem>>, vector<4x768xf32>,
    %c0_130 = arith.constant 0 : index
    %c0_131 = arith.constant 0 : index
    %c150 = arith.constant 150 : index
    %120 = vector.load %arg1[%c0_130, %c0_131, %c150] : memref<1x4x1024xf32, #tpu.memory_space<vmem>>, vector<1x4x768xf32>
    %121 = vector.shape_cast %120 : vector<1x4x768xf32> to vector<4x768xf32>
    %c160 = arith.constant 160 : index
    %c0_132 = arith.constant 0 : index
    %122 = vector.load %arg5[%c160, %c0_132] : memref<256x768xf32, #tpu.memory_space<vmem>>, vector<4x768xf32>
    tpu.vector_store %arg5[%c160, %c0_132], %121 {strides = array<i32>} : memref<256x768xf32, #tpu.memory_space<vmem>>, vector<4x768xf32>,
    %c0_133 = arith.constant 0 : index
    %c0_134 = arith.constant 0 : index
    %c151 = arith.constant 151 : index
    %123 = vector.load %arg1[%c0_133, %c0_134, %c151] : memref<1x4x1024xf32, #tpu.memory_space<vmem>>, vector<1x4x768xf32>
    %124 = vector.shape_cast %123 : vector<1x4x768xf32> to vector<4x768xf32>
    %c164 = arith.constant 164 : index
    %c0_135 = arith.constant 0 : index
    %125 = vector.load %arg5[%c164, %c0_135] : memref<256x768xf32, #tpu.memory_space<vmem>>, vector<4x768xf32>
    tpu.vector_store %arg5[%c164, %c0_135], %124 {strides = array<i32>} : memref<256x768xf32, #tpu.memory_space<vmem>>, vector<4x768xf32>,
    %c0_136 = arith.constant 0 : index
    %c0_137 = arith.constant 0 : index
    %c152_138 = arith.constant 152 : index
    %126 = vector.load %arg1[%c0_136, %c0_137, %c152_138] : memref<1x4x1024xf32, #tpu.memory_space<vmem>>, vector<1x4x768xf32>
    %127 = vector.shape_cast %126 : vector<1x4x768xf32> to vector<4x768xf32>
    %c168 = arith.constant 168 : index
    %c0_139 = arith.constant 0 : index
    %128 = vector.load %arg5[%c168, %c0_139] : memref<256x768xf32, #tpu.memory_space<vmem>>, vector<4x768xf32>
    tpu.vector_store %arg5[%c168, %c0_139], %127 {strides = array<i32>} : memref<256x768xf32, #tpu.memory_space<vmem>>, vector<4x768xf32>,
    %c0_140 = arith.constant 0 : index
    %c0_141 = arith.constant 0 : index
    %c153 = arith.constant 153 : index
    %129 = vector.load %arg1[%c0_140, %c0_141, %c153] : memref<1x4x1024xf32, #tpu.memory_space<vmem>>, vector<1x4x768xf32>
    %130 = vector.shape_cast %129 : vector<1x4x768xf32> to vector<4x768xf32>
    %c172 = arith.constant 172 : index
    %c0_142 = arith.constant 0 : index
    %131 = vector.load %arg5[%c172, %c0_142] : memref<256x768xf32, #tpu.memory_space<vmem>>, vector<4x768xf32>
    tpu.vector_store %arg5[%c172, %c0_142], %130 {strides = array<i32>} : memref<256x768xf32, #tpu.memory_space<vmem>>, vector<4x768xf32>,
    %c0_143 = arith.constant 0 : index
    %c0_144 = arith.constant 0 : index
    %c154 = arith.constant 154 : index
    %132 = vector.load %arg1[%c0_143, %c0_144, %c154] : memref<1x4x1024xf32, #tpu.memory_space<vmem>>, vector<1x4x768xf32>
    %133 = vector.shape_cast %132 : vector<1x4x768xf32> to vector<4x768xf32>
    %c176 = arith.constant 176 : index
    %c0_145 = arith.constant 0 : index
    %134 = vector.load %arg5[%c176, %c0_145] : memref<256x768xf32, #tpu.memory_space<vmem>>, vector<4x768xf32>
    tpu.vector_store %arg5[%c176, %c0_145], %133 {strides = array<i32>} : memref<256x768xf32, #tpu.memory_space<vmem>>, vector<4x768xf32>,
    %c0_146 = arith.constant 0 : index
    %c0_147 = arith.constant 0 : index
    %c155 = arith.constant 155 : index
    %135 = vector.load %arg1[%c0_146, %c0_147, %c155] : memref<1x4x1024xf32, #tpu.memory_space<vmem>>, vector<1x4x768xf32>
    %136 = vector.shape_cast %135 : vector<1x4x768xf32> to vector<4x768xf32>
    %c180 = arith.constant 180 : index
    %c0_148 = arith.constant 0 : index
    %137 = vector.load %arg5[%c180, %c0_148] : memref<256x768xf32, #tpu.memory_space<vmem>>, vector<4x768xf32>
    tpu.vector_store %arg5[%c180, %c0_148], %136 {strides = array<i32>} : memref<256x768xf32, #tpu.memory_space<vmem>>, vector<4x768xf32>,
    %c0_149 = arith.constant 0 : index
    %c0_150 = arith.constant 0 : index
    %c156_151 = arith.constant 156 : index
    %138 = vector.load %arg1[%c0_149, %c0_150, %c156_151] : memref<1x4x1024xf32, #tpu.memory_space<vmem>>, vector<1x4x768xf32>
    %139 = vector.shape_cast %138 : vector<1x4x768xf32> to vector<4x768xf32>
    %c184 = arith.constant 184 : index
    %c0_152 = arith.constant 0 : index
    %140 = vector.load %arg5[%c184, %c0_152] : memref<256x768xf32, #tpu.memory_space<vmem>>, vector<4x768xf32>
    tpu.vector_store %arg5[%c184, %c0_152], %139 {strides = array<i32>} : memref<256x768xf32, #tpu.memory_space<vmem>>, vector<4x768xf32>,
    %c0_153 = arith.constant 0 : index
    %c0_154 = arith.constant 0 : index
    %c157 = arith.constant 157 : index
    %141 = vector.load %arg1[%c0_153, %c0_154, %c157] : memref<1x4x1024xf32, #tpu.memory_space<vmem>>, vector<1x4x768xf32>
    %142 = vector.shape_cast %141 : vector<1x4x768xf32> to vector<4x768xf32>
    %c188 = arith.constant 188 : index
    %c0_155 = arith.constant 0 : index
    %143 = vector.load %arg5[%c188, %c0_155] : memref<256x768xf32, #tpu.memory_space<vmem>>, vector<4x768xf32>
    tpu.vector_store %arg5[%c188, %c0_155], %142 {strides = array<i32>} : memref<256x768xf32, #tpu.memory_space<vmem>>, vector<4x768xf32>,
    %c0_156 = arith.constant 0 : index
    %c0_157 = arith.constant 0 : index
    %c180_158 = arith.constant 180 : index
    %144 = vector.load %arg1[%c0_156, %c0_157, %c180_158] : memref<1x4x1024xf32, #tpu.memory_space<vmem>>, vector<1x4x768xf32>
    %145 = vector.shape_cast %144 : vector<1x4x768xf32> to vector<4x768xf32>
    %c192 = arith.constant 192 : index
    %c0_159 = arith.constant 0 : index
    %146 = vector.load %arg5[%c192, %c0_159] : memref<256x768xf32, #tpu.memory_space<vmem>>, vector<4x768xf32>
    tpu.vector_store %arg5[%c192, %c0_159], %145 {strides = array<i32>} : memref<256x768xf32, #tpu.memory_space<vmem>>, vector<4x768xf32>,
    %c0_160 = arith.constant 0 : index
    %c0_161 = arith.constant 0 : index
    %c181 = arith.constant 181 : index
    %147 = vector.load %arg1[%c0_160, %c0_161, %c181] : memref<1x4x1024xf32, #tpu.memory_space<vmem>>, vector<1x4x768xf32>
    %148 = vector.shape_cast %147 : vector<1x4x768xf32> to vector<4x768xf32>
    %c196 = arith.constant 196 : index
    %c0_162 = arith.constant 0 : index
    %149 = vector.load %arg5[%c196, %c0_162] : memref<256x768xf32, #tpu.memory_space<vmem>>, vector<4x768xf32>
    tpu.vector_store %arg5[%c196, %c0_162], %148 {strides = array<i32>} : memref<256x768xf32, #tpu.memory_space<vmem>>, vector<4x768xf32>,
    %c0_163 = arith.constant 0 : index
    %c0_164 = arith.constant 0 : index
    %c182 = arith.constant 182 : index
    %150 = vector.load %arg1[%c0_163, %c0_164, %c182] : memref<1x4x1024xf32, #tpu.memory_space<vmem>>, vector<1x4x768xf32>
    %151 = vector.shape_cast %150 : vector<1x4x768xf32> to vector<4x768xf32>
    %c200 = arith.constant 200 : index
    %c0_165 = arith.constant 0 : index
    %152 = vector.load %arg5[%c200, %c0_165] : memref<256x768xf32, #tpu.memory_space<vmem>>, vector<4x768xf32>
    tpu.vector_store %arg5[%c200, %c0_165], %151 {strides = array<i32>} : memref<256x768xf32, #tpu.memory_space<vmem>>, vector<4x768xf32>,
    %c0_166 = arith.constant 0 : index
    %c0_167 = arith.constant 0 : index
    %c183 = arith.constant 183 : index
    %153 = vector.load %arg1[%c0_166, %c0_167, %c183] : memref<1x4x1024xf32, #tpu.memory_space<vmem>>, vector<1x4x768xf32>
    %154 = vector.shape_cast %153 : vector<1x4x768xf32> to vector<4x768xf32>
    %c204 = arith.constant 204 : index
    %c0_168 = arith.constant 0 : index
    %155 = vector.load %arg5[%c204, %c0_168] : memref<256x768xf32, #tpu.memory_space<vmem>>, vector<4x768xf32>
    tpu.vector_store %arg5[%c204, %c0_168], %154 {strides = array<i32>} : memref<256x768xf32, #tpu.memory_space<vmem>>, vector<4x768xf32>,
    %c0_169 = arith.constant 0 : index
    %c0_170 = arith.constant 0 : index
    %c184_171 = arith.constant 184 : index
    %156 = vector.load %arg1[%c0_169, %c0_170, %c184_171] : memref<1x4x1024xf32, #tpu.memory_space<vmem>>, vector<1x4x768xf32>
    %157 = vector.shape_cast %156 : vector<1x4x768xf32> to vector<4x768xf32>
    %c208 = arith.constant 208 : index
    %c0_172 = arith.constant 0 : index
    %158 = vector.load %arg5[%c208, %c0_172] : memref<256x768xf32, #tpu.memory_space<vmem>>, vector<4x768xf32>
    tpu.vector_store %arg5[%c208, %c0_172], %157 {strides = array<i32>} : memref<256x768xf32, #tpu.memory_space<vmem>>, vector<4x768xf32>,
    %c0_173 = arith.constant 0 : index
    %c0_174 = arith.constant 0 : index
    %c185 = arith.constant 185 : index
    %159 = vector.load %arg1[%c0_173, %c0_174, %c185] : memref<1x4x1024xf32, #tpu.memory_space<vmem>>, vector<1x4x768xf32>
    %160 = vector.shape_cast %159 : vector<1x4x768xf32> to vector<4x768xf32>
    %c212 = arith.constant 212 : index
    %c0_175 = arith.constant 0 : index
    %161 = vector.load %arg5[%c212, %c0_175] : memref<256x768xf32, #tpu.memory_space<vmem>>, vector<4x768xf32>
    tpu.vector_store %arg5[%c212, %c0_175], %160 {strides = array<i32>} : memref<256x768xf32, #tpu.memory_space<vmem>>, vector<4x768xf32>,
    %c0_176 = arith.constant 0 : index
    %c0_177 = arith.constant 0 : index
    %c186 = arith.constant 186 : index
    %162 = vector.load %arg1[%c0_176, %c0_177, %c186] : memref<1x4x1024xf32, #tpu.memory_space<vmem>>, vector<1x4x768xf32>
    %163 = vector.shape_cast %162 : vector<1x4x768xf32> to vector<4x768xf32>
    %c216 = arith.constant 216 : index
    %c0_178 = arith.constant 0 : index
    %164 = vector.load %arg5[%c216, %c0_178] : memref<256x768xf32, #tpu.memory_space<vmem>>, vector<4x768xf32>
    tpu.vector_store %arg5[%c216, %c0_178], %163 {strides = array<i32>} : memref<256x768xf32, #tpu.memory_space<vmem>>, vector<4x768xf32>,
    %c0_179 = arith.constant 0 : index
    %c0_180 = arith.constant 0 : index
    %c187 = arith.constant 187 : index
    %165 = vector.load %arg1[%c0_179, %c0_180, %c187] : memref<1x4x1024xf32, #tpu.memory_space<vmem>>, vector<1x4x768xf32>
    %166 = vector.shape_cast %165 : vector<1x4x768xf32> to vector<4x768xf32>
    %c220 = arith.constant 220 : index
    %c0_181 = arith.constant 0 : index
    %167 = vector.load %arg5[%c220, %c0_181] : memref<256x768xf32, #tpu.memory_space<vmem>>, vector<4x768xf32>
    tpu.vector_store %arg5[%c220, %c0_181], %166 {strides = array<i32>} : memref<256x768xf32, #tpu.memory_space<vmem>>, vector<4x768xf32>,
    %c0_182 = arith.constant 0 : index
    %c0_183 = arith.constant 0 : index
    %c210 = arith.constant 210 : index
    %168 = vector.load %arg1[%c0_182, %c0_183, %c210] : memref<1x4x1024xf32, #tpu.memory_space<vmem>>, vector<1x4x768xf32>
    %169 = vector.shape_cast %168 : vector<1x4x768xf32> to vector<4x768xf32>
    %c224 = arith.constant 224 : index
    %c0_184 = arith.constant 0 : index
    %170 = vector.load %arg5[%c224, %c0_184] : memref<256x768xf32, #tpu.memory_space<vmem>>, vector<4x768xf32>
    tpu.vector_store %arg5[%c224, %c0_184], %169 {strides = array<i32>} : memref<256x768xf32, #tpu.memory_space<vmem>>, vector<4x768xf32>,
    %c0_185 = arith.constant 0 : index
    %c0_186 = arith.constant 0 : index
    %c211 = arith.constant 211 : index
    %171 = vector.load %arg1[%c0_185, %c0_186, %c211] : memref<1x4x1024xf32, #tpu.memory_space<vmem>>, vector<1x4x768xf32>
    %172 = vector.shape_cast %171 : vector<1x4x768xf32> to vector<4x768xf32>
    %c228 = arith.constant 228 : index
    %c0_187 = arith.constant 0 : index
    %173 = vector.load %arg5[%c228, %c0_187] : memref<256x768xf32, #tpu.memory_space<vmem>>, vector<4x768xf32>
    tpu.vector_store %arg5[%c228, %c0_187], %172 {strides = array<i32>} : memref<256x768xf32, #tpu.memory_space<vmem>>, vector<4x768xf32>,
    %c0_188 = arith.constant 0 : index
    %c0_189 = arith.constant 0 : index
    %c212_190 = arith.constant 212 : index
    %174 = vector.load %arg1[%c0_188, %c0_189, %c212_190] : memref<1x4x1024xf32, #tpu.memory_space<vmem>>, vector<1x4x768xf32>
    %175 = vector.shape_cast %174 : vector<1x4x768xf32> to vector<4x768xf32>
    %c232 = arith.constant 232 : index
    %c0_191 = arith.constant 0 : index
    %176 = vector.load %arg5[%c232, %c0_191] : memref<256x768xf32, #tpu.memory_space<vmem>>, vector<4x768xf32>
    tpu.vector_store %arg5[%c232, %c0_191], %175 {strides = array<i32>} : memref<256x768xf32, #tpu.memory_space<vmem>>, vector<4x768xf32>,
    %c0_192 = arith.constant 0 : index
    %c0_193 = arith.constant 0 : index
    %c213 = arith.constant 213 : index
    %177 = vector.load %arg1[%c0_192, %c0_193, %c213] : memref<1x4x1024xf32, #tpu.memory_space<vmem>>, vector<1x4x768xf32>
    %178 = vector.shape_cast %177 : vector<1x4x768xf32> to vector<4x768xf32>
    %c236 = arith.constant 236 : index
    %c0_194 = arith.constant 0 : index
    %179 = vector.load %arg5[%c236, %c0_194] : memref<256x768xf32, #tpu.memory_space<vmem>>, vector<4x768xf32>
    tpu.vector_store %arg5[%c236, %c0_194], %178 {strides = array<i32>} : memref<256x768xf32, #tpu.memory_space<vmem>>, vector<4x768xf32>,
    %c0_195 = arith.constant 0 : index
    %c0_196 = arith.constant 0 : index
    %c214 = arith.constant 214 : index
    %180 = vector.load %arg1[%c0_195, %c0_196, %c214] : memref<1x4x1024xf32, #tpu.memory_space<vmem>>, vector<1x4x768xf32>
    %181 = vector.shape_cast %180 : vector<1x4x768xf32> to vector<4x768xf32>
    %c240 = arith.constant 240 : index
    %c0_197 = arith.constant 0 : index
    %182 = vector.load %arg5[%c240, %c0_197] : memref<256x768xf32, #tpu.memory_space<vmem>>, vector<4x768xf32>
    tpu.vector_store %arg5[%c240, %c0_197], %181 {strides = array<i32>} : memref<256x768xf32, #tpu.memory_space<vmem>>, vector<4x768xf32>,
    %c0_198 = arith.constant 0 : index
    %c0_199 = arith.constant 0 : index
    %c215 = arith.constant 215 : index
    %183 = vector.load %arg1[%c0_198, %c0_199, %c215] : memref<1x4x1024xf32, #tpu.memory_space<vmem>>, vector<1x4x768xf32>
    %184 = vector.shape_cast %183 : vector<1x4x768xf32> to vector<4x768xf32>
    %c244 = arith.constant 244 : index
    %c0_200 = arith.constant 0 : index
    %185 = vector.load %arg5[%c244, %c0_200] : memref<256x768xf32, #tpu.memory_space<vmem>>, vector<4x768xf32>
    tpu.vector_store %arg5[%c244, %c0_200], %184 {strides = array<i32>} : memref<256x768xf32, #tpu.memory_space<vmem>>, vector<4x768xf32>,
    %c0_201 = arith.constant 0 : index
    %c0_202 = arith.constant 0 : index
    %c216_203 = arith.constant 216 : index
    %186 = vector.load %arg1[%c0_201, %c0_202, %c216_203] : memref<1x4x1024xf32, #tpu.memory_space<vmem>>, vector<1x4x768xf32>
    %187 = vector.shape_cast %186 : vector<1x4x768xf32> to vector<4x768xf32>
    %c248 = arith.constant 248 : index
    %c0_204 = arith.constant 0 : index
    %188 = vector.load %arg5[%c248, %c0_204] : memref<256x768xf32, #tpu.memory_space<vmem>>, vector<4x768xf32>
    tpu.vector_store %arg5[%c248, %c0_204], %187 {strides = array<i32>} : memref<256x768xf32, #tpu.memory_space<vmem>>, vector<4x768xf32>,
    %c0_205 = arith.constant 0 : index
    %c0_206 = arith.constant 0 : index
    %c217 = arith.constant 217 : index
    %189 = vector.load %arg1[%c0_205, %c0_206, %c217] : memref<1x4x1024xf32, #tpu.memory_space<vmem>>, vector<1x4x768xf32>
    %190 = vector.shape_cast %189 : vector<1x4x768xf32> to vector<4x768xf32>
    %c252 = arith.constant 252 : index
    %c0_207 = arith.constant 0 : index
    %191 = vector.load %arg5[%c252, %c0_207] : memref<256x768xf32, #tpu.memory_space<vmem>>, vector<4x768xf32>
    tpu.vector_store %arg5[%c252, %c0_207], %190 {strides = array<i32>} : memref<256x768xf32, #tpu.memory_space<vmem>>, vector<4x768xf32>,
    %c0_208 = arith.constant 0 : index
    %c0_209 = arith.constant 0 : index
    %192 = vector.load %arg2[%c0_208, %c0_209] : memref<8x256xf32, #tpu.memory_space<vmem>>, vector<8x256xf32>
    %c0_210 = arith.constant 0 : index
    %c0_211 = arith.constant 0 : index
    %193 = vector.load %arg5[%c0_210, %c0_211] : memref<256x768xf32, #tpu.memory_space<vmem>>, vector<256x768xf32>
    %cst = arith.constant dense<0.000000e+00> : vector<8x768xf32>
    %194 = tpu.matmul %192, %193, %cst {dimension_numbers = #tpu.dot_dimension_numbers<[1], [0], [0], [1], [0, 0, 1, 1], [], []>} : vector<8x256xf32>, vector<256x768xf32>, vector<8x768xf32> -> vector<8x768xf32>
    %c0_212 = arith.constant 0 : index
    %c0_213 = arith.constant 0 : index
    %195 = vector.load %arg3[%c0_212, %c0_213] : memref<8x1xf32, #tpu.memory_space<vmem>>, vector<8x1xf32>
    %196 = vector.broadcast %195 : vector<8x1xf32> to vector<8x768xf32>
    %197 = arith.addf %194, %196 : vector<8x768xf32>
    %c0_214 = arith.constant 0 : index
    %c0_215 = arith.constant 0 : index
    %c0_216 = arith.constant 0 : index
    %198 = vector.load %arg4[%c0_214, %c0_215, %c0_216] : memref<1x8x768xf32, #tpu.memory_space<vmem>>, vector<1x8x768xf32>
    %199 = vector.shape_cast %198 : vector<1x8x768xf32> to vector<8x768xf32>
    %200 = vector.shape_cast %197 : vector<8x768xf32> to vector<1x8x768xf32>
    tpu.vector_store %arg4[%c0_214, %c0_215, %c0_216], %200 {strides = array<i32>} : memref<1x8x768xf32, #tpu.memory_space<vmem>>, vector<1x8x768xf32>,
    return
  }
  func.func @transform_0(%arg0: i32) -> (i32, i32, i32) {
    %c0_i32 = arith.constant 0 : i32
    %c0_i32_0 = arith.constant 0 : i32
    %c0_i32_1 = arith.constant 0 : i32
    return %arg0, %c0_i32, %c0_i32_0 : i32, i32, i32
  }
  func.func @transform_1(%arg0: i32) -> (i32, i32) {
    %c0_i32 = arith.constant 0 : i32
    %c0_i32_0 = arith.constant 0 : i32
    %c0_i32_1 = arith.constant 0 : i32
    return %c0_i32, %c0_i32_0 : i32, i32
  }
  func.func @transform_2(%arg0: i32) -> (i32, i32) {
    %c0_i32 = arith.constant 0 : i32
    %c0_i32_0 = arith.constant 0 : i32
    %c0_i32_1 = arith.constant 0 : i32
    return %c0_i32, %c0_i32_0 : i32, i32
  }
  func.func @transform_3(%arg0: i32) -> (i32, i32, i32) {
    %c0_i32 = arith.constant 0 : i32
    %c0_i32_0 = arith.constant 0 : i32
    %c0_i32_1 = arith.constant 0 : i32
    return %arg0, %c0_i32, %c0_i32_0 : i32, i32, i32
  }
}

</mosaic_0001>

<bundles_post_ra>
// kernel: tpu_custom_call.1
= control target key start
LH: loop header
LB: loop body
LE: loop exit
PB: predicated region body
PF: predicated region fallthrough
CT: control target
= control target key end

     0   :  { %8 = vsyncpa [#allocation4], 0  ;;  %s6926_s0 = inlined_call_operand.hbm [shape: f32[2,4,1024], index: 0, kind: input, shape index: {}]   ;;  %s6927_s1 = inlined_call_operand.hbm [shape: f32[8,256], index: 1, kind: input, shape index: {}]   ;;  %s6928_s2 = inlined_call_operand.vmem [shape: f32[8,1], index: 2, kind: input, shape index: {}]   ;;  %s6929_s3 = inlined_call_operand.hbm [shape: f32[2,8,768], index: 3, kind: output, shape index: {}]  }
   0x1   :  { %10 = vsyncpa [#allocation4 + $0x1], 0 }
   0x2   :  { %11 = vsyncpa [#allocation7], 0 }
   0x3   :  { %12 = vsyncpa [#allocation5], 0 }
   0x4   :  { %14 = vsyncpa [#allocation5 + $0x1], 0  ;;  %s4628_s12 = smov 0   ;;  %s4630_s13 = smov 0  }
   0x5   :  { %s4632_s14 = smov 0   ;;  %s4634_s15 = smov 0  }
   0x6 LB: > { %s4649_s16 = sadd.s32 4294967295, %s4541_s15   ;;  %s4273_s17 = sadd.s32 4294967294, %s4541_s15   ;;  %s4541_s15 = sphi %s4634_s15, %s6945_s15   ;;  %s4537_s14 = sphi %s4632_s14, %s6944_s14   ;;  %s4533_s13 = sphi %s4630_s13, %s6943_s13   ;;  %s4529_s12 = sphi %s4628_s12, %s6942_s12  }
   0x7   : > { %p40_p0 = scmp.ne.s32.totalorder %s4533_s13, %s4529_s12  ;;  %p41_p1 = scmp.eq.s32.totalorder %s4649_s16, 0 }
   0x8   : > { %p106_p2 = scmp.eq.s32.totalorder %s4649_s16, 1  ;;  %p112_p3 = scmp.eq.s32.totalorder %s4273_s17, 1 }
   0x9   : > { %p4658_p4 = por %p41_p1, %p40_p0  ;;  %p4274_p5 = scmp.ge.s32.totalorder %s4541_s15, 1 }
   0xa   : > { %p4663_p6 = por %p112_p3, %p40_p0  ;;  %p119_p7 = scmp.lt.s32.totalorder %s4541_s15, 3 }
   0xb   : > { %s131_s22 = sshll.u32 %s6927_s1, 4  ;;  %s4543_s24 = smov [#allocation6]   ;;  %s132_s22 = int_to_ptr.hbm [resolvable:$true] %s131_s22 }
   0xc   : > { %p4671_p8 = pnand %p4274_p5, %p119_p7  ;;  %s133_s25 = sshll.u32 %s4543_s24, 4  ;;  %s134_s25 = int_to_ptr.vmem [resolvable:$true] %s133_s25 }
   0xd   : > { %s4681_s26 = sadd.s32 1, %s4541_s15   ;;  %s27_s27 = sadd.s32 1, %s4537_s14 }
   0xe   : > { %p4297_p10 = pneg %p4671_p8  ;;  %s24_s28 = ssub.s32 %s4541_s15, %s4681_s26 }
   0xf   : > { %p25_p12 = scmp.eq.s32.totalorder %s24_s28, 0  ;;  %p34_p13 = scmp.ne.s32.totalorder %s4537_s14, %s4533_s13 }
  0x10   : > { %p4298_p11 = pnand %p4297_p10, %p41_p1  ;;  %p35_p0 = scmp.eq.s32.totalorder %s4541_s15, 0 }
  0x11   : > { %s4690_s29 = scalar_select %p25_p12, %s4537_s14, %s27_s27  }
  0x12   : > { %4300 = dma.hbm_to_vmem [thread:$0]  (!%p4298_p11), %s132_s22, 256, %s134_s25, [#allocation7]  }
  0x13   : > { %p4694_p3 = por %p106_p2, %p34_p13  ;;  %p4310_p5 = scmp.lt.s32.totalorder %s4541_s15, 2 }
  0x14   : > { %s147_s4 = sand.u32 1, %s4537_s14   ;;  %s4286_s5 = sshll.u32 %s4541_s15, 5 }
  0x15   : > { %p36_p7 = por %p35_p0, %p34_p13  ;;  %s4277_s6 = sshll.u32 %s147_s4, 5 }
  0x16   : > { %s156_s9 = scalar_lea.hbm %s6926_s0, %s4286_s5  ;;  %s151_s11 = scalar_lea.vmem [#allocation3], %s4277_s6 }
  0x17   : > { %s158_s10 = sshll.u32 %s156_s9, 4  ;;  %s160_s17 = sshll.u32 %s151_s11, 4  ;;  %s159_s10 = int_to_ptr.hbm [resolvable:$true] %s158_s10  ;;  %s161_s17 = int_to_ptr.vmem [resolvable:$true] %s160_s17 }
  0x18   : > { %p4704_p10 = pnand %p4310_p5, %p36_p7  ;;  %s148_s21 = scalar_lea.sflag [#allocation4], %s147_s4 }
  0x19   : > { %s4441_s22 = sshra.s32 %s159_s10, 4  ;;  %s4448_s28 = scalar_lea.hbm %s6926_s0, 64  ;;  %s4442_s22 = int_to_ptr.hbm [resolvable:$true] %s4441_s22 }
  0x1a   : > { %s4443_s24 = scalar_lea.hbm %s4442_s22, 32  ;;  %p4445_p11 = pneg %p4704_p10 }
  0x1b   : > { %p4444_p2 = scmp.ne.s32.totalorder %s4442_s22, %s4443_s24  ;;  %p4449_p0 = scmp.lt.s32.totalorder %s4442_s22, %s6926_s0 }
  0x1c   : > { %p4450_p5 = scmp.lt.s32.totalorder %s4448_s28, %s4443_s24 }
  0x1d   : > { %p4446_p12 = pnand %p4445_p11, %p4444_p2 }
  0x1e   : > { %p4451_p7 = por %p4450_p5, %p4449_p0 }
  0x1f   : > { %p4447_p13 = pneg %p4446_p12 }
  0x21   : > { %p4452_p9 = pnand %p4451_p7, %p4447_p13 }
  0x23   : > { %4455 = shalt.err (!%p4452_p9)
}
  0x24   : > { %4304 = dma.hbm_to_vmem [thread:$0]  (!%p4704_p10), %s159_s10, 512, %s161_s17, %s148_s21  }
  0x25   : > { %169 = sbr.rel (%p4671_p8) target bundleno = 1520 (0x5f0), region = 32 }
  0x2a   : > { %s4721_s4 = sand.u32 1, %s4533_s13  }
  0x2b   : > { %s4281_s7 = sshll.u32 %s4721_s4, 5  ;;  %s172_s8 = scalar_lea.sflag [#allocation4], %s4721_s4 }
  0x2c   : > { %s4725_s9 = scalar_lea.vmem [#allocation3], %s4281_s7 }
  0x2d   : > { %4516 = dma.done.wait (%p4658_p4), %s172_s8, 512  }
  0x2e   : > { %4518 = vsyncadd (%p4658_p4), %s172_s8, 4294966784 }
  0x2f   : > { %4520 = dma.done.wait (%p41_p1), [#allocation7], 256  }
  0x30   : > { %4522 = vsyncadd (%p41_p1), [#allocation7], 4294967040  ;;  %v236_v0 = vld [vmem:[%s4725_s9 + $0x18] sm:$0xf]  ;;  %v4737_v1 = vld [vmem:[%s4725_s9 + $0x10] sm:$0xff]  ;;  %s4544_s18 = smov 127  }
  0x31   : > { %v4740_v2 = vld [vmem:[%s4725_s9 + $0x8] sm:$0xff]  ;;  %248 = vst [vmem:[#allocation1 + $0x31] ss:$2 sm:$0xff] %v236_v0  ;;  %v4743_v3 = vld [vmem:[%s4725_s9] sm:$0xff]  ;;  %v292_v11 = vld [vmem:[%s4725_s9 + $0x18] sm:$0xf] }
  0x32   : > { %214 = vst [vmem:[#allocation1 + $0x20] ss:$2 sm:$0xff] %v4737_v1  ;;  %v347_v24 = vld [vmem:[%s4725_s9 + $0x18] sm:$0xf]  ;;  %s4545_s23 = smov 126   ;;  %s4546_s10 = smov 125  }
  0x33   : > { %212 = vst [vmem:[#allocation1 + $0x10] ss:$2 sm:$0xff] %v4740_v2  ;;  %v403_v35 = vld [vmem:[%s4725_s9 + $0x18] sm:$0xf]  ;;  %s4547_s11 = smov 124   ;;  %s4548_s17 = smov 123  }
  0x34   : > { %210 = vst [vmem:[#allocation1] ss:$2 sm:$0xff] %v4743_v3  ;;  %v458_v46 = vld [vmem:[%s4725_s9 + $0x18] sm:$0xf]  ;;  %s4549_s20 = smov 122   ;;  %vm270_vm0 = vcmask 1039360  }
  0x35   : > { %v514_v53 = vld [vmem:[%s4725_s9 + $0x18] sm:$0xf]  ;;  %s4550_s21 = smov 121   ;;  %s4551_s22 = smov 98   ;;  %vm325_vm1 = vcmask 1031168   ;;  %vm381_vm2 = vcmask 1022976  }
  0x36   : > { %v569_v61 = vld [vmem:[%s4725_s9 + $0x18] sm:$0xf]  ;;  %s4552_s24 = smov 97   ;;  %s4553_s25 = smov 96   ;;  %vm436_vm3 = vcmask 1014784   ;;  %vm492_vm4 = vcmask 1006592  }
  0x37   : > { %s4554_s27 = smov 95   ;;  %s4555_s28 = smov 94   ;;  %vm547_vm5 = vcmask 998400   ;;  %vm603_vm6 = vcmask 990208   ;;  %vm658_vm7 = vcmask 801792   ;;  %vm714_vm8 = vcmask 793600  }
  0x38   : > { %v255_v4 = vld.sshfl [vmem:[#allocation1 + $0x30] sm:$0xff pattern:$0x75316420]  ;;  %s4556_s5 = smov 93   ;;  %s4557_s6 = smov 92   ;;  %vm769_vm9 = vcmask 785408  }
  0x39   : > { %268 = vrot.lane.b32.xlu0 %v255_v4, %s4544_s18  ;;  %v219_v5 = vld.sshfl [vmem:[#allocation1 + $0x20] sm:$0xff pattern:$0x75316420]  ;;  %v220_v6 = vld.sshfl [vmem:[#allocation1 + $0x28] sm:$0xff pattern:$0x75316420] }
  0x3a   : > { %246 = vst [vmem:[#allocation1 + $0x21] ss:$2 sm:$0xff] %v4737_v1  ;;  %v217_v7 = vld.sshfl [vmem:[#allocation1 + $0x10] sm:$0xff pattern:$0x75316420]  ;;  %s4558_s7 = smov 91  }
  0x3b   : > { %231 = vst [vmem:[#allocation2 + $0x450] sm:$0xf] %v219_v5  ;;  %v218_v8 = vld.sshfl [vmem:[#allocation1 + $0x18] sm:$0xff pattern:$0x75316420]  ;;  %s4559_s8 = smov 68  }
  0x3c   : > { %232 = vst [vmem:[#allocation2 + $0x328] sm:$0xf] %v220_v6  ;;  %v215_v9 = vld.sshfl [vmem:[#allocation1] sm:$0xff pattern:$0x75316420]  ;;  %vm825_vm10 = vcmask 777216  }
  0x3d   : > { %244 = vst [vmem:[#allocation1 + $0x11] ss:$2 sm:$0xff] %v4740_v2  ;;  %v216_v10 = vld.sshfl [vmem:[#allocation1 + $0x8] sm:$0xff pattern:$0x75316420]  ;;  %vm880_vm11 = vcmask 769024  }
  0x3e   : > { %229 = vst [vmem:[#allocation2 + $0x4d8] sm:$0xf] %v217_v7  ;;  %vm936_vm12 = vcmask 760832   ;;  %vm991_vm13 = vcmask 752640   ;;  %vm1047_vm14 = vcmask 744448   ;;  %vm1102_vm15 = vcmask 556032  }
  0x3f   : > { %230 = vst [vmem:[#allocation2 + $0x18] sm:$0xf] %v218_v8 }
  0x40   : > { %242 = vst [vmem:[#allocation1 + $0x1] ss:$2 sm:$0xff] %v4743_v3 }
  0x41   : > { %v253_v12 = vld.sshfl [vmem:[#allocation1 + $0x20] sm:$0xff pattern:$0x75316420]  ;;  %227 = vst [vmem:[#allocation2 + $0x2b0] sm:$0xf] %v215_v9 }
  0x42   : > { %264 = vrot.lane.b32.xlu2 %v253_v12, %s4544_s18  ;;  %228 = vst [vmem:[#allocation2 + $0x3b0] sm:$0xf] %v216_v10  ;;  %v254_v15 = vld.sshfl [vmem:[#allocation1 + $0x28] sm:$0xff pattern:$0x75316420] }
  0x43   : > { %303 = vst [vmem:[#allocation1 + $0x30] ss:$2 sm:$0xff] %v292_v11 }
  0x44   : > { %v251_v13 = vld.sshfl [vmem:[#allocation1 + $0x10] sm:$0xff pattern:$0x75316420]  ;;  %v252_v14 = vld.sshfl [vmem:[#allocation1 + $0x18] sm:$0xff pattern:$0x75316420] }
  0x45   : > { %260 = vrot.lane.b32.xlu1 %v251_v13, %s4544_s18  ;;  %299 = vst [vmem:[#allocation1 + $0x10] ss:$2 sm:$0xff] %v4740_v2 }
  0x46   : > { %301 = vst [vmem:[#allocation1 + $0x20] ss:$2 sm:$0xff] %v4737_v1 }
  0x47   : > { %v249_v16 = vld.sshfl [vmem:[#allocation1] sm:$0xff pattern:$0x75316420]  ;;  %v250_v17 = vld.sshfl [vmem:[#allocation1 + $0x8] sm:$0xff pattern:$0x75316420] }
  0x48   : > { %256 = vrot.lane.b32.xlu0 %v249_v16, %s4544_s18  ;;  %297 = vst [vmem:[#allocation1] ss:$2 sm:$0xff] %v4743_v3 }
  0x4a   : > { %266 = vrot.lane.b32.xlu2 %v254_v15, %s4544_s18  ;;  %v310_v25 = vld.sshfl [vmem:[#allocation1 + $0x30] sm:$0xff pattern:$0x75316420]  ;;  %v625_v15 = vld [vmem:[%s4725_s9 + $0x18] sm:$0xf] }
  0x4b   : > { %359 = vst [vmem:[#allocation1 + $0x31] ss:$2 sm:$0xff] %v347_v24 }
  0x4c   : > { %v307_v18 = vld.sshfl [vmem:[#allocation1 + $0x18] sm:$0xff pattern:$0x75316420]  ;;  %v306_v19 = vld.sshfl [vmem:[#allocation1 + $0x10] sm:$0xff pattern:$0x75316420] }
  0x4d   : > { %262 = vrot.lane.b32.xlu1 %v252_v14, %s4544_s18  ;;  %v309_v20 = vld.sshfl [vmem:[#allocation1 + $0x28] sm:$0xff pattern:$0x75316420]  ;;  %v308_v21 = vld.sshfl [vmem:[#allocation1 + $0x20] sm:$0xff pattern:$0x75316420] }
  0x4e   : > { %355 = vst [vmem:[#allocation1 + $0x11] ss:$2 sm:$0xff] %v4740_v2 }
  0x4f   : > { %v305_v22 = vld.sshfl [vmem:[#allocation1 + $0x8] sm:$0xff pattern:$0x75316420]  ;;  %v304_v23 = vld.sshfl [vmem:[#allocation1] sm:$0xff pattern:$0x75316420] }
  0x50   : > { %258 = vrot.lane.b32.xlu0 %v250_v17, %s4544_s18  ;;  %353 = vst [vmem:[#allocation1 + $0x1] ss:$2 sm:$0xff] %v4743_v3  ;;  %s4560_s18 = smov 67  }
  0x51   : > { %357 = vst [vmem:[#allocation1 + $0x21] ss:$2 sm:$0xff] %v4737_v1 }
  0x52   : > { %313 = vrot.lane.b32.xlu2 %v305_v22, %s4545_s23  ;;  %v366_v34 = vld.sshfl [vmem:[#allocation1 + $0x30] sm:$0xff pattern:$0x75316420] }
  0x53   : > { %414 = vst [vmem:[#allocation1 + $0x30] ss:$2 sm:$0xff] %v403_v35 }
  0x55   : > { %323 = vrot.lane.b32.xlu1 %v310_v25, %s4545_s23  ;;  %v362_v26 = vld.sshfl [vmem:[#allocation1 + $0x10] sm:$0xff pattern:$0x75316420]  ;;  %v363_v27 = vld.sshfl [vmem:[#allocation1 + $0x18] sm:$0xff pattern:$0x75316420] }
  0x56   : > { %410 = vst [vmem:[#allocation1 + $0x10] ss:$2 sm:$0xff] %v4740_v2 }
  0x57   : > { %v361_v28 = vld.sshfl [vmem:[#allocation1 + $0x8] sm:$0xff pattern:$0x75316420]  ;;  %v360_v29 = vld.sshfl [vmem:[#allocation1] sm:$0xff pattern:$0x75316420] }
  0x58   : > { %315 = vrot.lane.b32.xlu0 %v306_v19, %s4545_s23  ;;  %v364_v30 = vld.sshfl [vmem:[#allocation1 + $0x20] sm:$0xff pattern:$0x75316420]  ;;  %v365_v31 = vld.sshfl [vmem:[#allocation1 + $0x28] sm:$0xff pattern:$0x75316420] }
  0x59   : > { %408 = vst [vmem:[#allocation1] ss:$2 sm:$0xff] %v4743_v3 }
  0x5a   : > { %319 = vrot.lane.b32.xlu2 %v308_v21, %s4545_s23  ;;  %412 = vst [vmem:[#allocation1 + $0x20] ss:$2 sm:$0xff] %v4737_v1  ;;  %v421_v42 = vld.sshfl [vmem:[#allocation1 + $0x30] sm:$0xff pattern:$0x75316420] }
  0x5b   : > { %470 = vst [vmem:[#allocation1 + $0x31] ss:$2 sm:$0xff] %v458_v46  ;;  %v736_v46 = vld [vmem:[%s4725_s9 + $0x18] sm:$0xf] }
  0x5d   : > { %311 = vrot.lane.b32.xlu1 %v304_v23, %s4545_s23  ;;  %v417_v32 = vld.sshfl [vmem:[#allocation1 + $0x10] sm:$0xff pattern:$0x75316420]  ;;  %v418_v33 = vld.sshfl [vmem:[#allocation1 + $0x18] sm:$0xff pattern:$0x75316420] }
  0x5e   : > { %466 = vst [vmem:[#allocation1 + $0x11] ss:$2 sm:$0xff] %v4740_v2 }
  0x60   : > { %321 = vrot.lane.b32.xlu0 %v309_v20, %s4545_s23  ;;  %v415_v36 = vld.sshfl [vmem:[#allocation1] sm:$0xff pattern:$0x75316420]  ;;  %v416_v37 = vld.sshfl [vmem:[#allocation1 + $0x8] sm:$0xff pattern:$0x75316420] }
  0x61   : > { %v420_v38 = vld.sshfl [vmem:[#allocation1 + $0x28] sm:$0xff pattern:$0x75316420]  ;;  %v419_v39 = vld.sshfl [vmem:[#allocation1 + $0x20] sm:$0xff pattern:$0x75316420] }
  0x62   : > { %367 = vrot.lane.b32.xlu2 %v360_v29, %s4546_s10  ;;  %464 = vst [vmem:[#allocation1 + $0x1] ss:$2 sm:$0xff] %v4743_v3  ;;  %v477_v50 = vld.sshfl [vmem:[#allocation1 + $0x30] sm:$0xff pattern:$0x75316420] }
  0x63   : > { %468 = vst [vmem:[#allocation1 + $0x21] ss:$2 sm:$0xff] %v4737_v1 }
  0x64   : > { %525 = vst [vmem:[#allocation1 + $0x30] ss:$2 sm:$0xff] %v514_v53 }
  0x65   : > { %317 = vrot.lane.b32.xlu1 %v307_v18, %s4545_s23  ;;  %v473_v43 = vld.sshfl [vmem:[#allocation1 + $0x10] sm:$0xff pattern:$0x75316420]  ;;  %v474_v45 = vld.sshfl [vmem:[#allocation1 + $0x18] sm:$0xff pattern:$0x75316420] }
  0x66   : > { %521 = vst [vmem:[#allocation1 + $0x10] ss:$2 sm:$0xff] %v4740_v2  ;;  %s4561_s23 = smov 66  }
  0x68   : > { %369 = vrot.lane.b32.xlu0 %v361_v28, %s4546_s10 }
  0x69   : > { %v472_v40 = vld.sshfl [vmem:[#allocation1 + $0x8] sm:$0xff pattern:$0x75316420]  ;;  %v471_v41 = vld.sshfl [vmem:[#allocation1] sm:$0xff pattern:$0x75316420] }
  0x6a   : > { %373 = vrot.lane.b32.xlu2 %v363_v27, %s4546_s10  ;;  %519 = vst [vmem:[#allocation1] ss:$2 sm:$0xff] %v4743_v3  ;;  %v476_v44 = vld.sshfl [vmem:[#allocation1 + $0x28] sm:$0xff pattern:$0x75316420] }
  0x6b   : > { %v475_v47 = vld.sshfl [vmem:[#allocation1 + $0x20] sm:$0xff pattern:$0x75316420]  ;;  %v532_v60 = vld.sshfl [vmem:[#allocation1 + $0x30] sm:$0xff pattern:$0x75316420] }
  0x6c   : > { %523 = vst [vmem:[#allocation1 + $0x20] ss:$2 sm:$0xff] %v4737_v1 }
  0x6d   : > { %371 = vrot.lane.b32.xlu1 %v362_v26, %s4546_s10  ;;  %v528_v51 = vld.sshfl [vmem:[#allocation1 + $0x10] sm:$0xff pattern:$0x75316420]  ;;  %v529_v54 = vld.sshfl [vmem:[#allocation1 + $0x18] sm:$0xff pattern:$0x75316420] }
  0x6e   : > { %577 = vst [vmem:[#allocation1 + $0x11] ss:$2 sm:$0xff] %v4740_v2  ;;  %v680_v26 = vld [vmem:[%s4725_s9 + $0x18] sm:$0xf] }
  0x6f   : > { %581 = vst [vmem:[#allocation1 + $0x31] ss:$2 sm:$0xff] %v569_v61 }
  0x70   : > { %375 = vrot.lane.b32.xlu0 %v364_v30, %s4546_s10 }
  0x71   : > { %v527_v48 = vld.sshfl [vmem:[#allocation1 + $0x8] sm:$0xff pattern:$0x75316420]  ;;  %v526_v49 = vld.sshfl [vmem:[#allocation1] sm:$0xff pattern:$0x75316420] }
  0x72   : > { %379 = vrot.lane.b32.xlu2 %v366_v34, %s4546_s10  ;;  %575 = vst [vmem:[#allocation1 + $0x1] ss:$2 sm:$0xff] %v4743_v3 }
  0x73   : > { %v530_v52 = vld.sshfl [vmem:[#allocation1 + $0x20] sm:$0xff pattern:$0x75316420]  ;;  %v531_v55 = vld.sshfl [vmem:[#allocation1 + $0x28] sm:$0xff pattern:$0x75316420] }
  0x74   : > { %579 = vst [vmem:[#allocation1 + $0x21] ss:$2 sm:$0xff] %v4737_v1 }
  0x75   : > { %377 = vrot.lane.b32.xlu1 %v365_v31, %s4546_s10  ;;  %v584_v58 = vld.sshfl [vmem:[#allocation1 + $0x10] sm:$0xff pattern:$0x75316420]  ;;  %v585_v59 = vld.sshfl [vmem:[#allocation1 + $0x18] sm:$0xff pattern:$0x75316420] }
  0x76   : > { %632 = vst [vmem:[#allocation1 + $0x10] ss:$2 sm:$0xff] %v4740_v2  ;;  %v588_v11 = vld.sshfl [vmem:[#allocation1 + $0x30] sm:$0xff pattern:$0x75316420]  ;;  %s4562_s10 = smov 65  }
  0x77   : > { %636 = vst [vmem:[#allocation1 + $0x30] ss:$2 sm:$0xff] %v625_v15 }
  0x78   : > { %422 = vrot.lane.b32.xlu0 %v415_v36, %s4547_s11 }
  0x79   : > { %v582_v56 = vld.sshfl [vmem:[#allocation1] sm:$0xff pattern:$0x75316420]  ;;  %v583_v57 = vld.sshfl [vmem:[#allocation1 + $0x8] sm:$0xff pattern:$0x75316420] }
  0x7a   : > { %426 = vrot.lane.b32.xlu2 %v417_v32, %s4547_s11  ;;  %630 = vst [vmem:[#allocation1] ss:$2 sm:$0xff] %v4743_v3 }
  0x7b   : > { %v587_v62 = vld.sshfl [vmem:[#allocation1 + $0x28] sm:$0xff pattern:$0x75316420]  ;;  %v586_v63 = vld.sshfl [vmem:[#allocation1 + $0x20] sm:$0xff pattern:$0x75316420] }
  0x7c   : > { %634 = vst [vmem:[#allocation1 + $0x20] ss:$2 sm:$0xff] %v4737_v1 }
  0x7d   : > { %424 = vrot.lane.b32.xlu1 %v416_v37, %s4547_s11  ;;  %v639_v12 = vld.sshfl [vmem:[#allocation1 + $0x10] sm:$0xff pattern:$0x75316420]  ;;  %v640_v14 = vld.sshfl [vmem:[#allocation1 + $0x18] sm:$0xff pattern:$0x75316420] }
  0x7e   : > { %688 = vst [vmem:[#allocation1 + $0x11] ss:$2 sm:$0xff] %v4740_v2  ;;  %v643_v28 = vld.sshfl [vmem:[#allocation1 + $0x30] sm:$0xff pattern:$0x75316420] }
  0x7f   : > { %692 = vst [vmem:[#allocation1 + $0x31] ss:$2 sm:$0xff] %v680_v26 }
  0x80   : > { %428 = vrot.lane.b32.xlu0 %v418_v33, %s4547_s11 }
  0x81   : > { %v638_v6 = vld.sshfl [vmem:[#allocation1 + $0x8] sm:$0xff pattern:$0x75316420]  ;;  %v637_v7 = vld.sshfl [vmem:[#allocation1] sm:$0xff pattern:$0x75316420] }
  0x82   : > { %432 = vrot.lane.b32.xlu2 %v420_v38, %s4547_s11  ;;  %686 = vst [vmem:[#allocation1 + $0x1] ss:$2 sm:$0xff] %v4743_v3 }
  0x83   : > { %v642_v13 = vld.sshfl [vmem:[#allocation1 + $0x28] sm:$0xff pattern:$0x75316420]  ;;  %v641_v16 = vld.sshfl [vmem:[#allocation1 + $0x20] sm:$0xff pattern:$0x75316420] }
  0x84   : > { %690 = vst [vmem:[#allocation1 + $0x21] ss:$2 sm:$0xff] %v4737_v1 }
  0x85   : > { %430 = vrot.lane.b32.xlu1 %v419_v39, %s4547_s11  ;;  %v695_v31 = vld.sshfl [vmem:[#allocation1 + $0x10] sm:$0xff pattern:$0x75316420]  ;;  %v696_v34 = vld.sshfl [vmem:[#allocation1 + $0x18] sm:$0xff pattern:$0x75316420] }
  0x86   : > { %743 = vst [vmem:[#allocation1 + $0x10] ss:$2 sm:$0xff] %v4740_v2 }
  0x88   : > { %434 = vrot.lane.b32.xlu0 %v421_v42, %s4547_s11  ;;  %s4563_s11 = smov 64  }
  0x89   : > { %v4802_v19 = vld.sshfl [vmem:[#allocation1 + $0x8] sm:$0xff pattern:$0x75316420]  ;;  %v693_v20 = vld.sshfl [vmem:[#allocation1] sm:$0xff pattern:$0x75316420] }
  0x8a   : > { %480 = vrot.lane.b32.xlu2 %v472_v40, %s4548_s17  ;;  %741 = vst [vmem:[#allocation1] ss:$2 sm:$0xff] %v4743_v3 }
  0x8b   : > { %v697_v33 = vld.sshfl [vmem:[#allocation1 + $0x20] sm:$0xff pattern:$0x75316420]  ;;  %v4816_v35 = vld.sshfl [vmem:[#allocation1 + $0x28] sm:$0xff pattern:$0x75316420] }
  0x8c   : > { %745 = vst [vmem:[#allocation1 + $0x20] ss:$2 sm:$0xff] %v4737_v1 }
  0x8d   : > { %478 = vrot.lane.b32.xlu1 %v471_v41, %s4548_s17  ;;  %v750_v42 = vld.sshfl [vmem:[#allocation1 + $0x10] sm:$0xff pattern:$0x75316420] }
  0x90   : > { %482 = vrot.lane.b32.xlu0 %v473_v43, %s4548_s17  ;;  %v4828_v43 = vld.sshfl [vmem:[#allocation1 + $0x18] sm:$0xff pattern:$0x75316420] }
  0x91   : > { %v748_v38 = vld.sshfl [vmem:[#allocation1] sm:$0xff pattern:$0x75316420]  ;;  %v4822_v39 = vld.sshfl [vmem:[#allocation1 + $0x8] sm:$0xff pattern:$0x75316420] }
  0x92   : > { %486 = vrot.lane.b32.xlu2 %v475_v47, %s4548_s17  ;;  %797 = vst [vmem:[#allocation1 + $0x1] ss:$2 sm:$0xff] %v4743_v3  ;;  %v699_v47 = vld.sshfl [vmem:[#allocation1 + $0x30] sm:$0xff pattern:$0x75316420] }
  0x93   : > { %799 = vst [vmem:[#allocation1 + $0x11] ss:$2 sm:$0xff] %v4740_v2  ;;  %v4842_v53 = vld.sshfl [vmem:[#allocation1 + $0x20] sm:$0xff pattern:$0x75316420] }
  0x94   : > { %747 = vst [vmem:[#allocation1 + $0x30] ss:$2 sm:$0xff] %v736_v46 }
  0x95   : > { %484 = vrot.lane.b32.xlu1 %v474_v45, %s4548_s17 }
  0x98   : > { %488 = vrot.lane.b32.xlu0 %v476_v44, %s4548_s17 }
  0x9a   : > { %533 = vrot.lane.b32.xlu2 %v526_v49, %s4549_s20  ;;  %v807_v15 = vld.sshfl [vmem:[#allocation1 + $0x18] sm:$0xff pattern:$0x75316420] }
  0x9c   : > { %v265_v0 = vpop.permute.xlu2 %264 }
  0x9d   : > { %490 = vrot.lane.b32.xlu1 %v477_v50, %s4548_s17  ;;  %s4564_s17 = smov 63  }
  0xa0   : > { %535 = vrot.lane.b32.xlu0 %v527_v48, %s4549_s20 }
  0xa2   : > { %539 = vrot.lane.b32.xlu2 %v529_v54, %s4549_s20 }
  0xa4   : > { %v267_v4 = vpop.permute.xlu2 %266 }
  0xa5   : > { %537 = vrot.lane.b32.xlu1 %v528_v51, %s4549_s20  ;;  %v275_v5 = vsel %vm270_vm0, %v265_v0, %v267_v4 }
  0xa6   : > { %287 = vst [vmem:[#allocation2 + $0x450] sm:$0xf0] %v275_v5 }
  0xa8   : > { %541 = vrot.lane.b32.xlu0 %v530_v52, %s4549_s20  ;;  %v753_v52 = vld.sshfl [vmem:[#allocation1 + $0x28] sm:$0xff pattern:$0x75316420] }
  0xa9   : > { %801 = vst [vmem:[#allocation1 + $0x21] ss:$2 sm:$0xff] %v4737_v1 }
  0xaa   : > { %545 = vrot.lane.b32.xlu2 %v532_v60, %s4549_s20 }
  0xab   : > { %v269_v8 = vpop.permute.xlu0 %268 }
  0xac   : > { %v276_v9 = vsel %vm270_vm0, %v267_v4, %v269_v8  ;;  %v4795_v10 = vpop.permute.xlu2 %313  ;;  %v804_v4 = vld.sshfl [vmem:[#allocation1] sm:$0xff pattern:$0x75316420] }
  0xad   : > { %543 = vrot.lane.b32.xlu1 %v531_v55, %s4549_s20  ;;  %288 = vst [vmem:[#allocation2 + $0x328] sm:$0xf0] %v276_v9  ;;  %s4565_s20 = smov 62  }
  0xb0   : > { %589 = vrot.lane.b32.xlu0 %v582_v56, %s4550_s21 }
  0xb2   : > { %593 = vrot.lane.b32.xlu2 %v584_v58, %s4550_s21 }
  0xb4   : > { %v4800_v17 = vpop.permute.xlu2 %319 }
  0xb5   : > { %591 = vrot.lane.b32.xlu1 %v583_v57, %s4550_s21 }
  0xb7   : > { %v261_v18 = vpop.permute.xlu1 %260 }
  0xb8   : > { %595 = vrot.lane.b32.xlu0 %v585_v59, %s4550_s21 }
  0xba   : > { %v257_v21 = vpop.permute.xlu0 %256  ;;  %599 = vrot.lane.b32.xlu2 %v587_v62, %s4550_s21 }
  0xbc   : > { %v4805_v22 = vpop.permute.xlu2 %367 }
  0xbd   : > { %597 = vrot.lane.b32.xlu1 %v586_v63, %s4550_s21  ;;  %v805_v63 = vld.sshfl [vmem:[#allocation1 + $0x8] sm:$0xff pattern:$0x75316420] }
  0xbe   : > { %852 = vst [vmem:[#allocation1] ss:$2 sm:$0xff] %v4743_v3 }
  0xbf   : > { %v263_v23 = vpop.permute.xlu1 %262 }
  0xc0   : > { %601 = vrot.lane.b32.xlu0 %v588_v11, %s4550_s21  ;;  %v273_v24 = vsel %vm270_vm0, %v261_v18, %v263_v23  ;;  %v274_v25 = vsel %vm270_vm0, %v263_v23, %v265_v0  ;;  %v806_v11 = vld.sshfl [vmem:[#allocation1 + $0x10] sm:$0xff pattern:$0x75316420]  ;;  %s4566_s21 = smov 61  }
  0xc1   : > { %285 = vst [vmem:[#allocation2 + $0x4d8] sm:$0xf0] %v273_v24 }
  0xc2   : > { %286 = vst [vmem:[#allocation2 + $0x18] sm:$0xf0] %v274_v25  ;;  %v259_v27 = vpop.permute.xlu0 %258  ;;  %646 = vrot.lane.b32.xlu2 %v638_v6, %s4551_s22 }
  0xc3   : > { %v271_v29 = vsel %vm270_vm0, %v257_v21, %v259_v27  ;;  %v272_v30 = vsel %vm270_vm0, %v259_v27, %v261_v18  ;;  %854 = vst [vmem:[#allocation1 + $0x10] ss:$2 sm:$0xff] %v4740_v2  ;;  %vm1158_vm0 = vcmask 547840  }
  0xc4   : > { %283 = vst [vmem:[#allocation2 + $0x2b0] sm:$0xf0] %v271_v29  ;;  %v4813_v32 = vpop.permute.xlu2 %373  ;;  %v847_v29 = vld [vmem:[%s4725_s9 + $0x18] sm:$0xf] }
  0xc5   : > { %284 = vst [vmem:[#allocation2 + $0x3b0] sm:$0xf0] %v272_v30  ;;  %644 = vrot.lane.b32.xlu1 %v637_v7, %s4551_s22  ;;  %v4886_v21 = vld.sshfl [vmem:[#allocation1 + $0x8] sm:$0xff pattern:$0x75316420] }
  0xc6   : > { %v859_v23 = vld.sshfl [vmem:[#allocation1] sm:$0xff pattern:$0x75316420] }
  0xc7   : > { %v324_v36 = vpop.permute.xlu1 %323  ;;  %908 = vst [vmem:[#allocation1 + $0x1] ss:$2 sm:$0xff] %v4743_v3 }
  0xc8   : > { %648 = vrot.lane.b32.xlu0 %v639_v12, %s4551_s22  ;;  %v791_v12 = vld [vmem:[%s4725_s9 + $0x18] sm:$0xf] }
  0xca   : > { %v316_v37 = vpop.permute.xlu0 %315  ;;  %652 = vrot.lane.b32.xlu2 %v641_v16, %s4551_s22 }
  0xcb   : > { %v327_v40 = vsel %vm325_vm1, %v4795_v10, %v316_v37 }
  0xcc   : > { %339 = vst [vmem:[#allocation2 + $0x378] sm:$0xf] %v327_v40  ;;  %v380_v41 = vpop.permute.xlu2 %379 }
  0xcd   : > { %650 = vrot.lane.b32.xlu1 %v640_v14, %s4551_s22  ;;  %v4873_v14 = vld.sshfl [vmem:[#allocation1 + $0x28] sm:$0xff pattern:$0x75316420] }
  0xcf   : > { %v312_v44 = vpop.permute.xlu1 %311 }
  0xd0   : > { %654 = vrot.lane.b32.xlu0 %v642_v13, %s4551_s22  ;;  %v326_v45 = vsel %vm325_vm1, %v312_v44, %v4795_v10  ;;  %v754_v10 = vld.sshfl [vmem:[#allocation1 + $0x30] sm:$0xff pattern:$0x75316420] }
  0xd1   : > { %338 = vst [vmem:[#allocation2 + $0x440] sm:$0xf] %v326_v45 }
  0xd2   : > { %v322_v48 = vpop.permute.xlu0 %321  ;;  %700 = vrot.lane.b32.xlu2 %v693_v20, %s4552_s24  ;;  %803 = vst [vmem:[#allocation1 + $0x31] ss:$2 sm:$0xff] %v791_v12  ;;  %v958_v12 = vld [vmem:[%s4725_s9 + $0x18] sm:$0xf] }
  0xd3   : > { %v330_v49 = vsel %vm325_vm1, %v4800_v17, %v322_v48  ;;  %v331_v50 = vsel %vm325_vm1, %v322_v48, %v324_v36  ;;  %v862_v36 = vld.sshfl [vmem:[#allocation1 + $0x18] sm:$0xff pattern:$0x75316420] }
  0xd4   : > { %342 = vst [vmem:[#allocation2 + $0x490] sm:$0xf] %v330_v49  ;;  %v4839_v51 = vpop.permute.xlu2 %426 }
  0xd5   : > { %343 = vst [vmem:[#allocation2 + $0x318] sm:$0xf] %v331_v50  ;;  %656 = vrot.lane.b32.xlu1 %v643_v28, %s4551_s22  ;;  %v902_v50 = vld [vmem:[%s4725_s9 + $0x18] sm:$0xf]  ;;  %s4567_s22 = smov 38  }
  0xd7   : > { %v318_v54 = vpop.permute.xlu1 %317 }
  0xd8   : > { %702 = vrot.lane.b32.xlu0 %v4802_v19, %s4552_s24  ;;  %v328_v55 = vsel %vm325_vm1, %v316_v37, %v318_v54  ;;  %v329_v56 = vsel %vm325_vm1, %v318_v54, %v4800_v17  ;;  %v808_v17 = vld.sshfl [vmem:[#allocation1 + $0x20] sm:$0xff pattern:$0x75316420]  ;;  %vm1213_vm1 = vcmask 539648  }
  0xd9   : > { %340 = vst [vmem:[#allocation2 + $0x108] sm:$0xf] %v328_v55  ;;  %v810_v30 = vld.sshfl [vmem:[#allocation1 + $0x30] sm:$0xff pattern:$0x75316420] }
  0xda   : > { %341 = vst [vmem:[#allocation2 + $0x510] sm:$0xf] %v329_v56  ;;  %v370_v57 = vpop.permute.xlu0 %369  ;;  %706 = vrot.lane.b32.xlu2 %v696_v34, %s4552_s24 }
  0xdb   : > { %v382_v58 = vsel %vm381_vm2, %v4805_v22, %v370_v57  ;;  %856 = vst [vmem:[#allocation1 + $0x20] ss:$2 sm:$0xff] %v4737_v1 }
  0xdc   : > { %394 = vst [vmem:[#allocation2 + $0x440] sm:$0xf0] %v382_v58  ;;  %v4853_v59 = vpop.permute.xlu2 %432 }
  0xdd   : > { %704 = vrot.lane.b32.xlu1 %v695_v31, %s4552_s24  ;;  %858 = vst [vmem:[#allocation1 + $0x30] ss:$2 sm:$0xff] %v847_v29 }
  0xdf   : > { %v372_v60 = vpop.permute.xlu1 %371 }
  0xe0   : > { %708 = vrot.lane.b32.xlu0 %v697_v33, %s4552_s24  ;;  %v383_v61 = vsel %vm381_vm2, %v370_v57, %v372_v60  ;;  %v384_v62 = vsel %vm381_vm2, %v372_v60, %v4813_v32 }
  0xe1   : > { %395 = vst [vmem:[#allocation2 + $0x378] sm:$0xf0] %v383_v61 }
  0xe2   : > { %396 = vst [vmem:[#allocation2 + $0x108] sm:$0xf0] %v384_v62  ;;  %v376_v0 = vpop.permute.xlu0 %375  ;;  %712 = vrot.lane.b32.xlu2 %v699_v47, %s4552_s24  ;;  %v863_v34 = vld.sshfl [vmem:[#allocation1 + $0x20] sm:$0xff pattern:$0x75316420] }
  0xe3   : > { %v385_v5 = vsel %vm381_vm2, %v4813_v32, %v376_v0  ;;  %v861_v32 = vld.sshfl [vmem:[#allocation1 + $0x10] sm:$0xff pattern:$0x75316420]  ;;  %v864_v37 = vld.sshfl [vmem:[#allocation1 + $0x28] sm:$0xff pattern:$0x75316420] }
  0xe4   : > { %397 = vst [vmem:[#allocation2 + $0x510] sm:$0xf0] %v385_v5  ;;  %v4864_v6 = vpop.permute.xlu2 %480 }
  0xe5   : > { %710 = vrot.lane.b32.xlu1 %v4816_v35, %s4552_s24  ;;  %910 = vst [vmem:[#allocation1 + $0x11] ss:$2 sm:$0xff] %v4740_v2  ;;  %s4568_s24 = smov 37  }
  0xe6   : > { %912 = vst [vmem:[#allocation1 + $0x21] ss:$2 sm:$0xff] %v4737_v1 }
  0xe7   : > { %v378_v7 = vpop.permute.xlu1 %377 }
  0xe8   : > { %755 = vrot.lane.b32.xlu0 %v748_v38, %s4553_s25  ;;  %v386_v8 = vsel %vm381_vm2, %v376_v0, %v378_v7  ;;  %v387_v9 = vsel %vm381_vm2, %v378_v7, %v380_v41  ;;  %v915_v41 = vld.sshfl [vmem:[#allocation1] sm:$0xff pattern:$0x75316420]  ;;  %vm1269_vm2 = vcmask 531456  }
  0xe9   : > { %398 = vst [vmem:[#allocation2 + $0x490] sm:$0xf0] %v386_v8 }
  0xea   : > { %399 = vst [vmem:[#allocation2 + $0x318] sm:$0xf0] %v387_v9  ;;  %v423_v13 = vpop.permute.xlu0 %422  ;;  %759 = vrot.lane.b32.xlu2 %v750_v42, %s4553_s25  ;;  %v4913_v42 = vld.sshfl [vmem:[#allocation1 + $0x8] sm:$0xff pattern:$0x75316420] }
  0xeb   : > { %963 = vst [vmem:[#allocation1] ss:$2 sm:$0xff] %v4743_v3 }
  0xec   : > { %v4875_v16 = vpop.permute.xlu2 %486  ;;  %v917_v45 = vld.sshfl [vmem:[#allocation1 + $0x10] sm:$0xff pattern:$0x75316420]  ;;  %v4919_v46 = vld.sshfl [vmem:[#allocation1 + $0x18] sm:$0xff pattern:$0x75316420] }
  0xed   : > { %757 = vrot.lane.b32.xlu1 %v4822_v39, %s4553_s25  ;;  %965 = vst [vmem:[#allocation1 + $0x10] ss:$2 sm:$0xff] %v4740_v2  ;;  %v920_v55 = vld.sshfl [vmem:[#allocation1 + $0x28] sm:$0xff pattern:$0x75316420] }
  0xee   : > { %v919_v56 = vld.sshfl [vmem:[#allocation1 + $0x20] sm:$0xff pattern:$0x75316420] }
  0xef   : > { %v425_v18 = vpop.permute.xlu1 %424  ;;  %967 = vst [vmem:[#allocation1 + $0x20] ss:$2 sm:$0xff] %v4737_v1 }
  0xf0   : > { %761 = vrot.lane.b32.xlu0 %v4828_v43, %s4553_s25  ;;  %v437_v19 = vsel %vm436_vm3, %v423_v13, %v425_v18  ;;  %v438_v20 = vsel %vm436_vm3, %v425_v18, %v4839_v51 }
  0xf1   : > { %449 = vst [vmem:[#allocation2 + $0x548] sm:$0xf] %v437_v19  ;;  %v4968_v19 = vld [vmem:[%s4725_s9 + $0x10] sm:$0xff] }
  0xf2   : > { %450 = vst [vmem:[#allocation2 + $0x500] sm:$0xf] %v438_v20  ;;  %v429_v22 = vpop.permute.xlu0 %428  ;;  %765 = vrot.lane.b32.xlu2 %v753_v52, %s4553_s25  ;;  %v865_v52 = vld.sshfl [vmem:[#allocation1 + $0x30] sm:$0xff pattern:$0x75316420] }
  0xf3   : > { %v439_v24 = vsel %vm436_vm3, %v4839_v51, %v429_v22  ;;  %914 = vst [vmem:[#allocation1 + $0x31] ss:$2 sm:$0xff] %v902_v50  ;;  %v971_v0 = vld.sshfl [vmem:[#allocation1 + $0x8] sm:$0xff pattern:$0x75316420] }
  0xf4   : > { %451 = vst [vmem:[#allocation2 + $0x58] sm:$0xf] %v439_v24  ;;  %v4892_v25 = vpop.permute.xlu2 %533  ;;  %v970_v5 = vld.sshfl [vmem:[#allocation1] sm:$0xff pattern:$0x75316420] }
  0xf5   : > { %763 = vrot.lane.b32.xlu1 %v4842_v53, %s4553_s25  ;;  %1019 = vst [vmem:[#allocation1 + $0x1] ss:$2 sm:$0xff] %v4743_v3  ;;  %v972_v3 = vld.sshfl [vmem:[#allocation1 + $0x10] sm:$0xff pattern:$0x75316420] }
  0xf6   : > { %v975_v20 = vld.sshfl [vmem:[#allocation1 + $0x28] sm:$0xff pattern:$0x75316420]  ;;  %v1069_v50 = vld [vmem:[%s4725_s9 + $0x18] sm:$0xf] }
  0xf7   : > { %v431_v26 = vpop.permute.xlu1 %430 }
  0xf8   : > { %767 = vrot.lane.b32.xlu0 %v754_v10, %s4553_s25  ;;  %v440_v27 = vsel %vm436_vm3, %v429_v22, %v431_v26  ;;  %v441_v28 = vsel %vm436_vm3, %v431_v26, %v4853_v59  ;;  %s4569_s25 = smov 36  }
  0xf9   : > { %452 = vst [vmem:[#allocation2 + $0x2b8] sm:$0xf] %v440_v27  ;;  %v1013_v27 = vld [vmem:[%s4725_s9 + $0x18] sm:$0xf] }
  0xfa   : > { %453 = vst [vmem:[#allocation2 + $0x580] sm:$0xf] %v441_v28  ;;  %v435_v31 = vpop.permute.xlu0 %434  ;;  %813 = vrot.lane.b32.xlu2 %v805_v63, %s4554_s27 }
  0xfb   : > { %v442_v33 = vsel %vm436_vm3, %v4853_v59, %v435_v31  ;;  %v4983_v31 = vld [vmem:[%s4725_s9] sm:$0xff]  ;;  %vm1324_vm3 = vcmask 523264  }
  0xfc   : > { %454 = vst [vmem:[#allocation2 + $0x590] sm:$0xf] %v442_v33  ;;  %v4904_v35 = vpop.permute.xlu2 %539  ;;  %v1026_v33 = vld.sshfl [vmem:[#allocation1] sm:$0xff pattern:$0x75316420] }
  0xfd   : > { %811 = vrot.lane.b32.xlu1 %v804_v4, %s4554_s27 }
  0xff   : > { %v479_v38 = vpop.permute.xlu1 %478 }
 0x100   : > { %815 = vrot.lane.b32.xlu0 %v806_v11, %s4554_s27  ;;  %v493_v39 = vsel %vm492_vm4, %v479_v38, %v4864_v6  ;;  %v921_v11 = vld.sshfl [vmem:[#allocation1 + $0x30] sm:$0xff pattern:$0x75316420] }
 0x101   : > { %505 = vst [vmem:[#allocation2 + $0x548] sm:$0xf0] %v493_v39 }
 0x102   : > { %v483_v40 = vpop.permute.xlu0 %482  ;;  %819 = vrot.lane.b32.xlu2 %v808_v17, %s4554_s27  ;;  %969 = vst [vmem:[#allocation1 + $0x30] ss:$2 sm:$0xff] %v958_v12 }
 0x103   : > { %v494_v43 = vsel %vm492_vm4, %v4864_v6, %v483_v40 }
 0x104   : > { %506 = vst [vmem:[#allocation2 + $0x500] sm:$0xf0] %v494_v43  ;;  %v546_v44 = vpop.permute.xlu2 %545 }
 0x105   : > { %817 = vrot.lane.b32.xlu1 %v807_v15, %s4554_s27 }
 0x107   : > { %v485_v47 = vpop.permute.xlu1 %484 }
 0x108   : > { %821 = vrot.lane.b32.xlu0 %v4873_v14, %s4554_s27  ;;  %v495_v48 = vsel %vm492_vm4, %v483_v40, %v485_v47  ;;  %v496_v49 = vsel %vm492_vm4, %v485_v47, %v4875_v16  ;;  %v973_v14 = vld.sshfl [vmem:[#allocation1 + $0x18] sm:$0xff pattern:$0x75316420]  ;;  %v4998_v40 = vld [vmem:[%s4725_s9 + $0x8] sm:$0xff] }
 0x109   : > { %507 = vst [vmem:[#allocation2 + $0x58] sm:$0xf0] %v495_v48  ;;  %v976_v29 = vld.sshfl [vmem:[#allocation1 + $0x30] sm:$0xff pattern:$0x75316420] }
 0x10a   : > { %v489_v51 = vpop.permute.xlu0 %488  ;;  %508 = vst [vmem:[#allocation2 + $0x2b8] sm:$0xf0] %v496_v49  ;;  %866 = vrot.lane.b32.xlu2 %v859_v23, %s4555_s28 }
 0x10b   : > { %v497_v53 = vsel %vm492_vm4, %v4875_v16, %v489_v51  ;;  %1021 = vst [vmem:[#allocation1 + $0x11] ss:$2 sm:$0xff] %v4740_v2  ;;  %v974_v2 = vld.sshfl [vmem:[#allocation1 + $0x20] sm:$0xff pattern:$0x75316420] }
 0x10c   : > { %509 = vst [vmem:[#allocation2 + $0x580] sm:$0xf0] %v497_v53  ;;  %v594_v54 = vpop.permute.xlu2 %593 }
 0x10d   : > { %823 = vrot.lane.b32.xlu1 %v810_v30, %s4554_s27  ;;  %1023 = vst [vmem:[#allocation1 + $0x21] ss:$2 sm:$0xff] %v4968_v19  ;;  %v1027_v30 = vld.sshfl [vmem:[#allocation1 + $0x8] sm:$0xff pattern:$0x75316420]  ;;  %s4570_s27 = smov 35  }
 0x10e   : > { %1025 = vst [vmem:[#allocation1 + $0x31] ss:$2 sm:$0xff] %v1013_v27 }
 0x10f   : > { %v491_v57 = vpop.permute.xlu1 %490  ;;  %1074 = vst [vmem:[#allocation1] ss:$2 sm:$0xff] %v4983_v31 }
 0x110   : > { %868 = vrot.lane.b32.xlu0 %v4886_v21, %s4555_s28  ;;  %v498_v58 = vsel %vm492_vm4, %v489_v51, %v491_v57  ;;  %vm1380_vm4 = vcmask 515072  }
 0x111   : > { %510 = vst [vmem:[#allocation2 + $0x590] sm:$0xf0] %v498_v58 }
 0x112   : > { %v536_v59 = vpop.permute.xlu0 %535  ;;  %872 = vrot.lane.b32.xlu2 %v862_v36, %s4555_s28  ;;  %v1028_v39 = vld.sshfl [vmem:[#allocation1 + $0x10] sm:$0xff pattern:$0x75316420] }
 0x113   : > { %v548_v60 = vsel %vm547_vm5, %v4892_v25, %v536_v59 }
 0x114   : > { %560 = vst [vmem:[#allocation2 + $0x540] sm:$0xf] %v548_v60  ;;  %v4939_v61 = vpop.permute.xlu2 %599  ;;  %v4990_v36 = vld.sshfl [vmem:[#allocation1 + $0x28] sm:$0xff pattern:$0x75316420] }
 0x115   : > { %870 = vrot.lane.b32.xlu1 %v861_v32, %s4555_s28  ;;  %v1032_v51 = vld.sshfl [vmem:[#allocation1 + $0x30] sm:$0xff pattern:$0x75316420] }
 0x116   : > { %1080 = vst [vmem:[#allocation1 + $0x30] ss:$2 sm:$0xff] %v1069_v50 }
 0x117   : > { %v538_v1 = vpop.permute.xlu1 %537 }
 0x118   : > { %874 = vrot.lane.b32.xlu0 %v863_v34, %s4555_s28  ;;  %v549_v62 = vsel %vm547_vm5, %v536_v59, %v538_v1  ;;  %v550_v63 = vsel %vm547_vm5, %v538_v1, %v4904_v35 }
 0x119   : > { %561 = vst [vmem:[#allocation2 + $0x3c0] sm:$0xf] %v549_v62 }
 0x11a   : > { %562 = vst [vmem:[#allocation2 + $0x330] sm:$0xf] %v550_v63  ;;  %v542_v4 = vpop.permute.xlu0 %541  ;;  %878 = vrot.lane.b32.xlu2 %v865_v52, %s4555_s28 }
 0x11b   : > { %v551_v6 = vsel %vm547_vm5, %v4904_v35, %v542_v4  ;;  %v1030_v35 = vld.sshfl [vmem:[#allocation1 + $0x20] sm:$0xff pattern:$0x75316420] }
 0x11c   : > { %563 = vst [vmem:[#allocation2 + $0x100] sm:$0xf] %v551_v6  ;;  %v4950_v7 = vpop.permute.xlu2 %646 }
 0x11d   : > { %876 = vrot.lane.b32.xlu1 %v864_v37, %s4555_s28  ;;  %1078 = vst [vmem:[#allocation1 + $0x20] ss:$2 sm:$0xff] %v4968_v19  ;;  %s4571_s28 = smov 34  }
 0x11f   : > { %v544_v8 = vpop.permute.xlu1 %543 }
 0x120   : > { %922 = vrot.lane.b32.xlu0 %v915_v41, %s4556_s5  ;;  %v552_v9 = vsel %vm547_vm5, %v542_v4, %v544_v8  ;;  %v553_v10 = vsel %vm547_vm5, %v544_v8, %v546_v44  ;;  %v1029_v41 = vld.sshfl [vmem:[#allocation1 + $0x18] sm:$0xff pattern:$0x75316420]  ;;  %vm1435_vm5 = vcmask 506880  }
 0x121   : > { %564 = vst [vmem:[#allocation2 + $0x8] sm:$0xf] %v552_v9 }
 0x122   : > { %565 = vst [vmem:[#allocation2 + $0x188] sm:$0xf] %v553_v10  ;;  %v590_v13 = vpop.permute.xlu0 %589  ;;  %926 = vrot.lane.b32.xlu2 %v917_v45, %s4556_s5  ;;  %v1081_v45 = vld.sshfl [vmem:[#allocation1] sm:$0xff pattern:$0x75316420] }
 0x123   : > { %1076 = vst [vmem:[#allocation1 + $0x10] ss:$2 sm:$0xff] %v4998_v40 }
 0x124   : > { %v4958_v15 = vpop.permute.xlu2 %652  ;;  %v1086_v57 = vld.sshfl [vmem:[#allocation1 + $0x28] sm:$0xff pattern:$0x75316420]  ;;  %v5019_v58 = vld.sshfl [vmem:[#allocation1 + $0x20] sm:$0xff pattern:$0x75316420] }
 0x125   : > { %924 = vrot.lane.b32.xlu1 %v4913_v42, %s4556_s5  ;;  %1134 = vst [vmem:[#allocation1 + $0x21] ss:$2 sm:$0xff] %v4968_v19 }
 0x127   : > { %v592_v16 = vpop.permute.xlu1 %591 }
 0x128   : > { %928 = vrot.lane.b32.xlu0 %v4919_v46, %s4556_s5  ;;  %v604_v17 = vsel %vm603_vm6, %v590_v13, %v592_v16  ;;  %v605_v18 = vsel %vm603_vm6, %v592_v16, %v594_v54  ;;  %v5005_v46 = vld.sshfl [vmem:[#allocation1 + $0x8] sm:$0xff pattern:$0x75316420]  ;;  %v1087_v13 = vld.sshfl [vmem:[#allocation1 + $0x30] sm:$0xff pattern:$0x75316420] }
 0x129   : > { %616 = vst [vmem:[#allocation2 + $0x540] sm:$0xf0] %v604_v17 }
 0x12a   : > { %617 = vst [vmem:[#allocation2 + $0x3c0] sm:$0xf0] %v605_v18  ;;  %v596_v21 = vpop.permute.xlu0 %595  ;;  %932 = vrot.lane.b32.xlu2 %v920_v55, %s4556_s5  ;;  %v1083_v53 = vld.sshfl [vmem:[#allocation1 + $0x10] sm:$0xff pattern:$0x75316420] }
 0x12b   : > { %v606_v22 = vsel %vm603_vm6, %v594_v54, %v596_v21  ;;  %1130 = vst [vmem:[#allocation1 + $0x1] ss:$2 sm:$0xff] %v4983_v31  ;;  %v1084_v55 = vld.sshfl [vmem:[#allocation1 + $0x18] sm:$0xff pattern:$0x75316420] }
 0x12c   : > { %618 = vst [vmem:[#allocation2 + $0x330] sm:$0xf0] %v606_v22  ;;  %v4973_v23 = vpop.permute.xlu2 %700  ;;  %v5048_v16 = vld.sshfl [vmem:[#allocation1 + $0x28] sm:$0xff pattern:$0x75316420] }
 0x12d   : > { %930 = vrot.lane.b32.xlu1 %v919_v56, %s4556_s5  ;;  %1132 = vst [vmem:[#allocation1 + $0x11] ss:$2 sm:$0xff] %v4998_v40 }
 0x12f   : > { %v598_v24 = vpop.permute.xlu1 %597 }
 0x130   : > { %934 = vrot.lane.b32.xlu0 %v921_v11, %s4556_s5  ;;  %v607_v25 = vsel %vm603_vm6, %v596_v21, %v598_v24  ;;  %v608_v26 = vsel %vm603_vm6, %v598_v24, %v4939_v61  ;;  %s4572_s5 = smov 33  }
 0x131   : > { %619 = vst [vmem:[#allocation2 + $0x100] sm:$0xf0] %v607_v25 }
 0x132   : > { %620 = vst [vmem:[#allocation2 + $0x8] sm:$0xf0] %v608_v26  ;;  %v602_v28 = vpop.permute.xlu0 %601  ;;  %979 = vrot.lane.b32.xlu2 %v971_v0, %s4557_s6 }
 0x133   : > { %v609_v32 = vsel %vm603_vm6, %v4939_v61, %v602_v28  ;;  %vm1491_vm6 = vcmask 498688  }
 0x134   : > { %621 = vst [vmem:[#allocation2 + $0x188] sm:$0xf0] %v609_v32  ;;  %v4987_v34 = vpop.permute.xlu2 %706  ;;  %v1140_v17 = vld.sshfl [vmem:[#allocation1 + $0x18] sm:$0xff pattern:$0x75316420] }
 0x135   : > { %977 = vrot.lane.b32.xlu1 %v970_v5, %s4557_s6  ;;  %v1138_v5 = vld.sshfl [vmem:[#allocation1 + $0x8] sm:$0xff pattern:$0x75316420]  ;;  %v1180_v32 = vld [vmem:[%s4725_s9 + $0x18] sm:$0xf] }
 0x137   : > { %v645_v37 = vpop.permute.xlu1 %644 }
 0x138   : > { %981 = vrot.lane.b32.xlu0 %v972_v3, %s4557_s6  ;;  %v659_v38 = vsel %vm658_vm7, %v645_v37, %v4950_v7  ;;  %v1139_v3 = vld.sshfl [vmem:[#allocation1 + $0x10] sm:$0xff pattern:$0x75316420] }
 0x139   : > { %671 = vst [vmem:[#allocation2 + $0x248] sm:$0xf] %v659_v38 }
 0x13a   : > { %v649_v42 = vpop.permute.xlu0 %648  ;;  %985 = vrot.lane.b32.xlu2 %v974_v2, %s4557_s6  ;;  %1187 = vst [vmem:[#allocation1 + $0x10] ss:$2 sm:$0xff] %v4998_v40 }
 0x13b   : > { %v660_v43 = vsel %vm658_vm7, %v4950_v7, %v649_v42  ;;  %v1137_v7 = vld.sshfl [vmem:[#allocation1] sm:$0xff pattern:$0x75316420] }
 0x13c   : > { %672 = vst [vmem:[#allocation2 + $0xc8] sm:$0xf] %v660_v43  ;;  %v713_v44 = vpop.permute.xlu2 %712 }
 0x13d   : > { %983 = vrot.lane.b32.xlu1 %v973_v14, %s4557_s6  ;;  %1185 = vst [vmem:[#allocation1] ss:$2 sm:$0xff] %v4983_v31  ;;  %v1124_v14 = vld [vmem:[%s4725_s9 + $0x18] sm:$0xf] }
 0x13e   : > { %1136 = vst [vmem:[#allocation1 + $0x31] ss:$2 sm:$0xff] %v1124_v14 }
 0x13f   : > { %v651_v47 = vpop.permute.xlu1 %650 }
 0x140   : > { %987 = vrot.lane.b32.xlu0 %v975_v20, %s4557_s6  ;;  %v661_v48 = vsel %vm658_vm7, %v649_v42, %v651_v47  ;;  %v662_v49 = vsel %vm658_vm7, %v651_v47, %v4958_v15  ;;  %v1141_v20 = vld.sshfl [vmem:[#allocation1 + $0x20] sm:$0xff pattern:$0x75316420] }
 0x141   : > { %673 = vst [vmem:[#allocation2 + $0x388] sm:$0xf] %v661_v48 }
 0x142   : > { %v655_v52 = vpop.permute.xlu0 %654  ;;  %674 = vst [vmem:[#allocation2 + $0x520] sm:$0xf] %v662_v49  ;;  %1033 = vrot.lane.b32.xlu2 %v1026_v33, %s4558_s7 }
 0x143   : > { %v663_v54 = vsel %vm658_vm7, %v4958_v15, %v655_v52  ;;  %1189 = vst [vmem:[#allocation1 + $0x20] ss:$2 sm:$0xff] %v4968_v19 }
 0x144   : > { %675 = vst [vmem:[#allocation2 + $0x3a8] sm:$0xf] %v663_v54  ;;  %v5016_v56 = vpop.permute.xlu2 %759  ;;  %v1192_v25 = vld.sshfl [vmem:[#allocation1] sm:$0xff pattern:$0x75316420] }
 0x145   : > { %989 = vrot.lane.b32.xlu1 %v976_v29, %s4557_s6  ;;  %v1143_v33 = vld.sshfl [vmem:[#allocation1 + $0x30] sm:$0xff pattern:$0x75316420]  ;;  %v1235_v54 = vld [vmem:[%s4725_s9 + $0x18] sm:$0xf]  ;;  %s4573_s6 = smov 32  }
 0x146   : > { %1191 = vst [vmem:[#allocation1 + $0x30] ss:$2 sm:$0xff] %v1180_v32 }
 0x147   : > { %v657_v59 = vpop.permute.xlu1 %656 }
 0x148   : > { %1035 = vrot.lane.b32.xlu0 %v1027_v30, %s4558_s7  ;;  %v664_v60 = vsel %vm658_vm7, %v655_v52, %v657_v59  ;;  %vm1546_vm7 = vcmask 310272  }
 0x149   : > { %676 = vst [vmem:[#allocation2 + $0x5e0] sm:$0xf] %v664_v60 }
 0x14a   : > { %v703_v61 = vpop.permute.xlu0 %702  ;;  %1039 = vrot.lane.b32.xlu2 %v1029_v41, %s4558_s7  ;;  %v1196_v37 = vld.sshfl [vmem:[#allocation1 + $0x20] sm:$0xff pattern:$0x75316420]  ;;  %v1197_v41 = vld.sshfl [vmem:[#allocation1 + $0x28] sm:$0xff pattern:$0x75316420] }
 0x14b   : > { %v715_v1 = vsel %vm714_vm8, %v4973_v23, %v703_v61  ;;  %v5060_v23 = vld.sshfl [vmem:[#allocation1 + $0x8] sm:$0xff pattern:$0x75316420]  ;;  %1245 = vst [vmem:[#allocation1 + $0x21] ss:$2 sm:$0xff] %v4968_v19 }
 0x14c   : > { %727 = vst [vmem:[#allocation2 + $0x248] sm:$0xf0] %v715_v1  ;;  %v5028_v62 = vpop.permute.xlu2 %765 }
 0x14d   : > { %1037 = vrot.lane.b32.xlu1 %v1028_v39, %s4558_s7  ;;  %1241 = vst [vmem:[#allocation1 + $0x1] ss:$2 sm:$0xff] %v4983_v31  ;;  %v1195_v39 = vld.sshfl [vmem:[#allocation1 + $0x18] sm:$0xff pattern:$0x75316420] }
 0x14f   : > { %v705_v63 = vpop.permute.xlu1 %704 }
 0x150   : > { %1041 = vrot.lane.b32.xlu0 %v1030_v35, %s4558_s7  ;;  %v716_v0 = vsel %vm714_vm8, %v703_v61, %v705_v63  ;;  %v717_v4 = vsel %vm714_vm8, %v705_v63, %v4987_v34  ;;  %v1194_v35 = vld.sshfl [vmem:[#allocation1 + $0x10] sm:$0xff pattern:$0x75316420] }
 0x151   : > { %728 = vst [vmem:[#allocation2 + $0xc8] sm:$0xf0] %v716_v0 }
 0x152   : > { %729 = vst [vmem:[#allocation2 + $0x388] sm:$0xf0] %v717_v4  ;;  %v709_v6 = vpop.permute.xlu0 %708  ;;  %1045 = vrot.lane.b32.xlu2 %v1032_v51, %s4558_s7  ;;  %v1253_v59 = vld.sshfl [vmem:[#allocation1 + $0x28] sm:$0xff pattern:$0x75316420] }
 0x153   : > { %v718_v8 = vsel %vm714_vm8, %v4987_v34, %v709_v6  ;;  %1243 = vst [vmem:[#allocation1 + $0x11] ss:$2 sm:$0xff] %v4998_v40  ;;  %v1252_v60 = vld.sshfl [vmem:[#allocation1 + $0x20] sm:$0xff pattern:$0x75316420] }
 0x154   : > { %730 = vst [vmem:[#allocation2 + $0x520] sm:$0xf0] %v718_v8  ;;  %v5039_v9 = vpop.permute.xlu2 %813 }
 0x155   : > { %1043 = vrot.lane.b32.xlu1 %v4990_v36, %s4558_s7  ;;  %1300 = vst [vmem:[#allocation1 + $0x20] ss:$2 sm:$0xff] %v4968_v19  ;;  %s4574_s7 = smov 31  }
 0x157   : > { %v711_v10 = vpop.permute.xlu1 %710 }
 0x158   : > { %1088 = vrot.lane.b32.xlu0 %v1081_v45, %s4559_s8  ;;  %v719_v11 = vsel %vm714_vm8, %v709_v6, %v711_v10  ;;  %v720_v12 = vsel %vm714_vm8, %v711_v10, %v713_v44  ;;  %v1248_v45 = vld.sshfl [vmem:[#allocation1] sm:$0xff pattern:$0x75316420]  ;;  %vm1602_vm8 = vcmask 302080  }
 0x159   : > { %731 = vst [vmem:[#allocation2 + $0x3a8] sm:$0xf0] %v719_v11 }
 0x15a   : > { %732 = vst [vmem:[#allocation2 + $0x5e0] sm:$0xf0] %v720_v12  ;;  %v756_v15 = vpop.permute.xlu0 %755  ;;  %1092 = vrot.lane.b32.xlu2 %v1083_v53, %s4559_s8  ;;  %v1250_v49 = vld.sshfl [vmem:[#allocation1 + $0x10] sm:$0xff pattern:$0x75316420] }
 0x15b   : > { %v5093_v50 = vld.sshfl [vmem:[#allocation1 + $0x18] sm:$0xff pattern:$0x75316420] }
 0x15c   : > { %v5050_v18 = vpop.permute.xlu2 %819  ;;  %1298 = vst [vmem:[#allocation1 + $0x10] ss:$2 sm:$0xff] %v4998_v40 }
 0x15d   : > { %1090 = vrot.lane.b32.xlu1 %v5005_v46, %s4559_s8  ;;  %v5087_v46 = vld.sshfl [vmem:[#allocation1 + $0x8] sm:$0xff pattern:$0x75316420] }
 0x15e   : > { %1296 = vst [vmem:[#allocation1] ss:$2 sm:$0xff] %v4983_v31 }
 0x15f   : > { %v758_v21 = vpop.permute.xlu1 %757 }
 0x160   : > { %1094 = vrot.lane.b32.xlu0 %v1084_v55, %s4559_s8  ;;  %v770_v2 = vsel %vm769_vm9, %v756_v15, %v758_v21  ;;  %v771_v22 = vsel %vm769_vm9, %v758_v21, %v5016_v56 }
 0x161   : > { %782 = vst [vmem:[#allocation2 + $0x488] sm:$0xf] %v770_v2  ;;  %v1307_v2 = vld.sshfl [vmem:[#allocation1 + $0x20] sm:$0xff pattern:$0x75316420] }
 0x162   : > { %783 = vst [vmem:[#allocation2 + $0x4d0] sm:$0xf] %v771_v22  ;;  %v762_v24 = vpop.permute.xlu0 %761  ;;  %1098 = vrot.lane.b32.xlu2 %v1086_v57, %s4559_s8 }
 0x163   : > { %v772_v26 = vsel %vm769_vm9, %v5016_v56, %v762_v24  ;;  %v1198_v56 = vld.sshfl [vmem:[#allocation1 + $0x30] sm:$0xff pattern:$0x75316420] }
 0x164   : > { %784 = vst [vmem:[#allocation2 + $0x98] sm:$0xf] %v772_v26  ;;  %v5066_v27 = vpop.permute.xlu2 %866  ;;  %v1305_v15 = vld.sshfl [vmem:[#allocation1 + $0x10] sm:$0xff pattern:$0x75316420] }
 0x165   : > { %1096 = vrot.lane.b32.xlu1 %v5019_v58, %s4559_s8  ;;  %1247 = vst [vmem:[#allocation1 + $0x31] ss:$2 sm:$0xff] %v1235_v54 }
 0x167   : > { %v764_v28 = vpop.permute.xlu1 %763 }
 0x168   : > { %1100 = vrot.lane.b32.xlu0 %v1087_v13, %s4559_s8  ;;  %v773_v29 = vsel %vm769_vm9, %v762_v24, %v764_v28  ;;  %v774_v30 = vsel %vm769_vm9, %v764_v28, %v5028_v62  ;;  %s4575_s8 = smov 8  }
 0x169   : > { %785 = vst [vmem:[#allocation2 + $0xb0] sm:$0xf] %v773_v29 }
 0x16a   : > { %786 = vst [vmem:[#allocation2 + $0x2a0] sm:$0xf] %v774_v30  ;;  %v768_v34 = vpop.permute.xlu0 %767  ;;  %1146 = vrot.lane.b32.xlu2 %v1138_v5, %s4560_s18 }
 0x16b   : > { %v775_v36 = vsel %vm769_vm9, %v5028_v62, %v768_v34  ;;  %v1346_v34 = vld [vmem:[%s4725_s9 + $0x18] sm:$0xf]  ;;  %vm1657_vm9 = vcmask 293888  }
 0x16c   : > { %787 = vst [vmem:[#allocation2 + $0x570] sm:$0xf] %v775_v36  ;;  %v5078_v38 = vpop.permute.xlu2 %872  ;;  %v1254_v14 = vld.sshfl [vmem:[#allocation1 + $0x30] sm:$0xff pattern:$0x75316420] }
 0x16d   : > { %1144 = vrot.lane.b32.xlu1 %v1137_v7, %s4560_s18  ;;  %v1304_v7 = vld.sshfl [vmem:[#allocation1 + $0x8] sm:$0xff pattern:$0x75316420] }
 0x16f   : > { %v812_v42 = vpop.permute.xlu1 %811 }
 0x170   : > { %1148 = vrot.lane.b32.xlu0 %v1139_v3, %s4560_s18  ;;  %v826_v43 = vsel %vm825_vm10, %v812_v42, %v5039_v9 }
 0x171   : > { %838 = vst [vmem:[#allocation2 + $0x488] sm:$0xf0] %v826_v43 }
 0x172   : > { %v816_v44 = vpop.permute.xlu0 %815  ;;  %1152 = vrot.lane.b32.xlu2 %v1141_v20, %s4560_s18  ;;  %v1306_v20 = vld.sshfl [vmem:[#allocation1 + $0x18] sm:$0xff pattern:$0x75316420] }
 0x173   : > { %v827_v47 = vsel %vm825_vm10, %v5039_v9, %v816_v44  ;;  %v1303_v9 = vld.sshfl [vmem:[#allocation1] sm:$0xff pattern:$0x75316420]  ;;  %1354 = vst [vmem:[#allocation1 + $0x11] ss:$2 sm:$0xff] %v4998_v40 }
 0x174   : > { %839 = vst [vmem:[#allocation2 + $0x4d0] sm:$0xf0] %v827_v47  ;;  %v879_v48 = vpop.permute.xlu2 %878 }
 0x175   : > { %1150 = vrot.lane.b32.xlu1 %v1140_v17, %s4560_s18  ;;  %1352 = vst [vmem:[#allocation1 + $0x1] ss:$2 sm:$0xff] %v4983_v31 }
 0x177   : > { %v818_v51 = vpop.permute.xlu1 %817 }
 0x178   : > { %1154 = vrot.lane.b32.xlu0 %v5048_v16, %s4560_s18  ;;  %v828_v52 = vsel %vm825_vm10, %v816_v44, %v818_v51  ;;  %v829_v53 = vsel %vm825_vm10, %v818_v51, %v5050_v18  ;;  %v1291_v16 = vld [vmem:[%s4725_s9 + $0x18] sm:$0xf] }
 0x179   : > { %840 = vst [vmem:[#allocation2 + $0x98] sm:$0xf0] %v828_v52 }
 0x17a   : > { %v822_v55 = vpop.permute.xlu0 %821  ;;  %841 = vst [vmem:[#allocation2 + $0xb0] sm:$0xf0] %v829_v53  ;;  %1199 = vrot.lane.b32.xlu2 %v1192_v25, %s4561_s23  ;;  %v1362_v42 = vld.sshfl [vmem:[#allocation1 + $0x18] sm:$0xff pattern:$0x75316420] }
 0x17b   : > { %v830_v57 = vsel %vm825_vm10, %v5050_v18, %v822_v55  ;;  %v5134_v18 = vld.sshfl [vmem:[#allocation1 + $0x28] sm:$0xff pattern:$0x75316420]  ;;  %1302 = vst [vmem:[#allocation1 + $0x30] ss:$2 sm:$0xff] %v1291_v16 }
 0x17c   : > { %842 = vst [vmem:[#allocation2 + $0x2a0] sm:$0xf0] %v830_v57  ;;  %v5105_v58 = vpop.permute.xlu2 %926  ;;  %v5147_v25 = vld.sshfl [vmem:[#allocation1 + $0x8] sm:$0xff pattern:$0x75316420] }
 0x17d   : > { %1156 = vrot.lane.b32.xlu1 %v1143_v33, %s4560_s18  ;;  %1356 = vst [vmem:[#allocation1 + $0x21] ss:$2 sm:$0xff] %v4968_v19  ;;  %s4576_s18 = smov 7  }
 0x17f   : > { %v824_v61 = vpop.permute.xlu1 %823 }
 0x180   : > { %1201 = vrot.lane.b32.xlu0 %v5060_v23, %s4561_s23  ;;  %v831_v1 = vsel %vm825_vm10, %v822_v55, %v824_v61  ;;  %vm1713_vm10 = vcmask 285696  }
 0x181   : > { %843 = vst [vmem:[#allocation2 + $0x570] sm:$0xf0] %v831_v1 }
 0x182   : > { %v869_v62 = vpop.permute.xlu0 %868  ;;  %1205 = vrot.lane.b32.xlu2 %v1195_v39, %s4561_s23 }
 0x183   : > { %v881_v63 = vsel %vm880_vm11, %v5066_v27, %v869_v62  ;;  %v1359_v27 = vld.sshfl [vmem:[#allocation1] sm:$0xff pattern:$0x75316420] }
 0x184   : > { %893 = vst [vmem:[#allocation2 + $0x598] sm:$0xf] %v881_v63  ;;  %v5115_v0 = vpop.permute.xlu2 %932  ;;  %v1363_v39 = vld.sshfl [vmem:[#allocation1 + $0x20] sm:$0xff pattern:$0x75316420] }
 0x185   : > { %1203 = vrot.lane.b32.xlu1 %v1194_v35, %s4561_s23  ;;  %1407 = vst [vmem:[#allocation1] ss:$2 sm:$0xff] %v4983_v31  ;;  %v1309_v35 = vld.sshfl [vmem:[#allocation1 + $0x30] sm:$0xff pattern:$0x75316420] }
 0x186   : > { %1358 = vst [vmem:[#allocation1 + $0x31] ss:$2 sm:$0xff] %v1346_v34  ;;  %v1364_v43 = vld.sshfl [vmem:[#allocation1 + $0x28] sm:$0xff pattern:$0x75316420] }
 0x187   : > { %v871_v4 = vpop.permute.xlu1 %870  ;;  %1411 = vst [vmem:[#allocation1 + $0x20] ss:$2 sm:$0xff] %v4968_v19 }
 0x188   : > { %1207 = vrot.lane.b32.xlu0 %v1196_v37, %s4561_s23  ;;  %v882_v5 = vsel %vm880_vm11, %v869_v62, %v871_v4  ;;  %v883_v6 = vsel %vm880_vm11, %v871_v4, %v5078_v38  ;;  %v1361_v37 = vld.sshfl [vmem:[#allocation1 + $0x10] sm:$0xff pattern:$0x75316420] }
 0x189   : > { %894 = vst [vmem:[#allocation2 + $0x5a8] sm:$0xf] %v882_v5 }
 0x18a   : > { %895 = vst [vmem:[#allocation2 + $0x4c8] sm:$0xf] %v883_v6  ;;  %v875_v8 = vpop.permute.xlu0 %874  ;;  %1211 = vrot.lane.b32.xlu2 %v1198_v56, %s4561_s23  ;;  %v1402_v56 = vld [vmem:[%s4725_s9 + $0x18] sm:$0xf] }
 0x18b   : > { %v884_v10 = vsel %vm880_vm11, %v5078_v38, %v875_v8  ;;  %1409 = vst [vmem:[#allocation1 + $0x10] ss:$2 sm:$0xff] %v4998_v40 }
 0x18c   : > { %896 = vst [vmem:[#allocation2 + $0x5e8] sm:$0xf] %v884_v10  ;;  %v5126_v11 = vpop.permute.xlu2 %979  ;;  %v1414_v47 = vld.sshfl [vmem:[#allocation1] sm:$0xff pattern:$0x75316420] }
 0x18d   : > { %1209 = vrot.lane.b32.xlu1 %v1197_v41, %s4561_s23  ;;  %s4577_s23 = smov 6  }
 0x18e   : > { %v1419_v61 = vld.sshfl [vmem:[#allocation1 + $0x28] sm:$0xff pattern:$0x75316420]  ;;  %v1418_v1 = vld.sshfl [vmem:[#allocation1 + $0x20] sm:$0xff pattern:$0x75316420] }
 0x18f   : > { %v877_v12 = vpop.permute.xlu1 %876  ;;  %1467 = vst [vmem:[#allocation1 + $0x21] ss:$2 sm:$0xff] %v4968_v19 }
 0x190   : > { %1255 = vrot.lane.b32.xlu0 %v1248_v45, %s4562_s10  ;;  %v885_v13 = vsel %vm880_vm11, %v875_v8, %v877_v12  ;;  %v886_v3 = vsel %vm880_vm11, %v877_v12, %v879_v48  ;;  %v5173_v48 = vld.sshfl [vmem:[#allocation1 + $0x8] sm:$0xff pattern:$0x75316420]  ;;  %vm1768_vm11 = vcmask 277504  }
 0x191   : > { %897 = vst [vmem:[#allocation2 + $0x1f8] sm:$0xf] %v885_v13 }
 0x192   : > { %898 = vst [vmem:[#allocation2 + $0x2f0] sm:$0xf] %v886_v3  ;;  %v923_v17 = vpop.permute.xlu0 %922  ;;  %1259 = vrot.lane.b32.xlu2 %v1250_v49, %s4562_s10  ;;  %v1416_v51 = vld.sshfl [vmem:[#allocation1 + $0x10] sm:$0xff pattern:$0x75316420] }
 0x193   : > { %1463 = vst [vmem:[#allocation1 + $0x1] ss:$2 sm:$0xff] %v4983_v31  ;;  %v5179_v52 = vld.sshfl [vmem:[#allocation1 + $0x18] sm:$0xff pattern:$0x75316420] }
 0x194   : > { %v5136_v21 = vpop.permute.xlu2 %985  ;;  %1465 = vst [vmem:[#allocation1 + $0x11] ss:$2 sm:$0xff] %v4998_v40 }
 0x195   : > { %1257 = vrot.lane.b32.xlu1 %v5087_v46, %s4562_s10 }
 0x197   : > { %v925_v22 = vpop.permute.xlu1 %924 }
 0x198   : > { %1261 = vrot.lane.b32.xlu0 %v5093_v50, %s4562_s10  ;;  %v937_v23 = vsel %vm936_vm12, %v923_v17, %v925_v22  ;;  %v938_v24 = vsel %vm936_vm12, %v925_v22, %v5105_v58 }
 0x199   : > { %949 = vst [vmem:[#allocation2 + $0x598] sm:$0xf0] %v937_v23  ;;  %v1474_v23 = vld.sshfl [vmem:[#allocation1 + $0x20] sm:$0xff pattern:$0x75316420] }
 0x19a   : > { %950 = vst [vmem:[#allocation2 + $0x5a8] sm:$0xf0] %v938_v24  ;;  %v929_v26 = vpop.permute.xlu0 %928  ;;  %1265 = vrot.lane.b32.xlu2 %v1253_v59, %s4562_s10 }
 0x19b   : > { %v939_v28 = vsel %vm936_vm12, %v5105_v58, %v929_v26  ;;  %v1365_v58 = vld.sshfl [vmem:[#allocation1 + $0x30] sm:$0xff pattern:$0x75316420] }
 0x19c   : > { %951 = vst [vmem:[#allocation2 + $0x4c8] sm:$0xf0] %v939_v28  ;;  %v5153_v29 = vpop.permute.xlu2 %1033  ;;  %v1472_v17 = vld.sshfl [vmem:[#allocation1 + $0x10] sm:$0xff pattern:$0x75316420] }
 0x19d   : > { %1263 = vrot.lane.b32.xlu1 %v1252_v60, %s4562_s10  ;;  %1413 = vst [vmem:[#allocation1 + $0x30] ss:$2 sm:$0xff] %v1402_v56 }
 0x19f   : > { %v931_v30 = vpop.permute.xlu1 %930 }
 0x1a0   : > { %1267 = vrot.lane.b32.xlu0 %v1254_v14, %s4562_s10  ;;  %v940_v32 = vsel %vm936_vm12, %v929_v26, %v931_v30  ;;  %v941_v33 = vsel %vm936_vm12, %v931_v30, %v5115_v0  ;;  %s4578_s10 = smov 5  }
 0x1a1   : > { %952 = vst [vmem:[#allocation2 + $0x5e8] sm:$0xf0] %v940_v32 }
 0x1a2   : > { %953 = vst [vmem:[#allocation2 + $0x1f8] sm:$0xf0] %v941_v33  ;;  %v935_v36 = vpop.permute.xlu0 %934  ;;  %1312 = vrot.lane.b32.xlu2 %v1304_v7, %s4563_s11 }
 0x1a3   : > { %v942_v38 = vsel %vm936_vm12, %v5115_v0, %v935_v36  ;;  %v1513_v36 = vld [vmem:[%s4725_s9 + $0x18] sm:$0xf]  ;;  %vm1824_vm12 = vcmask 269312  }
 0x1a4   : > { %954 = vst [vmem:[#allocation2 + $0x2f0] sm:$0xf0] %v942_v38  ;;  %v5164_v41 = vpop.permute.xlu2 %1039  ;;  %v1420_v16 = vld.sshfl [vmem:[#allocation1 + $0x30] sm:$0xff pattern:$0x75316420] }
 0x1a5   : > { %1310 = vrot.lane.b32.xlu1 %v1303_v9, %s4563_s11  ;;  %v1471_v9 = vld.sshfl [vmem:[#allocation1 + $0x8] sm:$0xff pattern:$0x75316420] }
 0x1a7   : > { %v978_v44 = vpop.permute.xlu1 %977 }
 0x1a8   : > { %1314 = vrot.lane.b32.xlu0 %v1305_v15, %s4563_s11  ;;  %v992_v45 = vsel %vm991_vm13, %v978_v44, %v5126_v11 }
 0x1a9   : > { %1004 = vst [vmem:[#allocation2 + $0x3c8] sm:$0xf] %v992_v45 }
 0x1aa   : > { %v982_v46 = vpop.permute.xlu0 %981  ;;  %1318 = vrot.lane.b32.xlu2 %v1307_v2, %s4563_s11  ;;  %v1473_v2 = vld.sshfl [vmem:[#allocation1 + $0x18] sm:$0xff pattern:$0x75316420] }
 0x1ab   : > { %v993_v49 = vsel %vm991_vm13, %v5126_v11, %v982_v46  ;;  %v1470_v11 = vld.sshfl [vmem:[#allocation1] sm:$0xff pattern:$0x75316420]  ;;  %1520 = vst [vmem:[#allocation1 + $0x10] ss:$2 sm:$0xff] %v4998_v40 }
 0x1ac   : > { %1005 = vst [vmem:[#allocation2 + $0x5c0] sm:$0xf] %v993_v49  ;;  %v1046_v50 = vpop.permute.xlu2 %1045 }
 0x1ad   : > { %1316 = vrot.lane.b32.xlu1 %v1306_v20, %s4563_s11  ;;  %1518 = vst [vmem:[#allocation1] ss:$2 sm:$0xff] %v4983_v31 }
 0x1af   : > { %v984_v53 = vpop.permute.xlu1 %983 }
 0x1b0   : > { %1320 = vrot.lane.b32.xlu0 %v5134_v18, %s4563_s11  ;;  %v994_v54 = vsel %vm991_vm13, %v982_v46, %v984_v53  ;;  %v995_v55 = vsel %vm991_vm13, %v984_v53, %v5136_v21  ;;  %v1457_v18 = vld [vmem:[%s4725_s9 + $0x18] sm:$0xf] }
 0x1b1   : > { %1006 = vst [vmem:[#allocation2 + $0x338] sm:$0xf] %v994_v54 }
 0x1b2   : > { %v988_v57 = vpop.permute.xlu0 %987  ;;  %1007 = vst [vmem:[#allocation2 + $0x480] sm:$0xf] %v995_v55  ;;  %1366 = vrot.lane.b32.xlu2 %v1359_v27, %s4564_s17  ;;  %v1528_v44 = vld.sshfl [vmem:[#allocation1 + $0x18] sm:$0xff pattern:$0x75316420] }
 0x1b3   : > { %v996_v59 = vsel %vm991_vm13, %v5136_v21, %v988_v57  ;;  %v5220_v21 = vld.sshfl [vmem:[#allocation1 + $0x28] sm:$0xff pattern:$0x75316420]  ;;  %1469 = vst [vmem:[#allocation1 + $0x31] ss:$2 sm:$0xff] %v1457_v18 }
 0x1b4   : > { %1008 = vst [vmem:[#allocation2 + $0x2a8] sm:$0xf] %v996_v59  ;;  %v5191_v60 = vpop.permute.xlu2 %1092  ;;  %v5233_v27 = vld.sshfl [vmem:[#allocation1 + $0x8] sm:$0xff pattern:$0x75316420] }
 0x1b5   : > { %1322 = vrot.lane.b32.xlu1 %v1309_v35, %s4563_s11  ;;  %1522 = vst [vmem:[#allocation1 + $0x20] ss:$2 sm:$0xff] %v4968_v19  ;;  %v1624_v18 = vld [vmem:[%s4725_s9 + $0x18] sm:$0xf]  ;;  %s4579_s11 = smov 4  }
 0x1b7   : > { %v990_v62 = vpop.permute.xlu1 %989 }
 0x1b8   : > { %1368 = vrot.lane.b32.xlu0 %v5147_v25, %s4564_s17  ;;  %v997_v63 = vsel %vm991_vm13, %v988_v57, %v990_v62  ;;  %vm1879_vm13 = vcmask 261120  }
 0x1b9   : > { %1009 = vst [vmem:[#allocation2 + $0x3e0] sm:$0xf] %v997_v63 }
 0x1ba   : > { %v1036_v0 = vpop.permute.xlu0 %1035  ;;  %1372 = vrot.lane.b32.xlu2 %v1362_v42, %s4564_s17 }
 0x1bb   : > { %v1048_v4 = vsel %vm1047_vm14, %v5153_v29, %v1036_v0  ;;  %v1525_v29 = vld.sshfl [vmem:[#allocation1] sm:$0xff pattern:$0x75316420] }
 0x1bc   : > { %1060 = vst [vmem:[#allocation2 + $0x3c8] sm:$0xf0] %v1048_v4  ;;  %v5201_v5 = vpop.permute.xlu2 %1098  ;;  %v1529_v42 = vld.sshfl [vmem:[#allocation1 + $0x20] sm:$0xff pattern:$0x75316420] }
 0x1bd   : > { %1370 = vrot.lane.b32.xlu1 %v1361_v37, %s4564_s17  ;;  %1574 = vst [vmem:[#allocation1 + $0x1] ss:$2 sm:$0xff] %v4983_v31  ;;  %v1476_v37 = vld.sshfl [vmem:[#allocation1 + $0x30] sm:$0xff pattern:$0x75316420] }
 0x1be   : > { %1524 = vst [vmem:[#allocation1 + $0x30] ss:$2 sm:$0xff] %v1513_v36  ;;  %v1530_v45 = vld.sshfl [vmem:[#allocation1 + $0x28] sm:$0xff pattern:$0x75316420] }
 0x1bf   : > { %v1038_v6 = vpop.permute.xlu1 %1037  ;;  %1578 = vst [vmem:[#allocation1 + $0x21] ss:$2 sm:$0xff] %v4968_v19 }
 0x1c0   : > { %1374 = vrot.lane.b32.xlu0 %v1363_v39, %s4564_s17  ;;  %v1049_v7 = vsel %vm1047_vm14, %v1036_v0, %v1038_v6  ;;  %v1050_v8 = vsel %vm1047_vm14, %v1038_v6, %v5164_v41  ;;  %v1527_v39 = vld.sshfl [vmem:[#allocation1 + $0x10] sm:$0xff pattern:$0x75316420] }
 0x1c1   : > { %1061 = vst [vmem:[#allocation2 + $0x5c0] sm:$0xf0] %v1049_v7 }
 0x1c2   : > { %1062 = vst [vmem:[#allocation2 + $0x338] sm:$0xf0] %v1050_v8  ;;  %v1042_v10 = vpop.permute.xlu0 %1041  ;;  %1378 = vrot.lane.b32.xlu2 %v1365_v58, %s4564_s17  ;;  %v1568_v58 = vld [vmem:[%s4725_s9 + $0x18] sm:$0xf] }
 0x1c3   : > { %v1051_v12 = vsel %vm1047_vm14, %v5164_v41, %v1042_v10  ;;  %1576 = vst [vmem:[#allocation1 + $0x11] ss:$2 sm:$0xff] %v4998_v40 }
 0x1c4   : > { %1063 = vst [vmem:[#allocation2 + $0x480] sm:$0xf0] %v1051_v12  ;;  %v5212_v13 = vpop.permute.xlu2 %1146  ;;  %v1581_v49 = vld.sshfl [vmem:[#allocation1] sm:$0xff pattern:$0x75316420] }
 0x1c5   : > { %1376 = vrot.lane.b32.xlu1 %v1364_v43, %s4564_s17  ;;  %s4580_s17 = smov 3  }
 0x1c6   : > { %v1586_v62 = vld.sshfl [vmem:[#allocation1 + $0x28] sm:$0xff pattern:$0x75316420]  ;;  %v1585_v63 = vld.sshfl [vmem:[#allocation1 + $0x20] sm:$0xff pattern:$0x75316420] }
 0x1c7   : > { %v1044_v3 = vpop.permute.xlu1 %1043  ;;  %1633 = vst [vmem:[#allocation1 + $0x20] ss:$2 sm:$0xff] %v4968_v19 }
 0x1c8   : > { %1421 = vrot.lane.b32.xlu0 %v1414_v47, %s4565_s20  ;;  %v1052_v14 = vsel %vm1047_vm14, %v1042_v10, %v1044_v3  ;;  %v1053_v15 = vsel %vm1047_vm14, %v1044_v3, %v1046_v50  ;;  %v5259_v50 = vld.sshfl [vmem:[#allocation1 + $0x8] sm:$0xff pattern:$0x75316420]  ;;  %vm1935_vm14 = vcmask 252928  }
 0x1c9   : > { %1064 = vst [vmem:[#allocation2 + $0x2a8] sm:$0xf0] %v1052_v14 }
 0x1ca   : > { %1065 = vst [vmem:[#allocation2 + $0x3e0] sm:$0xf0] %v1053_v15  ;;  %v1089_v20 = vpop.permute.xlu0 %1088  ;;  %1425 = vrot.lane.b32.xlu2 %v1416_v51, %s4565_s20  ;;  %v1583_v53 = vld.sshfl [vmem:[#allocation1 + $0x10] sm:$0xff pattern:$0x75316420] }
 0x1cb   : > { %1629 = vst [vmem:[#allocation1] ss:$2 sm:$0xff] %v4983_v31  ;;  %v5265_v54 = vld.sshfl [vmem:[#allocation1 + $0x18] sm:$0xff pattern:$0x75316420] }
 0x1cc   : > { %v5222_v22 = vpop.permute.xlu2 %1152  ;;  %1631 = vst [vmem:[#allocation1 + $0x10] ss:$2 sm:$0xff] %v4998_v40 }
 0x1cd   : > { %1423 = vrot.lane.b32.xlu1 %v5173_v48, %s4565_s20 }
 0x1cf   : > { %v1091_v24 = vpop.permute.xlu1 %1090 }
 0x1d0   : > { %1427 = vrot.lane.b32.xlu0 %v5179_v52, %s4565_s20  ;;  %v1103_v25 = vsel %vm1102_vm15, %v1089_v20, %v1091_v24  ;;  %v1104_v26 = vsel %vm1102_vm15, %v1091_v24, %v5191_v60 }
 0x1d1   : > { %1115 = vst [vmem:[#allocation2 + $0x3d8] sm:$0xf] %v1103_v25  ;;  %v5314_v25 = vld [vmem:[%s4725_s9 + $0x10] sm:$0xff] }
 0x1d2   : > { %1116 = vst [vmem:[#allocation2 + $0x4b0] sm:$0xf] %v1104_v26  ;;  %v1095_v28 = vpop.permute.xlu0 %1094  ;;  %1431 = vrot.lane.b32.xlu2 %v1419_v61, %s4565_s20  ;;  %v1637_v10 = vld.sshfl [vmem:[#allocation1 + $0x8] sm:$0xff pattern:$0x75316420] }
 0x1d3   : > { %v1105_v30 = vsel %vm1102_vm15, %v5191_v60, %v1095_v28  ;;  %v1531_v60 = vld.sshfl [vmem:[#allocation1 + $0x30] sm:$0xff pattern:$0x75316420]  ;;  %v1636_v12 = vld.sshfl [vmem:[#allocation1] sm:$0xff pattern:$0x75316420] }
 0x1d4   : > { %1117 = vst [vmem:[#allocation2 + $0x28] sm:$0xf] %v1105_v30  ;;  %v5239_v32 = vpop.permute.xlu2 %1199  ;;  %v1641_v26 = vld.sshfl [vmem:[#allocation1 + $0x28] sm:$0xff pattern:$0x75316420] }
 0x1d5   : > { %1429 = vrot.lane.b32.xlu1 %v1418_v1, %s4565_s20  ;;  %1580 = vst [vmem:[#allocation1 + $0x31] ss:$2 sm:$0xff] %v1568_v58  ;;  %v1735_v58 = vld [vmem:[%s4725_s9 + $0x18] sm:$0xf] }
 0x1d6   : > { %1685 = vst [vmem:[#allocation1 + $0x1] ss:$2 sm:$0xff] %v4983_v31  ;;  %v1638_v31 = vld.sshfl [vmem:[#allocation1 + $0x10] sm:$0xff pattern:$0x75316420] }
 0x1d7   : > { %v1097_v33 = vpop.permute.xlu1 %1096 }
 0x1d8   : > { %1433 = vrot.lane.b32.xlu0 %v1420_v16, %s4565_s20  ;;  %v1106_v34 = vsel %vm1102_vm15, %v1095_v28, %v1097_v33  ;;  %v1107_v35 = vsel %vm1102_vm15, %v1097_v33, %v5201_v5  ;;  %s4581_s20 = smov 2  }
 0x1d9   : > { %1118 = vst [vmem:[#allocation2 + $0xf8] sm:$0xf] %v1106_v34  ;;  %v1679_v34 = vld [vmem:[%s4725_s9 + $0x18] sm:$0xf] }
 0x1da   : > { %1119 = vst [vmem:[#allocation2 + $0x4e8] sm:$0xf] %v1107_v35  ;;  %v1101_v38 = vpop.permute.xlu0 %1100  ;;  %1479 = vrot.lane.b32.xlu2 %v1471_v9, %s4566_s21 }
 0x1db   : > { %v1108_v41 = vsel %vm1102_vm15, %v5201_v5, %v1101_v38  ;;  %v5329_v38 = vld [vmem:[%s4725_s9] sm:$0xff]  ;;  %vm1990_vm15 = vcmask 64512  }
 0x1dc   : > { %1120 = vst [vmem:[#allocation2 + $0x120] sm:$0xf] %v1108_v41  ;;  %v5250_v43 = vpop.permute.xlu2 %1205 }
 0x1dd   : > { %1477 = vrot.lane.b32.xlu1 %v1470_v11, %s4566_s21  ;;  %v1692_v41 = vld.sshfl [vmem:[#allocation1] sm:$0xff pattern:$0x75316420] }
 0x1df   : > { %v1145_v46 = vpop.permute.xlu1 %1144 }
 0x1e0   : > { %1481 = vrot.lane.b32.xlu0 %v1472_v17, %s4566_s21  ;;  %v1159_v47 = vsel %vm1158_vm0, %v1145_v46, %v5212_v13  ;;  %v1587_v17 = vld.sshfl [vmem:[#allocation1 + $0x30] sm:$0xff pattern:$0x75316420] }
 0x1e1   : > { %1171 = vst [vmem:[#allocation2 + $0x3d8] sm:$0xf0] %v1159_v47 }
 0x1e2   : > { %v1149_v48 = vpop.permute.xlu0 %1148  ;;  %1485 = vrot.lane.b32.xlu2 %v1474_v23, %s4566_s21  ;;  %1635 = vst [vmem:[#allocation1 + $0x30] ss:$2 sm:$0xff] %v1624_v18 }
 0x1e3   : > { %v1160_v51 = vsel %vm1158_vm0, %v5212_v13, %v1149_v48 }
 0x1e4   : > { %1172 = vst [vmem:[#allocation2 + $0x4b0] sm:$0xf0] %v1160_v51  ;;  %v1212_v52 = vpop.permute.xlu2 %1211 }
 0x1e5   : > { %1483 = vrot.lane.b32.xlu1 %v1473_v2, %s4566_s21 }
 0x1e7   : > { %v1151_v55 = vpop.permute.xlu1 %1150 }
 0x1e8   : > { %1487 = vrot.lane.b32.xlu0 %v5220_v21, %s4566_s21  ;;  %v1161_v56 = vsel %vm1158_vm0, %v1149_v48, %v1151_v55  ;;  %v1162_v57 = vsel %vm1158_vm0, %v1151_v55, %v5222_v22  ;;  %v1639_v21 = vld.sshfl [vmem:[#allocation1 + $0x18] sm:$0xff pattern:$0x75316420]  ;;  %v5344_v48 = vld [vmem:[%s4725_s9 + $0x8] sm:$0xff] }
 0x1e9   : > { %1173 = vst [vmem:[#allocation2 + $0x28] sm:$0xf0] %v1161_v56  ;;  %v1642_v36 = vld.sshfl [vmem:[#allocation1 + $0x30] sm:$0xff pattern:$0x75316420] }
 0x1ea   : > { %v1155_v59 = vpop.permute.xlu0 %1154  ;;  %1174 = vst [vmem:[#allocation2 + $0xf8] sm:$0xf0] %v1162_v57  ;;  %1532 = vrot.lane.b32.xlu2 %v1525_v29, %s4567_s22 }
 0x1eb   : > { %v1163_v61 = vsel %vm1158_vm0, %v5222_v22, %v1155_v59  ;;  %1687 = vst [vmem:[#allocation1 + $0x11] ss:$2 sm:$0xff] %v4998_v40  ;;  %v1640_v40 = vld.sshfl [vmem:[#allocation1 + $0x20] sm:$0xff pattern:$0x75316420] }
 0x1ec   : > { %1175 = vst [vmem:[#allocation2 + $0x4e8] sm:$0xf0] %v1163_v61  ;;  %v1260_v1 = vpop.permute.xlu2 %1259 }
 0x1ed   : > { %1489 = vrot.lane.b32.xlu1 %v1476_v37, %s4566_s21  ;;  %1689 = vst [vmem:[#allocation1 + $0x21] ss:$2 sm:$0xff] %v5314_v25  ;;  %v1693_v37 = vld.sshfl [vmem:[#allocation1 + $0x8] sm:$0xff pattern:$0x75316420]  ;;  %s4582_s21 = smov 1  }
 0x1ee   : > { %1691 = vst [vmem:[#allocation1 + $0x31] ss:$2 sm:$0xff] %v1679_v34 }
 0x1ef   : > { %v1157_v0 = vpop.permute.xlu1 %1156  ;;  %1740 = vst [vmem:[#allocation1] ss:$2 sm:$0xff] %v5329_v38 }
 0x1f0   : > { %1534 = vrot.lane.b32.xlu0 %v5233_v27, %s4567_s22  ;;  %v1164_v4 = vsel %vm1158_vm0, %v1155_v59, %v1157_v0  ;;  %vm2046_vm0 = vcmask 56320  }
 0x1f1   : > { %1176 = vst [vmem:[#allocation2 + $0x120] sm:$0xf0] %v1164_v4 }
 0x1f2   : > { %v1202_v5 = vpop.permute.xlu0 %1201  ;;  %1538 = vrot.lane.b32.xlu2 %v1528_v44, %s4567_s22  ;;  %v1694_v47 = vld.sshfl [vmem:[#allocation1 + $0x10] sm:$0xff pattern:$0x75316420] }
 0x1f3   : > { %v1214_v6 = vsel %vm1213_vm1, %v5239_v32, %v1202_v5 }
 0x1f4   : > { %1226 = vst [vmem:[#allocation2 + $0x2f8] sm:$0xf] %v1214_v6  ;;  %v5285_v7 = vpop.permute.xlu2 %1265  ;;  %v5336_v44 = vld.sshfl [vmem:[#allocation1 + $0x28] sm:$0xff pattern:$0x75316420] }
 0x1f5   : > { %1536 = vrot.lane.b32.xlu1 %v1527_v39, %s4567_s22  ;;  %v1698_v59 = vld.sshfl [vmem:[#allocation1 + $0x30] sm:$0xff pattern:$0x75316420] }
 0x1f6   : > { %1746 = vst [vmem:[#allocation1 + $0x30] ss:$2 sm:$0xff] %v1735_v58 }
 0x1f7   : > { %v1204_v19 = vpop.permute.xlu1 %1203 }
 0x1f8   : > { %1540 = vrot.lane.b32.xlu0 %v1529_v42, %s4567_s22  ;;  %v1215_v8 = vsel %vm1213_vm1, %v1202_v5, %v1204_v19  ;;  %v1216_v9 = vsel %vm1213_vm1, %v1204_v19, %v5250_v43 }
 0x1f9   : > { %1227 = vst [vmem:[#allocation2 + $0x268] sm:$0xf] %v1215_v8 }
 0x1fa   : > { %1228 = vst [vmem:[#allocation2 + $0x560] sm:$0xf] %v1216_v9  ;;  %v1208_v11 = vpop.permute.xlu0 %1207  ;;  %1544 = vrot.lane.b32.xlu2 %v1531_v60, %s4567_s22 }
 0x1fb   : > { %v1217_v13 = vsel %vm1213_vm1, %v5250_v43, %v1208_v11  ;;  %v1696_v43 = vld.sshfl [vmem:[#allocation1 + $0x20] sm:$0xff pattern:$0x75316420] }
 0x1fc   : > { %1229 = vst [vmem:[#allocation2 + $0x4f8] sm:$0xf] %v1217_v13  ;;  %v5296_v3 = vpop.permute.xlu2 %1312 }
 0x1fd   : > { %1542 = vrot.lane.b32.xlu1 %v1530_v45, %s4567_s22  ;;  %1744 = vst [vmem:[#allocation1 + $0x20] ss:$2 sm:$0xff] %v5314_v25  ;;  %s4583_s22 = smov 106  }
 0x1ff   : > { %v1210_v14 = vpop.permute.xlu1 %1209 }
 0x200   : > { %1588 = vrot.lane.b32.xlu0 %v1581_v49, %s4568_s24  ;;  %v1218_v15 = vsel %vm1213_vm1, %v1208_v11, %v1210_v14  ;;  %v1219_v16 = vsel %vm1213_vm1, %v1210_v14, %v1212_v52  ;;  %v1695_v49 = vld.sshfl [vmem:[#allocation1 + $0x18] sm:$0xff pattern:$0x75316420]  ;;  %vm2101_vm1 = vcmask 48128  }
 0x201   : > { %1230 = vst [vmem:[#allocation2 + $0x2e8] sm:$0xf] %v1218_v15 }
 0x202   : > { %1231 = vst [vmem:[#allocation2 + $0x370] sm:$0xf] %v1219_v16  ;;  %v1256_v20 = vpop.permute.xlu0 %1255  ;;  %1592 = vrot.lane.b32.xlu2 %v1583_v53, %s4568_s24  ;;  %v1747_v53 = vld.sshfl [vmem:[#allocation1] sm:$0xff pattern:$0x75316420] }
 0x203   : > { %1742 = vst [vmem:[#allocation1 + $0x10] ss:$2 sm:$0xff] %v5344_v48 }
 0x204   : > { %v5304_v2 = vpop.permute.xlu2 %1318  ;;  %v1752_v0 = vld.sshfl [vmem:[#allocation1 + $0x28] sm:$0xff pattern:$0x75316420]  ;;  %v5365_v4 = vld.sshfl [vmem:[#allocation1 + $0x20] sm:$0xff pattern:$0x75316420] }
 0x205   : > { %1590 = vrot.lane.b32.xlu1 %v5259_v50, %s4568_s24  ;;  %1800 = vst [vmem:[#allocation1 + $0x21] ss:$2 sm:$0xff] %v5314_v25 }
 0x207   : > { %v1258_v22 = vpop.permute.xlu1 %1257 }
 0x208   : > { %1594 = vrot.lane.b32.xlu0 %v5265_v54, %s4568_s24  ;;  %v1270_v23 = vsel %vm1269_vm2, %v1256_v20, %v1258_v22  ;;  %v1271_v24 = vsel %vm1269_vm2, %v1258_v22, %v1260_v1  ;;  %v5351_v54 = vld.sshfl [vmem:[#allocation1 + $0x8] sm:$0xff pattern:$0x75316420]  ;;  %v1753_v20 = vld.sshfl [vmem:[#allocation1 + $0x30] sm:$0xff pattern:$0x75316420] }
 0x209   : > { %1282 = vst [vmem:[#allocation2 + $0x2f8] sm:$0xf0] %v1270_v23 }
 0x20a   : > { %1283 = vst [vmem:[#allocation2 + $0x268] sm:$0xf0] %v1271_v24  ;;  %v1262_v27 = vpop.permute.xlu0 %1261  ;;  %1598 = vrot.lane.b32.xlu2 %v1586_v62, %s4568_s24  ;;  %v1749_v61 = vld.sshfl [vmem:[#allocation1 + $0x10] sm:$0xff pattern:$0x75316420] }
 0x20b   : > { %v1272_v28 = vsel %vm1269_vm2, %v1260_v1, %v1262_v27  ;;  %1796 = vst [vmem:[#allocation1 + $0x1] ss:$2 sm:$0xff] %v5329_v38  ;;  %v1750_v62 = vld.sshfl [vmem:[#allocation1 + $0x18] sm:$0xff pattern:$0x75316420] }
 0x20c   : > { %1284 = vst [vmem:[#allocation2 + $0x560] sm:$0xf0] %v1272_v28  ;;  %v5319_v29 = vpop.permute.xlu2 %1366  ;;  %v5394_v22 = vld.sshfl [vmem:[#allocation1 + $0x28] sm:$0xff pattern:$0x75316420] }
 0x20d   : > { %1596 = vrot.lane.b32.xlu1 %v1585_v63, %s4568_s24  ;;  %1798 = vst [vmem:[#allocation1 + $0x11] ss:$2 sm:$0xff] %v5344_v48 }
 0x20f   : > { %v1264_v30 = vpop.permute.xlu1 %1263 }
 0x210   : > { %1600 = vrot.lane.b32.xlu0 %v1587_v17, %s4568_s24  ;;  %v1273_v32 = vsel %vm1269_vm2, %v1262_v27, %v1264_v30  ;;  %v1274_v33 = vsel %vm1269_vm2, %v1264_v30, %v5285_v7  ;;  %s4584_s24 = smov 105  }
 0x211   : > { %1285 = vst [vmem:[#allocation2 + $0x4f8] sm:$0xf0] %v1273_v32 }
 0x212   : > { %1286 = vst [vmem:[#allocation2 + $0x2e8] sm:$0xf0] %v1274_v33  ;;  %v1268_v35 = vpop.permute.xlu0 %1267  ;;  %1645 = vrot.lane.b32.xlu2 %v1637_v10, %s4569_s25 }
 0x213   : > { %v1275_v39 = vsel %vm1269_vm2, %v5285_v7, %v1268_v35  ;;  %vm2157_vm2 = vcmask 39936  }
 0x214   : > { %1287 = vst [vmem:[#allocation2 + $0x370] sm:$0xf0] %v1275_v39  ;;  %v5333_v42 = vpop.permute.xlu2 %1372  ;;  %v1806_v23 = vld.sshfl [vmem:[#allocation1 + $0x18] sm:$0xff pattern:$0x75316420] }
 0x215   : > { %1643 = vrot.lane.b32.xlu1 %v1636_v12, %s4569_s25  ;;  %v1804_v12 = vld.sshfl [vmem:[#allocation1 + $0x8] sm:$0xff pattern:$0x75316420]  ;;  %v1846_v39 = vld [vmem:[%s4725_s9 + $0x18] sm:$0xf] }
 0x217   : > { %v1311_v45 = vpop.permute.xlu1 %1310 }
 0x218   : > { %1647 = vrot.lane.b32.xlu0 %v1638_v31, %s4569_s25  ;;  %v1325_v46 = vsel %vm1324_vm3, %v1311_v45, %v5296_v3  ;;  %v1805_v31 = vld.sshfl [vmem:[#allocation1 + $0x10] sm:$0xff pattern:$0x75316420] }
 0x219   : > { %1337 = vst [vmem:[#allocation2 + $0x138] sm:$0xf] %v1325_v46 }
 0x21a   : > { %v1315_v50 = vpop.permute.xlu0 %1314  ;;  %1651 = vrot.lane.b32.xlu2 %v1640_v40, %s4569_s25  ;;  %1853 = vst [vmem:[#allocation1 + $0x10] ss:$2 sm:$0xff] %v5344_v48 }
 0x21b   : > { %v1326_v51 = vsel %vm1324_vm3, %v5296_v3, %v1315_v50  ;;  %v1803_v3 = vld.sshfl [vmem:[#allocation1] sm:$0xff pattern:$0x75316420] }
 0x21c   : > { %1338 = vst [vmem:[#allocation2 + $0x308] sm:$0xf] %v1326_v51  ;;  %v1379_v52 = vpop.permute.xlu2 %1378 }
 0x21d   : > { %1649 = vrot.lane.b32.xlu1 %v1639_v21, %s4569_s25  ;;  %1851 = vst [vmem:[#allocation1] ss:$2 sm:$0xff] %v5329_v38  ;;  %v1790_v21 = vld [vmem:[%s4725_s9 + $0x18] sm:$0xf] }
 0x21e   : > { %1802 = vst [vmem:[#allocation1 + $0x31] ss:$2 sm:$0xff] %v1790_v21 }
 0x21f   : > { %v1317_v55 = vpop.permute.xlu1 %1316 }
 0x220   : > { %1653 = vrot.lane.b32.xlu0 %v1641_v26, %s4569_s25  ;;  %v1327_v56 = vsel %vm1324_vm3, %v1315_v50, %v1317_v55  ;;  %v1328_v57 = vsel %vm1324_vm3, %v1317_v55, %v5304_v2  ;;  %v1807_v26 = vld.sshfl [vmem:[#allocation1 + $0x20] sm:$0xff pattern:$0x75316420] }
 0x221   : > { %1339 = vst [vmem:[#allocation2 + $0x528] sm:$0xf] %v1327_v56 }
 0x222   : > { %v1321_v60 = vpop.permute.xlu0 %1320  ;;  %1340 = vst [vmem:[#allocation2 + $0x1c0] sm:$0xf] %v1328_v57  ;;  %1699 = vrot.lane.b32.xlu2 %v1692_v41, %s4570_s27 }
 0x223   : > { %v1329_v1 = vsel %vm1324_vm3, %v5304_v2, %v1321_v60  ;;  %1855 = vst [vmem:[#allocation1 + $0x20] ss:$2 sm:$0xff] %v5314_v25 }
 0x224   : > { %1341 = vst [vmem:[#allocation2 + $0x5d0] sm:$0xf] %v1329_v1  ;;  %v5362_v63 = vpop.permute.xlu2 %1425  ;;  %v1858_v32 = vld.sshfl [vmem:[#allocation1] sm:$0xff pattern:$0x75316420] }
 0x225   : > { %1655 = vrot.lane.b32.xlu1 %v1642_v36, %s4569_s25  ;;  %v1809_v41 = vld.sshfl [vmem:[#allocation1 + $0x30] sm:$0xff pattern:$0x75316420]  ;;  %v1901_v1 = vld [vmem:[%s4725_s9 + $0x18] sm:$0xf]  ;;  %s4585_s25 = smov 104  }
 0x226   : > { %1857 = vst [vmem:[#allocation1 + $0x30] ss:$2 sm:$0xff] %v1846_v39 }
 0x227   : > { %v1323_v5 = vpop.permute.xlu1 %1322 }
 0x228   : > { %1701 = vrot.lane.b32.xlu0 %v1693_v37, %s4570_s27  ;;  %v1330_v6 = vsel %vm1324_vm3, %v1321_v60, %v1323_v5  ;;  %vm2212_vm3 = vcmask 31744  }
 0x229   : > { %1342 = vst [vmem:[#allocation2 + $0x260] sm:$0xf] %v1330_v6 }
 0x22a   : > { %v1369_v7 = vpop.permute.xlu0 %1368  ;;  %1705 = vrot.lane.b32.xlu2 %v1695_v49, %s4570_s27  ;;  %v1862_v45 = vld.sshfl [vmem:[#allocation1 + $0x20] sm:$0xff pattern:$0x75316420]  ;;  %v1863_v49 = vld.sshfl [vmem:[#allocation1 + $0x28] sm:$0xff pattern:$0x75316420] }
 0x22b   : > { %v1381_v19 = vsel %vm1380_vm4, %v5319_v29, %v1369_v7  ;;  %v5406_v29 = vld.sshfl [vmem:[#allocation1 + $0x8] sm:$0xff pattern:$0x75316420]  ;;  %1911 = vst [vmem:[#allocation1 + $0x21] ss:$2 sm:$0xff] %v5314_v25 }
 0x22c   : > { %1393 = vst [vmem:[#allocation2 + $0x138] sm:$0xf0] %v1381_v19  ;;  %v5374_v8 = vpop.permute.xlu2 %1431 }
 0x22d   : > { %1703 = vrot.lane.b32.xlu1 %v1694_v47, %s4570_s27  ;;  %1907 = vst [vmem:[#allocation1 + $0x1] ss:$2 sm:$0xff] %v5329_v38  ;;  %v1861_v47 = vld.sshfl [vmem:[#allocation1 + $0x18] sm:$0xff pattern:$0x75316420] }
 0x22f   : > { %v1371_v9 = vpop.permute.xlu1 %1370 }
 0x230   : > { %1707 = vrot.lane.b32.xlu0 %v1696_v43, %s4570_s27  ;;  %v1382_v10 = vsel %vm1380_vm4, %v1369_v7, %v1371_v9  ;;  %v1383_v11 = vsel %vm1380_vm4, %v1371_v9, %v5333_v42  ;;  %v1860_v43 = vld.sshfl [vmem:[#allocation1 + $0x10] sm:$0xff pattern:$0x75316420] }
 0x231   : > { %1394 = vst [vmem:[#allocation2 + $0x308] sm:$0xf0] %v1382_v10 }
 0x232   : > { %1395 = vst [vmem:[#allocation2 + $0x528] sm:$0xf0] %v1383_v11  ;;  %v1375_v13 = vpop.permute.xlu0 %1374  ;;  %1711 = vrot.lane.b32.xlu2 %v1698_v59, %s4570_s27  ;;  %v1919_v5 = vld.sshfl [vmem:[#allocation1 + $0x28] sm:$0xff pattern:$0x75316420] }
 0x233   : > { %v1384_v14 = vsel %vm1380_vm4, %v5333_v42, %v1375_v13  ;;  %1909 = vst [vmem:[#allocation1 + $0x11] ss:$2 sm:$0xff] %v5344_v48  ;;  %v1918_v6 = vld.sshfl [vmem:[#allocation1 + $0x20] sm:$0xff pattern:$0x75316420] }
 0x234   : > { %1396 = vst [vmem:[#allocation2 + $0x1c0] sm:$0xf0] %v1384_v14  ;;  %v5385_v15 = vpop.permute.xlu2 %1479 }
 0x235   : > { %1709 = vrot.lane.b32.xlu1 %v5336_v44, %s4570_s27  ;;  %1966 = vst [vmem:[#allocation1 + $0x20] ss:$2 sm:$0xff] %v5314_v25  ;;  %s4586_s27 = smov 103  }
 0x237   : > { %v1377_v16 = vpop.permute.xlu1 %1376 }
 0x238   : > { %1754 = vrot.lane.b32.xlu0 %v1747_v53, %s4571_s28  ;;  %v1385_v17 = vsel %vm1380_vm4, %v1375_v13, %v1377_v16  ;;  %v1386_v18 = vsel %vm1380_vm4, %v1377_v16, %v1379_v52  ;;  %v1914_v53 = vld.sshfl [vmem:[#allocation1] sm:$0xff pattern:$0x75316420]  ;;  %vm2268_vm4 = vcmask 23552  }
 0x239   : > { %1397 = vst [vmem:[#allocation2 + $0x5d0] sm:$0xf0] %v1385_v17 }
 0x23a   : > { %1398 = vst [vmem:[#allocation2 + $0x260] sm:$0xf0] %v1386_v18  ;;  %v1422_v2 = vpop.permute.xlu0 %1421  ;;  %1758 = vrot.lane.b32.xlu2 %v1749_v61, %s4571_s28  ;;  %v1916_v57 = vld.sshfl [vmem:[#allocation1 + $0x10] sm:$0xff pattern:$0x75316420] }
 0x23b   : > { %v5439_v58 = vld.sshfl [vmem:[#allocation1 + $0x18] sm:$0xff pattern:$0x75316420] }
 0x23c   : > { %v5396_v24 = vpop.permute.xlu2 %1485  ;;  %1964 = vst [vmem:[#allocation1 + $0x10] ss:$2 sm:$0xff] %v5344_v48 }
 0x23d   : > { %1756 = vrot.lane.b32.xlu1 %v5351_v54, %s4571_s28  ;;  %v5433_v54 = vld.sshfl [vmem:[#allocation1 + $0x8] sm:$0xff pattern:$0x75316420] }
 0x23e   : > { %1962 = vst [vmem:[#allocation1] ss:$2 sm:$0xff] %v5329_v38 }
 0x23f   : > { %v1424_v27 = vpop.permute.xlu1 %1423 }
 0x240   : > { %1760 = vrot.lane.b32.xlu0 %v1750_v62, %s4571_s28  ;;  %v1436_v40 = vsel %vm1435_vm5, %v1422_v2, %v1424_v27  ;;  %v1437_v28 = vsel %vm1435_vm5, %v1424_v27, %v5362_v63 }
 0x241   : > { %1448 = vst [vmem:[#allocation2 + $0x438] sm:$0xf] %v1436_v40  ;;  %v1973_v40 = vld.sshfl [vmem:[#allocation1 + $0x20] sm:$0xff pattern:$0x75316420] }
 0x242   : > { %1449 = vst [vmem:[#allocation2 + $0xf0] sm:$0xf] %v1437_v28  ;;  %v1428_v30 = vpop.permute.xlu0 %1427  ;;  %1764 = vrot.lane.b32.xlu2 %v1752_v0, %s4571_s28 }
 0x243   : > { %v1438_v33 = vsel %vm1435_vm5, %v5362_v63, %v1428_v30  ;;  %v1864_v63 = vld.sshfl [vmem:[#allocation1 + $0x30] sm:$0xff pattern:$0x75316420] }
 0x244   : > { %1450 = vst [vmem:[#allocation2 + $0x60] sm:$0xf] %v1438_v33  ;;  %v5412_v34 = vpop.permute.xlu2 %1532  ;;  %v1971_v2 = vld.sshfl [vmem:[#allocation1 + $0x10] sm:$0xff pattern:$0x75316420] }
 0x245   : > { %1762 = vrot.lane.b32.xlu1 %v5365_v4, %s4571_s28  ;;  %1913 = vst [vmem:[#allocation1 + $0x31] ss:$2 sm:$0xff] %v1901_v1 }
 0x247   : > { %v1430_v35 = vpop.permute.xlu1 %1429 }
 0x248   : > { %1766 = vrot.lane.b32.xlu0 %v1753_v20, %s4571_s28  ;;  %v1439_v36 = vsel %vm1435_vm5, %v1428_v30, %v1430_v35  ;;  %v1440_v37 = vsel %vm1435_vm5, %v1430_v35, %v5374_v8  ;;  %s4587_s28 = smov 102  }
 0x249   : > { %1451 = vst [vmem:[#allocation2 + $0x200] sm:$0xf] %v1439_v36 }
 0x24a   : > { %1452 = vst [vmem:[#allocation2 + $0x80] sm:$0xf] %v1440_v37  ;;  %v1434_v42 = vpop.permute.xlu0 %1433  ;;  %1812 = vrot.lane.b32.xlu2 %v1804_v12, %s4572_s5 }
 0x24b   : > { %v1441_v44 = vsel %vm1435_vm5, %v5374_v8, %v1434_v42  ;;  %v2012_v42 = vld [vmem:[%s4725_s9 + $0x18] sm:$0xf]  ;;  %vm2323_vm5 = vcmask 15360  }
 0x24c   : > { %1453 = vst [vmem:[#allocation2 + $0x5a0] sm:$0xf] %v1441_v44  ;;  %v5424_v46 = vpop.permute.xlu2 %1538  ;;  %v1920_v21 = vld.sshfl [vmem:[#allocation1 + $0x30] sm:$0xff pattern:$0x75316420] }
 0x24d   : > { %1810 = vrot.lane.b32.xlu1 %v1803_v3, %s4572_s5  ;;  %v1970_v3 = vld.sshfl [vmem:[#allocation1 + $0x8] sm:$0xff pattern:$0x75316420] }
 0x24f   : > { %v1478_v50 = vpop.permute.xlu1 %1477 }
 0x250   : > { %1814 = vrot.lane.b32.xlu0 %v1805_v31, %s4572_s5  ;;  %v1492_v51 = vsel %vm1491_vm6, %v1478_v50, %v5385_v15 }
 0x251   : > { %1504 = vst [vmem:[#allocation2 + $0x438] sm:$0xf0] %v1492_v51 }
 0x252   : > { %v1482_v52 = vpop.permute.xlu0 %1481  ;;  %1818 = vrot.lane.b32.xlu2 %v1807_v26, %s4572_s5  ;;  %v1972_v26 = vld.sshfl [vmem:[#allocation1 + $0x18] sm:$0xff pattern:$0x75316420] }
 0x253   : > { %v1493_v55 = vsel %vm1491_vm6, %v5385_v15, %v1482_v52  ;;  %v1969_v15 = vld.sshfl [vmem:[#allocation1] sm:$0xff pattern:$0x75316420]  ;;  %2020 = vst [vmem:[#allocation1 + $0x11] ss:$2 sm:$0xff] %v5344_v48 }
 0x254   : > { %1505 = vst [vmem:[#allocation2 + $0xf0] sm:$0xf0] %v1493_v55  ;;  %v1545_v56 = vpop.permute.xlu2 %1544 }
 0x255   : > { %1816 = vrot.lane.b32.xlu1 %v1806_v23, %s4572_s5  ;;  %2018 = vst [vmem:[#allocation1 + $0x1] ss:$2 sm:$0xff] %v5329_v38 }
 0x257   : > { %v1484_v59 = vpop.permute.xlu1 %1483 }
 0x258   : > { %1820 = vrot.lane.b32.xlu0 %v5394_v22, %s4572_s5  ;;  %v1494_v60 = vsel %vm1491_vm6, %v1482_v52, %v1484_v59  ;;  %v1495_v61 = vsel %vm1491_vm6, %v1484_v59, %v5396_v24  ;;  %v1957_v22 = vld [vmem:[%s4725_s9 + $0x18] sm:$0xf] }
 0x259   : > { %1506 = vst [vmem:[#allocation2 + $0x60] sm:$0xf0] %v1494_v60 }
 0x25a   : > { %v1488_v62 = vpop.permute.xlu0 %1487  ;;  %1507 = vst [vmem:[#allocation2 + $0x200] sm:$0xf0] %v1495_v61  ;;  %1865 = vrot.lane.b32.xlu2 %v1858_v32, %s4573_s6  ;;  %v2028_v50 = vld.sshfl [vmem:[#allocation1 + $0x18] sm:$0xff pattern:$0x75316420] }
 0x25b   : > { %v1496_v0 = vsel %vm1491_vm6, %v5396_v24, %v1488_v62  ;;  %v5480_v24 = vld.sshfl [vmem:[#allocation1 + $0x28] sm:$0xff pattern:$0x75316420]  ;;  %1968 = vst [vmem:[#allocation1 + $0x30] ss:$2 sm:$0xff] %v1957_v22 }
 0x25c   : > { %1508 = vst [vmem:[#allocation2 + $0x80] sm:$0xf0] %v1496_v0  ;;  %v5451_v4 = vpop.permute.xlu2 %1592  ;;  %v5493_v32 = vld.sshfl [vmem:[#allocation1 + $0x8] sm:$0xff pattern:$0x75316420] }
 0x25d   : > { %1822 = vrot.lane.b32.xlu1 %v1809_v41, %s4572_s5  ;;  %2022 = vst [vmem:[#allocation1 + $0x21] ss:$2 sm:$0xff] %v5314_v25  ;;  %s4588_s5 = smov 101  }
 0x25f   : > { %v1490_v7 = vpop.permute.xlu1 %1489 }
 0x260   : > { %1867 = vrot.lane.b32.xlu0 %v5406_v29, %s4573_s6  ;;  %v1497_v19 = vsel %vm1491_vm6, %v1488_v62, %v1490_v7  ;;  %vm2379_vm6 = vcmask 7168  }
 0x261   : > { %1509 = vst [vmem:[#allocation2 + $0x5a0] sm:$0xf0] %v1497_v19 }
 0x262   : > { %v1535_v8 = vpop.permute.xlu0 %1534  ;;  %1871 = vrot.lane.b32.xlu2 %v1861_v47, %s4573_s6 }
 0x263   : > { %v1547_v9 = vsel %vm1546_vm7, %v5412_v34, %v1535_v8  ;;  %v2025_v34 = vld.sshfl [vmem:[#allocation1] sm:$0xff pattern:$0x75316420] }
 0x264   : > { %1559 = vst [vmem:[#allocation2 + $0x4b8] sm:$0xf] %v1547_v9  ;;  %v5461_v10 = vpop.permute.xlu2 %1598  ;;  %v2029_v47 = vld.sshfl [vmem:[#allocation1 + $0x20] sm:$0xff pattern:$0x75316420] }
 0x265   : > { %1869 = vrot.lane.b32.xlu1 %v1860_v43, %s4573_s6  ;;  %2073 = vst [vmem:[#allocation1] ss:$2 sm:$0xff] %v5329_v38  ;;  %v1975_v43 = vld.sshfl [vmem:[#allocation1 + $0x30] sm:$0xff pattern:$0x75316420] }
 0x266   : > { %2024 = vst [vmem:[#allocation1 + $0x31] ss:$2 sm:$0xff] %v2012_v42  ;;  %v2030_v51 = vld.sshfl [vmem:[#allocation1 + $0x28] sm:$0xff pattern:$0x75316420] }
 0x267   : > { %v1537_v11 = vpop.permute.xlu1 %1536  ;;  %2077 = vst [vmem:[#allocation1 + $0x20] ss:$2 sm:$0xff] %v5314_v25 }
 0x268   : > { %1873 = vrot.lane.b32.xlu0 %v1862_v45, %s4573_s6  ;;  %v1548_v12 = vsel %vm1546_vm7, %v1535_v8, %v1537_v11  ;;  %v1549_v13 = vsel %vm1546_vm7, %v1537_v11, %v5424_v46  ;;  %v2027_v45 = vld.sshfl [vmem:[#allocation1 + $0x10] sm:$0xff pattern:$0x75316420] }
 0x269   : > { %1560 = vst [vmem:[#allocation2 + $0x310] sm:$0xf] %v1548_v12 }
 0x26a   : > { %1561 = vst [vmem:[#allocation2 + $0x1e8] sm:$0xf] %v1549_v13  ;;  %v1541_v14 = vpop.permute.xlu0 %1540  ;;  %1877 = vrot.lane.b32.xlu2 %v1864_v63, %s4573_s6  ;;  %v2068_v63 = vld [vmem:[%s4725_s9 + $0x18] sm:$0xf] }
 0x26b   : > { %v1550_v16 = vsel %vm1546_vm7, %v5424_v46, %v1541_v14  ;;  %2075 = vst [vmem:[#allocation1 + $0x10] ss:$2 sm:$0xff] %v5344_v48 }
 0x26c   : > { %1562 = vst [vmem:[#allocation2 + $0x258] sm:$0xf] %v1550_v16  ;;  %v5472_v17 = vpop.permute.xlu2 %1645  ;;  %v2080_v55 = vld.sshfl [vmem:[#allocation1] sm:$0xff pattern:$0x75316420] }
 0x26d   : > { %1875 = vrot.lane.b32.xlu1 %v1863_v49, %s4573_s6  ;;  %s4589_s6 = smov 100  }
 0x26e   : > { %v2085_v7 = vld.sshfl [vmem:[#allocation1 + $0x28] sm:$0xff pattern:$0x75316420]  ;;  %v2084_v19 = vld.sshfl [vmem:[#allocation1 + $0x20] sm:$0xff pattern:$0x75316420] }
 0x26f   : > { %v1543_v18 = vpop.permute.xlu1 %1542  ;;  %2133 = vst [vmem:[#allocation1 + $0x21] ss:$2 sm:$0xff] %v5314_v25 }
 0x270   : > { %1921 = vrot.lane.b32.xlu0 %v1914_v53, %s4574_s7  ;;  %v1551_v20 = vsel %vm1546_vm7, %v1541_v14, %v1543_v18  ;;  %v1552_v31 = vsel %vm1546_vm7, %v1543_v18, %v1545_v56  ;;  %v5519_v56 = vld.sshfl [vmem:[#allocation1 + $0x8] sm:$0xff pattern:$0x75316420]  ;;  %vm2434_vm7 = vcmask 867328  }
 0x271   : > { %1563 = vst [vmem:[#allocation2 + $0x40] sm:$0xf] %v1551_v20 }
 0x272   : > { %1564 = vst [vmem:[#allocation2 + $0x4e0] sm:$0xf] %v1552_v31  ;;  %v1589_v23 = vpop.permute.xlu0 %1588  ;;  %1925 = vrot.lane.b32.xlu2 %v1916_v57, %s4574_s7  ;;  %v2082_v59 = vld.sshfl [vmem:[#allocation1 + $0x10] sm:$0xff pattern:$0x75316420] }
 0x273   : > { %2129 = vst [vmem:[#allocation1 + $0x1] ss:$2 sm:$0xff] %v5329_v38  ;;  %v5525_v60 = vld.sshfl [vmem:[#allocation1 + $0x18] sm:$0xff pattern:$0x75316420] }
 0x274   : > { %v5482_v27 = vpop.permute.xlu2 %1651  ;;  %2131 = vst [vmem:[#allocation1 + $0x11] ss:$2 sm:$0xff] %v5344_v48 }
 0x275   : > { %1923 = vrot.lane.b32.xlu1 %v5433_v54, %s4574_s7 }
 0x277   : > { %v1591_v28 = vpop.permute.xlu1 %1590 }
 0x278   : > { %1927 = vrot.lane.b32.xlu0 %v5439_v58, %s4574_s7  ;;  %v1603_v29 = vsel %vm1602_vm8, %v1589_v23, %v1591_v28  ;;  %v1604_v30 = vsel %vm1602_vm8, %v1591_v28, %v5451_v4 }
 0x279   : > { %1615 = vst [vmem:[#allocation2 + $0x4b8] sm:$0xf0] %v1603_v29  ;;  %v2140_v29 = vld.sshfl [vmem:[#allocation1 + $0x20] sm:$0xff pattern:$0x75316420] }
 0x27a   : > { %1616 = vst [vmem:[#allocation2 + $0x310] sm:$0xf0] %v1604_v30  ;;  %v1595_v33 = vpop.permute.xlu0 %1594  ;;  %1931 = vrot.lane.b32.xlu2 %v1919_v5, %s4574_s7 }
 0x27b   : > { %v1605_v35 = vsel %vm1602_vm8, %v5451_v4, %v1595_v33  ;;  %v2031_v4 = vld.sshfl [vmem:[#allocation1 + $0x30] sm:$0xff pattern:$0x75316420] }
 0x27c   : > { %1617 = vst [vmem:[#allocation2 + $0x1e8] sm:$0xf0] %v1605_v35  ;;  %v5499_v36 = vpop.permute.xlu2 %1699  ;;  %v2138_v23 = vld.sshfl [vmem:[#allocation1 + $0x10] sm:$0xff pattern:$0x75316420] }
 0x27d   : > { %1929 = vrot.lane.b32.xlu1 %v1918_v6, %s4574_s7  ;;  %2079 = vst [vmem:[#allocation1 + $0x30] ss:$2 sm:$0xff] %v2068_v63 }
 0x27f   : > { %v1597_v37 = vpop.permute.xlu1 %1596 }
 0x280   : > { %1933 = vrot.lane.b32.xlu0 %v1920_v21, %s4574_s7  ;;  %v1606_v39 = vsel %vm1602_vm8, %v1595_v33, %v1597_v37  ;;  %v1607_v41 = vsel %vm1602_vm8, %v1597_v37, %v5461_v10  ;;  %s4590_s7 = smov 99  }
 0x281   : > { %1618 = vst [vmem:[#allocation2 + $0x258] sm:$0xf0] %v1606_v39 }
 0x282   : > { %1619 = vst [vmem:[#allocation2 + $0x40] sm:$0xf0] %v1607_v41  ;;  %v1601_v44 = vpop.permute.xlu0 %1600  ;;  %1978 = vrot.lane.b32.xlu2 %v1970_v3, %s4575_s8 }
 0x283   : > { %v1608_v46 = vsel %vm1602_vm8, %v5461_v10, %v1601_v44  ;;  %v2179_v44 = vld [vmem:[%s4725_s9 + $0x18] sm:$0xf]  ;;  %vm2490_vm8 = vcmask 859136  }
 0x284   : > { %1620 = vst [vmem:[#allocation2 + $0x4e0] sm:$0xf0] %v1608_v46  ;;  %v5510_v49 = vpop.permute.xlu2 %1705  ;;  %v2086_v22 = vld.sshfl [vmem:[#allocation1 + $0x30] sm:$0xff pattern:$0x75316420] }
 0x285   : > { %1976 = vrot.lane.b32.xlu1 %v1969_v15, %s4575_s8  ;;  %v2137_v15 = vld.sshfl [vmem:[#allocation1 + $0x8] sm:$0xff pattern:$0x75316420] }
 0x287   : > { %v1644_v52 = vpop.permute.xlu1 %1643 }
 0x288   : > { %1980 = vrot.lane.b32.xlu0 %v1971_v2, %s4575_s8  ;;  %v1658_v53 = vsel %vm1657_vm9, %v1644_v52, %v5472_v17 }
 0x289   : > { %1670 = vst [vmem:[#allocation2 + $0x198] sm:$0xf] %v1658_v53 }
 0x28a   : > { %v1648_v54 = vpop.permute.xlu0 %1647  ;;  %1984 = vrot.lane.b32.xlu2 %v1973_v40, %s4575_s8  ;;  %v2139_v40 = vld.sshfl [vmem:[#allocation1 + $0x18] sm:$0xff pattern:$0x75316420] }
 0x28b   : > { %v1659_v57 = vsel %vm1657_vm9, %v5472_v17, %v1648_v54  ;;  %v2136_v17 = vld.sshfl [vmem:[#allocation1] sm:$0xff pattern:$0x75316420]  ;;  %2186 = vst [vmem:[#allocation1 + $0x10] ss:$2 sm:$0xff] %v5344_v48 }
 0x28c   : > { %1671 = vst [vmem:[#allocation2 + $0x550] sm:$0xf] %v1659_v57  ;;  %v1712_v58 = vpop.permute.xlu2 %1711 }
 0x28d   : > { %1982 = vrot.lane.b32.xlu1 %v1972_v26, %s4575_s8  ;;  %2184 = vst [vmem:[#allocation1] ss:$2 sm:$0xff] %v5329_v38 }
 0x28f   : > { %v1650_v61 = vpop.permute.xlu1 %1649 }
 0x290   : > { %1986 = vrot.lane.b32.xlu0 %v5480_v24, %s4575_s8  ;;  %v1660_v1 = vsel %vm1657_vm9, %v1648_v54, %v1650_v61  ;;  %v1661_v62 = vsel %vm1657_vm9, %v1650_v61, %v5482_v27  ;;  %v2123_v24 = vld [vmem:[%s4725_s9 + $0x18] sm:$0xf] }
 0x291   : > { %1672 = vst [vmem:[#allocation2 + $0x418] sm:$0xf] %v1660_v1 }
 0x292   : > { %v1654_v0 = vpop.permute.xlu0 %1653  ;;  %1673 = vst [vmem:[#allocation2 + $0x5c8] sm:$0xf] %v1661_v62  ;;  %2032 = vrot.lane.b32.xlu2 %v2025_v34, %s4576_s18  ;;  %v2194_v52 = vld.sshfl [vmem:[#allocation1 + $0x18] sm:$0xff pattern:$0x75316420] }
 0x293   : > { %v1662_v5 = vsel %vm1657_vm9, %v5482_v27, %v1654_v0  ;;  %v5566_v27 = vld.sshfl [vmem:[#allocation1 + $0x28] sm:$0xff pattern:$0x75316420]  ;;  %2135 = vst [vmem:[#allocation1 + $0x31] ss:$2 sm:$0xff] %v2123_v24 }
 0x294   : > { %1674 = vst [vmem:[#allocation2 + $0x340] sm:$0xf] %v1662_v5  ;;  %v5537_v6 = vpop.permute.xlu2 %1758  ;;  %v5579_v34 = vld.sshfl [vmem:[#allocation1 + $0x8] sm:$0xff pattern:$0x75316420] }
 0x295   : > { %1988 = vrot.lane.b32.xlu1 %v1975_v43, %s4575_s8  ;;  %2188 = vst [vmem:[#allocation1 + $0x20] ss:$2 sm:$0xff] %v5314_v25  ;;  %s4591_s8 = smov 76  }
 0x297   : > { %v1656_v8 = vpop.permute.xlu1 %1655 }
 0x298   : > { %2034 = vrot.lane.b32.xlu0 %v5493_v32, %s4576_s18  ;;  %v1663_v9 = vsel %vm1657_vm9, %v1654_v0, %v1656_v8  ;;  %vm2545_vm9 = vcmask 850944  }
 0x299   : > { %1675 = vst [vmem:[#allocation2 + $0x360] sm:$0xf] %v1663_v9 }
 0x29a   : > { %v1702_v10 = vpop.permute.xlu0 %1701  ;;  %2038 = vrot.lane.b32.xlu2 %v2028_v50, %s4576_s18 }
 0x29b   : > { %v1714_v11 = vsel %vm1713_vm10, %v5499_v36, %v1702_v10  ;;  %v2191_v36 = vld.sshfl [vmem:[#allocation1] sm:$0xff pattern:$0x75316420] }
 0x29c   : > { %1726 = vst [vmem:[#allocation2 + $0x198] sm:$0xf0] %v1714_v11  ;;  %v5547_v12 = vpop.permute.xlu2 %1764  ;;  %v2195_v50 = vld.sshfl [vmem:[#allocation1 + $0x20] sm:$0xff pattern:$0x75316420] }
 0x29d   : > { %2036 = vrot.lane.b32.xlu1 %v2027_v45, %s4576_s18  ;;  %2240 = vst [vmem:[#allocation1 + $0x1] ss:$2 sm:$0xff] %v5329_v38  ;;  %v2142_v45 = vld.sshfl [vmem:[#allocation1 + $0x30] sm:$0xff pattern:$0x75316420] }
 0x29e   : > { %2190 = vst [vmem:[#allocation1 + $0x30] ss:$2 sm:$0xff] %v2179_v44  ;;  %v2196_v53 = vld.sshfl [vmem:[#allocation1 + $0x28] sm:$0xff pattern:$0x75316420] }
 0x29f   : > { %v1704_v13 = vpop.permute.xlu1 %1703  ;;  %2244 = vst [vmem:[#allocation1 + $0x21] ss:$2 sm:$0xff] %v5314_v25 }
 0x2a0   : > { %2040 = vrot.lane.b32.xlu0 %v2029_v47, %s4576_s18  ;;  %v1715_v3 = vsel %vm1713_vm10, %v1702_v10, %v1704_v13  ;;  %v1716_v14 = vsel %vm1713_vm10, %v1704_v13, %v5510_v49  ;;  %v2193_v47 = vld.sshfl [vmem:[#allocation1 + $0x10] sm:$0xff pattern:$0x75316420] }
 0x2a1   : > { %1727 = vst [vmem:[#allocation2 + $0x550] sm:$0xf0] %v1715_v3 }
 0x2a2   : > { %1728 = vst [vmem:[#allocation2 + $0x418] sm:$0xf0] %v1716_v14  ;;  %v1708_v16 = vpop.permute.xlu0 %1707  ;;  %2044 = vrot.lane.b32.xlu2 %v2031_v4, %s4576_s18  ;;  %v2234_v4 = vld [vmem:[%s4725_s9 + $0x18] sm:$0xf] }
 0x2a3   : > { %v1717_v18 = vsel %vm1713_vm10, %v5510_v49, %v1708_v16  ;;  %2242 = vst [vmem:[#allocation1 + $0x11] ss:$2 sm:$0xff] %v5344_v48 }
 0x2a4   : > { %1729 = vst [vmem:[#allocation2 + $0x5c8] sm:$0xf0] %v1717_v18  ;;  %v5558_v20 = vpop.permute.xlu2 %1812  ;;  %v2247_v57 = vld.sshfl [vmem:[#allocation1] sm:$0xff pattern:$0x75316420] }
 0x2a5   : > { %2042 = vrot.lane.b32.xlu1 %v2030_v51, %s4576_s18  ;;  %v2197_v5 = vld.sshfl [vmem:[#allocation1 + $0x30] sm:$0xff pattern:$0x75316420]  ;;  %s4592_s18 = smov 75  }
 0x2a6   : > { %2246 = vst [vmem:[#allocation1 + $0x31] ss:$2 sm:$0xff] %v2234_v4  ;;  %v3799_v4 = vld [vmem:[#allocation2 + $0xf0] sm:$0xff] }
 0x2a7   : > { %v1710_v31 = vpop.permute.xlu1 %1709 }
 0x2a8   : > { %2087 = vrot.lane.b32.xlu0 %v2080_v55, %s4577_s23  ;;  %v1718_v21 = vsel %vm1713_vm10, %v1708_v16, %v1710_v31  ;;  %v1719_v2 = vsel %vm1713_vm10, %v1710_v31, %v1712_v58  ;;  %v5603_v58 = vld.sshfl [vmem:[#allocation1 + $0x8] sm:$0xff pattern:$0x75316420]  ;;  %vm2601_vm10 = vcmask 842752  }
 0x2a9   : > { %1730 = vst [vmem:[#allocation2 + $0x340] sm:$0xf0] %v1718_v21  ;;  %v2290_v21 = vld [vmem:[%s4725_s9 + $0x18] sm:$0xf] }
 0x2aa   : > { %1731 = vst [vmem:[#allocation2 + $0x360] sm:$0xf0] %v1719_v2  ;;  %v1755_v26 = vpop.permute.xlu0 %1754  ;;  %2091 = vrot.lane.b32.xlu2 %v2082_v59, %s4577_s23  ;;  %v2249_v61 = vld.sshfl [vmem:[#allocation1 + $0x10] sm:$0xff pattern:$0x75316420]  ;;  %v2342_v2 = vld [vmem:[%s4725_s9] sm:$0xff] }
 0x2ab   : > { %2295 = vst [vmem:[#allocation1] ss:$2 sm:$0xff] %v5329_v38  ;;  %v5609_v1 = vld.sshfl [vmem:[#allocation1 + $0x18] sm:$0xff pattern:$0x75316420] }
 0x2ac   : > { %v5568_v28 = vpop.permute.xlu2 %1818  ;;  %2297 = vst [vmem:[#allocation1 + $0x10] ss:$2 sm:$0xff] %v5344_v48 }
 0x2ad   : > { %2089 = vrot.lane.b32.xlu1 %v5519_v56, %s4577_s23  ;;  %v2253_v31 = vld.sshfl [vmem:[#allocation1 + $0x30] sm:$0xff pattern:$0x75316420] }
 0x2ae   : > { %2301 = vst [vmem:[#allocation1 + $0x30] ss:$2 sm:$0xff] %v2290_v21  ;;  %v3768_v21 = vld [vmem:[#allocation2 + $0x598] sm:$0xff] }
 0x2af   : > { %v1757_v30 = vpop.permute.xlu1 %1756 }
 0x2b0   : > { %2093 = vrot.lane.b32.xlu0 %v5525_v60, %s4577_s23  ;;  %v1769_v32 = vsel %vm1768_vm11, %v1755_v26, %v1757_v30  ;;  %v1770_v33 = vsel %vm1768_vm11, %v1757_v30, %v5537_v6 }
 0x2b1   : > { %1781 = vst [vmem:[#allocation2 + $0x3b8] sm:$0xf] %v1769_v32  ;;  %v2343_v32 = vld [vmem:[%s4725_s9 + $0x8] sm:$0xff] }
 0x2b2   : > { %1782 = vst [vmem:[#allocation2 + $0x530] sm:$0xf] %v1770_v33  ;;  %v1761_v35 = vpop.permute.xlu0 %1760  ;;  %2097 = vrot.lane.b32.xlu2 %v2085_v7, %s4577_s23  ;;  %v2252_v7 = vld.sshfl [vmem:[#allocation1 + $0x28] sm:$0xff pattern:$0x75316420] }
 0x2b3   : > { %v1771_v37 = vsel %vm1768_vm11, %v5537_v6, %v1761_v35  ;;  %v2302_v24 = vld.sshfl [vmem:[#allocation1] sm:$0xff pattern:$0x75316420]  ;;  %v2304_v30 = vld.sshfl [vmem:[#allocation1 + $0x10] sm:$0xff pattern:$0x75316420] }
 0x2b4   : > { %1783 = vst [vmem:[#allocation2 + $0x1f0] sm:$0xf] %v1771_v37  ;;  %v5585_v39 = vpop.permute.xlu2 %1865  ;;  %v5662_v37 = vld.sshfl [vmem:[#allocation1 + $0x18] sm:$0xff pattern:$0x75316420] }
 0x2b5   : > { %2095 = vrot.lane.b32.xlu1 %v2084_v19, %s4577_s23  ;;  %v2251_v19 = vld.sshfl [vmem:[#allocation1 + $0x20] sm:$0xff pattern:$0x75316420]  ;;  %2353 = vst [vmem:[#allocation1 + $0x11] ss:$2 sm:$0xff] %v2343_v32  ;;  %v3757_v32 = vld [vmem:[#allocation2 + $0xc8] sm:$0xff] }
 0x2b6   : > { %2299 = vst [vmem:[#allocation1 + $0x20] ss:$2 sm:$0xff] %v5314_v25 }
 0x2b7   : > { %v1763_v41 = vpop.permute.xlu1 %1762 }
 0x2b8   : > { %2099 = vrot.lane.b32.xlu0 %v2086_v22, %s4577_s23  ;;  %v1772_v42 = vsel %vm1768_vm11, %v1761_v35, %v1763_v41  ;;  %v1773_v43 = vsel %vm1768_vm11, %v1763_v41, %v5547_v12  ;;  %v2344_v35 = vld [vmem:[%s4725_s9 + $0x10] sm:$0xff]  ;;  %s4593_s23 = smov 74  }
 0x2b9   : > { %1784 = vst [vmem:[#allocation2 + $0x3a0] sm:$0xf] %v1772_v42 }
 0x2ba   : > { %1785 = vst [vmem:[#allocation2 + $0x460] sm:$0xf] %v1773_v43  ;;  %v1767_v46 = vpop.permute.xlu0 %1766  ;;  %2145 = vrot.lane.b32.xlu2 %v2137_v15, %s4578_s10 }
 0x2bb   : > { %v1774_v49 = vsel %vm1768_vm11, %v5547_v12, %v1767_v46  ;;  %vm2656_vm11 = vcmask 834560  }
 0x2bc   : > { %1786 = vst [vmem:[#allocation2 + $0x2c8] sm:$0xf] %v1774_v49  ;;  %v1872_v51 = vpop.permute.xlu2 %1871 }
 0x2bd   : > { %2143 = vrot.lane.b32.xlu1 %v2136_v17, %s4578_s10 }
 0x2bf   : > { %v1811_v54 = vpop.permute.xlu1 %1810 }
 0x2c0   : > { %2147 = vrot.lane.b32.xlu0 %v2138_v23, %s4578_s10  ;;  %v1825_v55 = vsel %vm1824_vm12, %v1811_v54, %v5558_v20  ;;  %v2303_v23 = vld.sshfl [vmem:[#allocation1 + $0x8] sm:$0xff pattern:$0x75316420]  ;;  %v3810_v54 = vld [vmem:[#allocation2 + $0x198] sm:$0xff] }
 0x2c1   : > { %1837 = vst [vmem:[#allocation2 + $0x3b8] sm:$0xf0] %v1825_v55  ;;  %v3811_v55 = vld [vmem:[#allocation2 + $0x550] sm:$0xff] }
 0x2c2   : > { %v1815_v56 = vpop.permute.xlu0 %1814  ;;  %2151 = vrot.lane.b32.xlu2 %v2140_v29, %s4578_s10  ;;  %2351 = vst [vmem:[#allocation1 + $0x1] ss:$2 sm:$0xff] %v2342_v2  ;;  %v2401_v2 = vld [vmem:[%s4725_s9 + $0x1c] sm:$0xf] }
 0x2c3   : > { %v1826_v59 = vsel %vm1824_vm12, %v5558_v20, %v1815_v56 }
 0x2c4   : > { %1838 = vst [vmem:[#allocation2 + $0x530] sm:$0xf0] %v1826_v59  ;;  %v1878_v60 = vpop.permute.xlu2 %1877  ;;  %v3804_v59 = vld [vmem:[#allocation2 + $0x4b8] sm:$0xff] }
 0x2c5   : > { %2149 = vrot.lane.b32.xlu1 %v2139_v40, %s4578_s10 }
 0x2c7   : > { %v1817_v62 = vpop.permute.xlu1 %1816 }
 0x2c8   : > { %2153 = vrot.lane.b32.xlu0 %v5566_v27, %s4578_s10  ;;  %v1827_v63 = vsel %vm1824_vm12, %v1815_v56, %v1817_v62  ;;  %v1828_v0 = vsel %vm1824_vm12, %v1817_v62, %v5568_v28  ;;  %v3816_v49 = vld [vmem:[#allocation2 + $0x3b8] sm:$0xff] }
 0x2c9   : > { %1839 = vst [vmem:[#allocation2 + $0x1f0] sm:$0xf0] %v1827_v63  ;;  %v3798_v62 = vld [vmem:[#allocation2 + $0x438] sm:$0xff]  ;;  %v5687_v63 = vld.sshfl [vmem:[#allocation1 + $0x10] sm:$0xff pattern:$0x75316420] }
 0x2ca   : > { %v1821_v38 = vpop.permute.xlu0 %1820  ;;  %1840 = vst [vmem:[#allocation2 + $0x3a0] sm:$0xf0] %v1828_v0  ;;  %2198 = vrot.lane.b32.xlu2 %v2191_v36, %s4579_s11  ;;  %v5690_v0 = vld [vmem:[%s4725_s9 + $0xc] sm:$0xff] }
 0x2cb   : > { %v1829_v48 = vsel %vm1824_vm12, %v5568_v28, %v1821_v38 }
 0x2cc   : > { %1841 = vst [vmem:[#allocation2 + $0x460] sm:$0xf0] %v1829_v48  ;;  %v1926_v6 = vpop.permute.xlu2 %1925  ;;  %v3792_v48 = vld [vmem:[#allocation2 + $0x138] sm:$0xff] }
 0x2cd   : > { %2155 = vrot.lane.b32.xlu1 %v2142_v45, %s4578_s10  ;;  %v2345_v45 = vld [vmem:[%s4725_s9 + $0x18] sm:$0xf]  ;;  %s4594_s10 = smov 73  }
 0x2cf   : > { %v1823_v8 = vpop.permute.xlu1 %1822 }
 0x2d0   : > { %2200 = vrot.lane.b32.xlu0 %v5579_v34, %s4579_s11  ;;  %v1830_v9 = vsel %vm1824_vm12, %v1821_v38, %v1823_v8  ;;  %v5657_v34 = vld.sshfl [vmem:[#allocation1 + $0x28] sm:$0xff pattern:$0x75316420]  ;;  %v5692_v38 = vld.sshfl [vmem:[#allocation1 + $0x18] sm:$0xff pattern:$0x75316420] }
 0x2d1   : > { %1842 = vst [vmem:[#allocation2 + $0x2c8] sm:$0xf0] %v1830_v9  ;;  %v3787_v8 = vld [vmem:[#allocation2 + $0x268] sm:$0xff]  ;;  %vm2712_vm12 = vcmask 826368  }
 0x2d2   : > { %v1868_v10 = vpop.permute.xlu0 %1867  ;;  %2204 = vrot.lane.b32.xlu2 %v2194_v52, %s4579_s11  ;;  %v3817_v52 = vld [vmem:[#allocation2 + $0x530] sm:$0xff]  ;;  %2408 = vst [vmem:[#allocation1 + $0x10] ss:$2 sm:$0xff] %v5690_v0 }
 0x2d3   : > { %v1880_v11 = vsel %vm1879_vm13, %v5585_v39, %v1868_v10  ;;  %v2306_v39 = vld.sshfl [vmem:[#allocation1 + $0x20] sm:$0xff pattern:$0x75316420] }
 0x2d4   : > { %1892 = vst [vmem:[#allocation2 + $0x1d0] sm:$0xf] %v1880_v11  ;;  %v5629_v12 = vpop.permute.xlu2 %1931 }
 0x2d5   : > { %2202 = vrot.lane.b32.xlu1 %v2193_v47, %s4579_s11  ;;  %2355 = vst [vmem:[#allocation1 + $0x21] ss:$2 sm:$0xff] %v2344_v35  ;;  %v3750_v35 = vld [vmem:[#allocation2 + $0x540] sm:$0xff] }
 0x2d7   : > { %v1870_v25 = vpop.permute.xlu1 %1869 }
 0x2d8   : > { %2206 = vrot.lane.b32.xlu0 %v2195_v50, %s4579_s11  ;;  %v1881_v13 = vsel %vm1879_vm13, %v1868_v10, %v1870_v25  ;;  %v1882_v3 = vsel %vm1879_vm13, %v1870_v25, %v1872_v51  ;;  %v5671_v50 = vld.sshfl [vmem:[#allocation1 + $0x30] sm:$0xff pattern:$0x75316420]  ;;  %v3781_v25 = vld [vmem:[#allocation2 + $0x4b0] sm:$0xff] }
 0x2d9   : > { %1893 = vst [vmem:[#allocation2 + $0x4f0] sm:$0xf] %v1881_v13 }
 0x2da   : > { %1894 = vst [vmem:[#allocation2 + $0x50] sm:$0xf] %v1882_v3  ;;  %v1874_v14 = vpop.permute.xlu0 %1873  ;;  %2210 = vrot.lane.b32.xlu2 %v2197_v5, %s4579_s11 }
 0x2db   : > { %v1883_v15 = vsel %vm1879_vm13, %v1872_v51, %v1874_v14  ;;  %2357 = vst [vmem:[#allocation1 + $0x31] ss:$2 sm:$0xff] %v2345_v45  ;;  %v3745_v45 = vld [vmem:[#allocation2 + $0x500] sm:$0xff] }
 0x2dc   : > { %1895 = vst [vmem:[#allocation2 + $0x4a0] sm:$0xf] %v1883_v15  ;;  %v5637_v16 = vpop.permute.xlu2 %1978  ;;  %v3774_v15 = vld [vmem:[#allocation2 + $0x3c8] sm:$0xff] }
 0x2dd   : > { %2208 = vrot.lane.b32.xlu1 %v2196_v53, %s4579_s11  ;;  %v5676_v53 = vld [vmem:[%s4725_s9 + $0x4] sm:$0xff]  ;;  %s4595_s11 = smov 72  }
 0x2df   : > { %v1876_v17 = vpop.permute.xlu1 %1875 }
 0x2e0   : > { %2254 = vrot.lane.b32.xlu0 %v2247_v57, %s4580_s17  ;;  %v1884_v18 = vsel %vm1879_vm13, %v1874_v14, %v1876_v17  ;;  %v1885_v20 = vsel %vm1879_vm13, %v1876_v17, %v1878_v60  ;;  %v5681_v57 = vld.sshfl [vmem:[#allocation1 + $0x8] sm:$0xff pattern:$0x75316420]  ;;  %v3805_v60 = vld [vmem:[#allocation2 + $0x310] sm:$0xff]  ;;  %vm2767_vm13 = vcmask 818176  }
 0x2e1   : > { %1896 = vst [vmem:[#allocation2 + $0x468] sm:$0xf] %v1884_v18  ;;  %v5715_v17 = vld [vmem:[%s4725_s9 + $0x14] sm:$0xff]  ;;  %v3775_v18 = vld [vmem:[#allocation2 + $0x5c0] sm:$0xff] }
 0x2e2   : > { %1897 = vst [vmem:[#allocation2 + $0x278] sm:$0xf] %v1885_v20  ;;  %v1922_v22 = vpop.permute.xlu0 %1921  ;;  %2258 = vrot.lane.b32.xlu2 %v2249_v61, %s4580_s17  ;;  %v5717_v20 = vld.sshfl [vmem:[#allocation1 + $0x28] sm:$0xff pattern:$0x75316420] }
 0x2e4   : > { %v5646_v26 = vpop.permute.xlu2 %1984 }
 0x2e5   : > { %2256 = vrot.lane.b32.xlu1 %v5603_v58, %s4580_s17  ;;  %v2358_v58 = vld.sshfl [vmem:[#allocation1] sm:$0xff pattern:$0x75316420] }
 0x2e6   : > { %2406 = vst [vmem:[#allocation1] ss:$2 sm:$0xff] %v5676_v53 }
 0x2e7   : > { %v1924_v27 = vpop.permute.xlu1 %1923 }
 0x2e8   : > { %2260 = vrot.lane.b32.xlu0 %v5609_v1, %s4580_s17  ;;  %v1936_v40 = vsel %vm1935_vm14, %v1922_v22, %v1924_v27  ;;  %v1937_v28 = vsel %vm1935_vm14, %v1924_v27, %v1926_v6  ;;  %v3762_v27 = vld [vmem:[#allocation2 + $0x488] sm:$0xff] }
 0x2e9   : > { %1948 = vst [vmem:[#allocation2 + $0x1d0] sm:$0xf0] %v1936_v40 }
 0x2ea   : > { %1949 = vst [vmem:[#allocation2 + $0x4f0] sm:$0xf0] %v1937_v28  ;;  %v1928_v29 = vpop.permute.xlu0 %1927  ;;  %2264 = vrot.lane.b32.xlu2 %v2252_v7, %s4580_s17  ;;  %v3793_v7 = vld [vmem:[#allocation2 + $0x308] sm:$0xff] }
 0x2eb   : > { %v1938_v33 = vsel %vm1935_vm14, %v1926_v6, %v1928_v29  ;;  %v5726_v28 = vld.sshfl [vmem:[#allocation1 + $0x10] sm:$0xff pattern:$0x75316420] }
 0x2ec   : > { %1950 = vst [vmem:[#allocation2 + $0x50] sm:$0xf0] %v1938_v33  ;;  %v5660_v36 = vpop.permute.xlu2 %2032 }
 0x2ed   : > { %2262 = vrot.lane.b32.xlu1 %v2251_v19, %s4580_s17  ;;  %v3786_v19 = vld [vmem:[#allocation2 + $0x2f8] sm:$0xff]  ;;  %v5704_v11 = vld.sshfl [vmem:[#allocation1 + $0x8] sm:$0xff pattern:$0x75316420] }
 0x2ee   : > { %v5702_v10 = vld.sshfl [vmem:[#allocation1] sm:$0xff pattern:$0x75316420] }
 0x2ef   : > { %v1930_v41 = vpop.permute.xlu1 %1929  ;;  %2462 = vst [vmem:[#allocation1 + $0x1] ss:$2 sm:$0xff] %v5676_v53 }
 0x2f0   : > { %2266 = vrot.lane.b32.xlu0 %v2253_v31, %s4580_s17  ;;  %v1939_v42 = vsel %vm1935_vm14, %v1928_v29, %v1930_v41  ;;  %v1940_v43 = vsel %vm1935_vm14, %v1930_v41, %v5629_v12  ;;  %v3822_v44 = vld [vmem:[#allocation2 + $0x1d0] sm:$0xff]  ;;  %s4596_s17 = smov 40  }
 0x2f1   : > { %1951 = vst [vmem:[#allocation2 + $0x4a0] sm:$0xf0] %v1939_v42  ;;  %3930 = vmatpush.msra.mxu0 %v3822_v44  ;;  %v3823_v46 = vld [vmem:[#allocation2 + $0x4f0] sm:$0xff] }
 0x2f2   : > { %1952 = vst [vmem:[#allocation2 + $0x468] sm:$0xf0] %v1940_v43  ;;  %v1934_v47 = vpop.permute.xlu0 %1933  ;;  %3970 = vmatpush.msra.mxu2 %v3823_v46  ;;  %2311 = vrot.lane.b32.xlu2 %v2303_v23, %s4581_s20  ;;  %v3769_v23 = vld [vmem:[#allocation2 + $0x5a8] sm:$0xff]  ;;  %v3763_v29 = vld [vmem:[#allocation2 + $0x4d0] sm:$0xff]  ;;  %v3738_v46 = vld [vmem:[#allocation2 + $0x440] sm:$0xff] }
 0x2f3   : > { %v1941_v51 = vsel %vm1935_vm14, %v5629_v12, %v1934_v47  ;;  %3931 = vmatpush.msra.mxu0 %v3816_v49  ;;  %v3780_v12 = vld [vmem:[#allocation2 + $0x3d8] sm:$0xff]  ;;  %vm2823_vm14 = vcmask 809984  }
 0x2f4   : > { %1953 = vst [vmem:[#allocation2 + $0x278] sm:$0xf0] %v1941_v51  ;;  %3971 = vmatpush.msra.mxu2 %v3817_v52  ;;  %v5678_v56 = vpop.permute.xlu2 %2038  ;;  %v3739_v49 = vld [vmem:[#allocation2 + $0x378] sm:$0xff]  ;;  %v3733_v51 = vld [vmem:[#allocation2 + $0x3b0] sm:$0xff] }
 0x2f5   : > { %3932 = vmatpush.msra.mxu0 %v3810_v54  ;;  %2309 = vrot.lane.b32.xlu1 %v2302_v24, %s4581_s20  ;;  %v2364_v24 = vld.sshfl [vmem:[#allocation1 + $0x30] sm:$0xff pattern:$0x75316420] }
 0x2f6   : > { %3972 = vmatpush.msra.mxu2 %v3811_v55  ;;  %2412 = vst [vmem:[#allocation1 + $0x30] ss:$2 sm:$0xff] %v2401_v2  ;;  %v3824_v55 = vld [vmem:[#allocation2 + $0x50] sm:$0xff]  ;;  %v3782_v2 = vld [vmem:[#allocation2 + $0x28] sm:$0xff] }
 0x2f7   : > { %3933 = vmatpush.msra.mxu0 %v3804_v59  ;;  %v1977_v61 = vpop.permute.xlu1 %1976  ;;  %v5754_v59 = vld.sshfl [vmem:[#allocation1 + $0x8] sm:$0xff pattern:$0x75316420] }
 0x2f8   : > { %2313 = vrot.lane.b32.xlu0 %v2304_v30, %s4581_s20  ;;  %3973 = vmatpush.msra.mxu2 %v3805_v60  ;;  %v1991_v1 = vsel %vm1990_vm15, %v1977_v61, %v5637_v16  ;;  %v5730_v30 = vld.sshfl [vmem:[#allocation1 + $0x18] sm:$0xff pattern:$0x75316420]  ;;  %v5756_v60 = vld [vmem:[#allocation6] sm:$0xff] }
 0x2f9   : > { %2003 = vst [vmem:[#allocation2 + $0x458] sm:$0xf] %v1991_v1  ;;  %3934 = vmatpush.msra.mxu0 %v3798_v62  ;;  %v3819_v1 = vld [vmem:[#allocation2 + $0x3a0] sm:$0xff]  ;;  %v5759_v62 = vld.sshfl [vmem:[#allocation1] sm:$0xff pattern:$0x75316420] }
 0x2fa   : > { %v1981_v5 = vpop.permute.xlu0 %1980  ;;  %3974 = vmatpush.msra.mxu2 %v3799_v4  ;;  %2317 = vrot.lane.b32.xlu2 %v2306_v39, %s4581_s20  ;;  %2464 = vst [vmem:[#allocation1 + $0x11] ss:$2 sm:$0xff] %v5690_v0  ;;  %v3744_v39 = vld [vmem:[#allocation2 + $0x548] sm:$0xff]  ;;  %v3812_v4 = vld [vmem:[#allocation2 + $0x418] sm:$0xff] }
 0x2fb   : > { %v1992_v6 = vsel %vm1990_vm15, %v5637_v16, %v1981_v5  ;;  %3935 = vmatpush.msra.mxu0 %v3792_v48  ;;  %v5712_v16 = vld.sshfl [vmem:[#allocation1 + $0x20] sm:$0xff pattern:$0x75316420]  ;;  %2517 = vst [vmem:[#allocation1] ss:$2 sm:$0xff] %v5676_v53  ;;  %v3806_v48 = vld [vmem:[#allocation2 + $0x1e8] sm:$0xff] }
 0x2fc   : > { %2004 = vst [vmem:[#allocation2 + $0x498] sm:$0xf] %v1992_v6  ;;  %3975 = vmatpush.msra.mxu2 %v3793_v7  ;;  %v5698_v9 = vpop.permute.xlu2 %2044  ;;  %v3807_v6 = vld [vmem:[#allocation2 + $0x258] sm:$0xff] }
 0x2fd   : > { %3936 = vmatpush.msra.mxu0 %v3786_v19  ;;  %2315 = vrot.lane.b32.xlu1 %v5662_v37, %s4581_s20  ;;  %2410 = vst [vmem:[#allocation1 + $0x20] ss:$2 sm:$0xff] %v5715_v17  ;;  %v3751_v37 = vld [vmem:[#allocation2 + $0x3c0] sm:$0xff] }
 0x2fe   : > { %3976 = vmatpush.msra.mxu2 %v3787_v8  ;;  %v3800_v8 = vld [vmem:[#allocation2 + $0x60] sm:$0xff] }
 0x2ff   : > { %3937 = vmatpush.msra.mxu0 %v3780_v12  ;;  %v1983_v13 = vpop.permute.xlu1 %1982  ;;  %v3801_v12 = vld [vmem:[#allocation2 + $0x200] sm:$0xff] }
 0x300   : > { %2319 = vrot.lane.b32.xlu0 %v5657_v34, %s4581_s20  ;;  %3977 = vmatpush.msra.mxu2 %v3781_v25  ;;  %v1993_v3 = vsel %vm1990_vm15, %v1981_v5, %v1983_v13  ;;  %v1994_v14 = vsel %vm1990_vm15, %v1983_v13, %v5646_v26  ;;  %v2419_v25 = vld.sshfl [vmem:[#allocation1 + $0x30] sm:$0xff pattern:$0x75316420] }
 0x301   : > { %2005 = vst [vmem:[#allocation2 + $0x400] sm:$0xf] %v1993_v3  ;;  %3938 = vmatpush.msra.mxu0 %v3774_v15  ;;  %v3794_v13 = vld [vmem:[#allocation2 + $0x528] sm:$0xff] }
 0x302   : > { %v1987_v31 = vpop.permute.xlu0 %1986  ;;  %2006 = vst [vmem:[#allocation2 + $0x5d8] sm:$0xf] %v1994_v14  ;;  %3978 = vmatpush.msra.mxu2 %v3775_v18  ;;  %2365 = vrot.lane.b32.xlu2 %v2358_v58, %s4582_s21  ;;  %v3818_v58 = vld [vmem:[#allocation2 + $0x1f0] sm:$0xff]  ;;  %v5775_v3 = vld.sshfl [vmem:[#allocation1 + $0x10] sm:$0xff pattern:$0x75316420] }
 0x303   : > { %v1995_v22 = vsel %vm1990_vm15, %v5646_v26, %v1987_v31  ;;  %3939 = vmatpush.msra.mxu0 %v3768_v21  ;;  %v3756_v26 = vld [vmem:[#allocation2 + $0x248] sm:$0xff]  ;;  %v2456_v14 = vld [vmem:[%s4725_s9 + $0x1c] sm:$0xf]  ;;  %v5782_v18 = vld.sshfl [vmem:[#allocation1 + $0x18] sm:$0xff pattern:$0x75316420] }
 0x304   : > { %2007 = vst [vmem:[#allocation2 + $0xe8] sm:$0xf] %v1995_v22  ;;  %3979 = vmatpush.msra.mxu2 %v3769_v23  ;;  %v5724_v40 = vpop.permute.xlu2 %2091  ;;  %v5738_v42 = vld.sshfl [vmem:[#allocation1 + $0x28] sm:$0xff pattern:$0x75316420]  ;;  %v3783_v22 = vld [vmem:[#allocation2 + $0xf8] sm:$0xff] }
 0x305   : > { %3940 = vmatpush.msra.mxu0 %v3762_v27  ;;  %2321 = vrot.lane.b32.xlu1 %v5671_v50, %s4581_s20  ;;  %v5740_v43 = vld.sshfl [vmem:[#allocation1 + $0x20] sm:$0xff pattern:$0x75316420]  ;;  %v3732_v50 = vld [vmem:[#allocation2 + $0x2b0] sm:$0xff]  ;;  %2468 = vst [vmem:[#allocation1 + $0x31] ss:$2 sm:$0xff] %v2456_v14 }
 0x306   : > { %3980 = vmatpush.msra.mxu2 %v3763_v29  ;;  %2466 = vst [vmem:[#allocation1 + $0x21] ss:$2 sm:$0xff] %v5715_v17  ;;  %v3777_v29 = vld [vmem:[#allocation2 + $0x480] sm:$0xff]  ;;  %s4597_s20 = smov 39  }
 0x307   : > { %3941 = vmatpush.msra.mxu0 %v3756_v26  ;;  %v1989_v33 = vpop.permute.xlu1 %1988  ;;  %2519 = vst [vmem:[#allocation1 + $0x10] ss:$2 sm:$0xff] %v5690_v0  ;;  %v3770_v26 = vld [vmem:[#allocation2 + $0x4c8] sm:$0xff] }
 0x308   : > { %2367 = vrot.lane.b32.xlu0 %v5681_v57, %s4582_s21  ;;  %3981 = vmatpush.msra.mxu2 %v3757_v32  ;;  %v1996_v34 = vsel %vm1990_vm15, %v1987_v31, %v1989_v33  ;;  %v3825_v57 = vld [vmem:[#allocation2 + $0x4a0] sm:$0xff]  ;;  %v3771_v33 = vld [vmem:[#allocation2 + $0x5e8] sm:$0xff]  ;;  %vm2878_vm15 = vcmask 621568  }
 0x309   : > { %2008 = vst [vmem:[#allocation2 + $0x160] sm:$0xf] %v1996_v34  ;;  %3942 = vmatpush.msra.mxu0 %v3750_v35  ;;  %v3764_v35 = vld [vmem:[#allocation2 + $0x98] sm:$0xff] }
 0x30a   : > { %v2035_v41 = vpop.permute.xlu0 %2034  ;;  %3982 = vmatpush.msra.mxu2 %v3751_v37  ;;  %2371 = vrot.lane.b32.xlu2 %v5692_v38, %s4582_s21  ;;  %v3813_v38 = vld [vmem:[#allocation2 + $0x5c8] sm:$0xff]  ;;  %v3765_v37 = vld [vmem:[#allocation2 + $0xb0] sm:$0xff] }
 0x30b   : > { %v2047_v44 = vsel %vm2046_vm0, %v5660_v36, %v2035_v41  ;;  %3943 = vmatpush.msra.mxu0 %v3744_v39 }
 0x30c   : > { %2059 = vst [vmem:[#allocation2 + $0x458] sm:$0xf0] %v2047_v44  ;;  %3983 = vmatpush.msra.mxu2 %v3745_v45  ;;  %v5745_v47 = vpop.permute.xlu2 %2097 }
 0x30d   : > { %3944 = vmatpush.msra.mxu0 %v3738_v46  ;;  %2369 = vrot.lane.b32.xlu1 %v5687_v63, %s4582_s21  ;;  %v5786_v21 = vld.sshfl [vmem:[#allocation1 + $0x20] sm:$0xff pattern:$0x75316420]  ;;  %v3752_v46 = vld [vmem:[#allocation2 + $0x330] sm:$0xff] }
 0x30e   : > { %3984 = vmatpush.msra.mxu2 %v3739_v49  ;;  %v3753_v49 = vld [vmem:[#allocation2 + $0x100] sm:$0xff] }
 0x30f   : > { %v2037_v52 = vpop.permute.xlu1 %2036  ;;  %3945 = vmatpush.msra.mxu0 %v3732_v50  ;;  %v2512_v50 = vld [vmem:[%s4725_s9 + $0x1c] sm:$0xf] }
 0x310   : > { %2373 = vrot.lane.b32.xlu0 %v5712_v16, %s4582_s21  ;;  %3985 = vmatpush.msra.mxu2 %v3733_v51  ;;  %v2048_v36 = vsel %vm2046_vm0, %v2035_v41, %v2037_v52  ;;  %v2049_v54 = vsel %vm2046_vm0, %v2037_v52, %v5678_v56  ;;  %v3795_v16 = vld [vmem:[#allocation2 + $0x1c0] sm:$0xff]  ;;  %v3758_v41 = vld [vmem:[#allocation2 + $0x388] sm:$0xff]  ;;  %v3746_v51 = vld [vmem:[#allocation2 + $0x58] sm:$0xff] }
 0x311   : > { %2060 = vst [vmem:[#allocation2 + $0x498] sm:$0xf0] %v2048_v36  ;;  %4010 = vmatpush.msrb.mxu0 %v3824_v55  ;;  %3986 = vmatmul.f32.vlgmr.msra.gmra.mxu2 %v5756_v60  ;;  %v3747_v52 = vld [vmem:[#allocation2 + $0x2b8] sm:$0xff]  ;;  %v5817_v36 = vld.sshfl [vmem:[#allocation1 + $0x30] sm:$0xff pattern:$0x75316420] }
 0x312   : > { %4050 = vmatpush.msrb.mxu2 %v3825_v57  ;;  %2061 = vst [vmem:[#allocation2 + $0x400] sm:$0xf0] %v2049_v54  ;;  %v2041_v61 = vpop.permute.xlu0 %2040  ;;  %2377 = vrot.lane.b32.xlu2 %v2364_v24, %s4582_s21  ;;  %v3740_v55 = vld [vmem:[#allocation2 + $0x108] sm:$0xff] }
 0x313   : > { %v2050_v63 = vsel %vm2046_vm0, %v5678_v56, %v2041_v61  ;;  %4011 = vmatpush.msrb.mxu0 %v3818_v58  ;;  %v5821_v57 = vld.sshfl [vmem:[#allocation1 + $0x10] sm:$0xff pattern:$0x75316420]  ;;  %2523 = vst [vmem:[#allocation1 + $0x30] ss:$2 sm:$0xff] %v2512_v50  ;;  %v3741_v58 = vld [vmem:[#allocation2 + $0x510] sm:$0xff] }
 0x314   : > { %4051 = vmatpush.msrb.mxu2 %v3819_v1  ;;  %2062 = vst [vmem:[#allocation2 + $0x5d8] sm:$0xf0] %v2050_v63  ;;  %v5765_v5 = vpop.permute.xlu2 %2145  ;;  %3946 = vmatmul.f32.vlgmr.msra.gmra.mxu0 %v5756_v60  ;;  %v5825_v1 = vld.sshfl [vmem:[#allocation1 + $0x18] sm:$0xff pattern:$0x75316420]  ;;  %v3735_v63 = vld [vmem:[#allocation2 + $0x18] sm:$0xff] }
 0x315   : > { %4012 = vmatpush.msrb.mxu0 %v3812_v4  ;;  %2375 = vrot.lane.b32.xlu1 %v5717_v20, %s4582_s21  ;;  %v3789_v20 = vld [vmem:[#allocation2 + $0x4f8] sm:$0xff]  ;;  %2575 = vst [vmem:[#allocation1 + $0x11] ss:$2 sm:$0xff] %v5690_v0  ;;  %v3767_v50 = vld [vmem:[#allocation2 + $0x570] sm:$0xff]  ;;  %s4598_s21 = smov 42  }
 0x316   : > { %4052 = vmatpush.msrb.mxu2 %v3813_v38  ;;  %v3827_v38 = vld [vmem:[#allocation2 + $0x278] sm:$0xff] }
 0x317   : > { %4013 = vmatpush.msrb.mxu0 %v3806_v48  ;;  %v2043_v56 = vpop.permute.xlu1 %2042 }
 0x318   : > { %4053 = vmatpush.msrb.mxu2 %v3807_v6  ;;  %2420 = vrot.lane.b32.xlu0 %v5702_v10, %s4583_s22  ;;  %v2051_v7 = vsel %vm2046_vm0, %v2041_v61, %v2043_v56  ;;  %v2052_v19 = vsel %vm2046_vm0, %v2043_v56, %v5698_v9  ;;  %v5780_v10 = vld.sshfl [vmem:[#allocation1 + $0x28] sm:$0xff pattern:$0x75316420]  ;;  %v3826_v56 = vld [vmem:[#allocation2 + $0x468] sm:$0xff]  ;;  %vm2934_vm0 = vcmask 613376  }
 0x319   : > { %2063 = vst [vmem:[#allocation2 + $0xe8] sm:$0xf0] %v2051_v7  ;;  %4014 = vmatpush.msrb.mxu0 %v3800_v8  ;;  %v3788_v9 = vld [vmem:[#allocation2 + $0x560] sm:$0xff]  ;;  %v3821_v7 = vld [vmem:[#allocation2 + $0x2c8] sm:$0xff] }
 0x31a   : > { %4054 = vmatpush.msrb.mxu2 %v3801_v12  ;;  %2064 = vst [vmem:[#allocation2 + $0x160] sm:$0xf0] %v2052_v19  ;;  %v2088_v15 = vpop.permute.xlu0 %2087  ;;  %2424 = vrot.lane.b32.xlu2 %v5726_v28, %s4583_s22  ;;  %v3776_v28 = vld [vmem:[#allocation2 + $0x338] sm:$0xff] }
 0x31b   : > { %4015 = vmatpush.msrb.mxu0 %v3794_v13  ;;  %2521 = vst [vmem:[#allocation1 + $0x20] ss:$2 sm:$0xff] %v5715_v17  ;;  %v3815_v13 = vld [vmem:[#allocation2 + $0x360] sm:$0xff] }
 0x31c   : > { %4055 = vmatpush.msrb.mxu2 %v3795_v16  ;;  %v5784_v31 = vpop.permute.xlu2 %2151  ;;  %v3808_v16 = vld [vmem:[#allocation2 + $0x40] sm:$0xff] }
 0x31d   : > { %4016 = vmatpush.msrb.mxu0 %v3788_v9  ;;  %2422 = vrot.lane.b32.xlu1 %v5704_v11, %s4583_s22  ;;  %v5797_v11 = vld.sshfl [vmem:[#allocation1 + $0x8] sm:$0xff pattern:$0x75316420]  ;;  %v5856_v9 = vld.sshfl [vmem:[#allocation1 + $0x18] sm:$0xff pattern:$0x75316420] }
 0x31e   : > { %4056 = vmatpush.msrb.mxu2 %v3789_v20  ;;  %v3803_v20 = vld [vmem:[#allocation2 + $0x5a0] sm:$0xff] }
 0x31f   : > { %4017 = vmatpush.msrb.mxu0 %v3782_v2  ;;  %v2090_v23 = vpop.permute.xlu1 %2089 }
 0x320   : > { %4057 = vmatpush.msrb.mxu2 %v3783_v22  ;;  %2426 = vrot.lane.b32.xlu0 %v5730_v30, %s4583_s22  ;;  %v2102_v24 = vsel %vm2101_vm1, %v2088_v15, %v2090_v23  ;;  %v2103_v27 = vsel %vm2101_vm1, %v2090_v23, %v5724_v40  ;;  %v5801_v30 = vld.sshfl [vmem:[#allocation1] sm:$0xff pattern:$0x75316420]  ;;  %v3809_v15 = vld [vmem:[#allocation2 + $0x4e0] sm:$0xff] }
 0x321   : > { %2114 = vst [vmem:[#allocation2 + $0x178] sm:$0xf] %v2102_v24  ;;  %4018 = vmatpush.msrb.mxu0 %v3776_v28  ;;  %v3802_v23 = vld [vmem:[#allocation2 + $0x80] sm:$0xff]  ;;  %v3796_v28 = vld [vmem:[#allocation2 + $0x5d0] sm:$0xff] }
 0x322   : > { %4058 = vmatpush.msrb.mxu2 %v3777_v29  ;;  %2115 = vst [vmem:[#allocation2 + $0x538] sm:$0xf] %v2103_v27  ;;  %v2094_v32 = vpop.permute.xlu0 %2093  ;;  %2430 = vrot.lane.b32.xlu2 %v5738_v42, %s4583_s22  ;;  %v3759_v42 = vld [vmem:[#allocation2 + $0x520] sm:$0xff] }
 0x323   : > { %v2104_v34 = vsel %vm2101_vm1, %v5724_v40, %v2094_v32  ;;  %4019 = vmatpush.msrb.mxu0 %v3770_v26  ;;  %2573 = vst [vmem:[#allocation1 + $0x1] ss:$2 sm:$0xff] %v5676_v53  ;;  %v5832_v4 = vld.sshfl [vmem:[#allocation1 + $0x28] sm:$0xff pattern:$0x75316420]  ;;  %v3791_v26 = vld [vmem:[#allocation2 + $0x370] sm:$0xff] }
 0x324   : > { %4059 = vmatpush.msrb.mxu2 %v3771_v33  ;;  %2116 = vst [vmem:[#allocation2 + $0x1e0] sm:$0xf] %v2104_v34  ;;  %v5806_v39 = vpop.permute.xlu2 %2198  ;;  %v3797_v24 = vld [vmem:[#allocation2 + $0x260] sm:$0xff] }
 0x325   : > { %4020 = vmatpush.msrb.mxu0 %v3764_v35  ;;  %2428 = vrot.lane.b32.xlu1 %v5740_v43, %s4583_s22  ;;  %v3785_v33 = vld [vmem:[#allocation2 + $0x120] sm:$0xff] }
 0x326   : > { %4060 = vmatpush.msrb.mxu2 %v3765_v37 }
 0x327   : > { %4021 = vmatpush.msrb.mxu0 %v3758_v41  ;;  %v2096_v40 = vpop.permute.xlu1 %2095 }
 0x328   : > { %4061 = vmatpush.msrb.mxu2 %v3759_v42  ;;  %2432 = vrot.lane.b32.xlu0 %v2419_v25, %s4583_s22  ;;  %v2105_v44 = vsel %vm2101_vm1, %v2094_v32, %v2096_v40  ;;  %v2106_v45 = vsel %vm2101_vm1, %v2096_v40, %v5745_v47  ;;  %v3790_v32 = vld [vmem:[#allocation2 + $0x2e8] sm:$0xff]  ;;  %s4599_s22 = smov 41  }
 0x329   : > { %2117 = vst [vmem:[#allocation2 + $0x390] sm:$0xf] %v2105_v44  ;;  %4022 = vmatpush.msrb.mxu0 %v3752_v46  ;;  %v3778_v40 = vld [vmem:[#allocation2 + $0x2a8] sm:$0xff]  ;;  %v3773_v44 = vld [vmem:[#allocation2 + $0x2f0] sm:$0xff]  ;;  %v3772_v46 = vld [vmem:[#allocation2 + $0x1f8] sm:$0xff] }
 0x32a   : > { %4062 = vmatpush.msrb.mxu2 %v3753_v49  ;;  %2118 = vst [vmem:[#allocation2 + $0x2c0] sm:$0xf] %v2106_v45  ;;  %v2100_v43 = vpop.permute.xlu0 %2099  ;;  %2478 = vrot.lane.b32.xlu2 %v5754_v59, %s4584_s24  ;;  %v3734_v59 = vld [vmem:[#allocation2 + $0x4d8] sm:$0xff]  ;;  %v5844_v12 = vld.sshfl [vmem:[#allocation1 + $0x8] sm:$0xff pattern:$0x75316420] }
 0x32b   : > { %v2107_v54 = vsel %vm2101_vm1, %v5745_v47, %v2100_v43  ;;  %4023 = vmatpush.msrb.mxu0 %v3746_v51  ;;  %v5830_v47 = vld.sshfl [vmem:[#allocation1 + $0x20] sm:$0xff pattern:$0x75316420]  ;;  %v3761_v43 = vld [vmem:[#allocation2 + $0x5e0] sm:$0xff]  ;;  %vm2989_vm1 = vcmask 605184  }
 0x32c   : > { %4063 = vmatpush.msrb.mxu2 %v3747_v52  ;;  %2119 = vst [vmem:[#allocation2 + $0x228] sm:$0xf] %v2107_v54  ;;  %v5823_v61 = vpop.permute.xlu2 %2204  ;;  %v5842_v8 = vld.sshfl [vmem:[#allocation1] sm:$0xff pattern:$0x75316420]  ;;  %v3760_v52 = vld [vmem:[#allocation2 + $0x3a8] sm:$0xff] }
 0x32d   : > { %4024 = vmatpush.msrb.mxu0 %v3740_v55  ;;  %2476 = vrot.lane.b32.xlu1 %v5759_v62, %s4584_s24  ;;  %2577 = vst [vmem:[#allocation1 + $0x21] ss:$2 sm:$0xff] %v5715_v17  ;;  %v3820_v62 = vld [vmem:[#allocation2 + $0x460] sm:$0xff] }
 0x32e   : > { %4064 = vmatpush.msrb.mxu2 %v3741_v58  ;;  %2628 = vst [vmem:[#allocation1] ss:$2 sm:$0xff] %v5676_v53  ;;  %v3754_v58 = vld [vmem:[#allocation2 + $0x8] sm:$0xff] }
 0x32f   : > { %4025 = vmatpush.msrb.mxu0 %v3734_v59  ;;  %v2144_v48 = vpop.permute.xlu1 %2143 }
 0x330   : > { %4065 = vmatpush.msrb.mxu2 %v3735_v63  ;;  %2480 = vrot.lane.b32.xlu0 %v5775_v3, %s4584_s24  ;;  %v2158_v6 = vsel %vm2157_vm2, %v2144_v48, %v5765_v5  ;;  %v3814_v3 = vld [vmem:[#allocation2 + $0x340] sm:$0xff]  ;;  %v3743_v48 = vld [vmem:[#allocation2 + $0x318] sm:$0xff] }
 0x331   : > { %2170 = vst [vmem:[#allocation2 + $0x178] sm:$0xf0] %v2158_v6  ;;  %4090 = vmatpush.msra.mxu0 %v3826_v56  ;;  %4066 = vmatmul.f32.vlgmr.msrb.gmra.mxu2 %v5756_v60  ;;  %v3748_v63 = vld [vmem:[#allocation2 + $0x580] sm:$0xff]  ;;  %v3742_v6 = vld [vmem:[#allocation2 + $0x490] sm:$0xff] }
 0x332   : > { %4130 = vmatpush.msra.mxu2 %v3827_v38  ;;  %v2148_v19 = vpop.permute.xlu0 %2147  ;;  %2484 = vrot.lane.b32.xlu2 %v5786_v21, %s4584_s24 }
 0x333   : > { %v2159_v25 = vsel %vm2157_vm2, %v5765_v5, %v2148_v19  ;;  %4091 = vmatpush.msra.mxu0 %v3820_v62  ;;  %v5854_v5 = vld.sshfl [vmem:[#allocation1 + $0x10] sm:$0xff pattern:$0x75316420] }
 0x334   : > { %4131 = vmatpush.msra.mxu2 %v3821_v7  ;;  %2171 = vst [vmem:[#allocation2 + $0x538] sm:$0xf0] %v2159_v25  ;;  %v5849_v14 = vpop.permute.xlu2 %2210  ;;  %4026 = vmatmul.f32.vlgmr.msrb.gmra.mxu0 %v5756_v60  ;;  %v5871_v35 = vld.sshfl [vmem:[#allocation1 + $0x28] sm:$0xff pattern:$0x75316420]  ;;  %v3737_v62 = vld [vmem:[#allocation2 + $0x328] sm:$0xff] }
 0x335   : > { %4092 = vmatpush.msra.mxu0 %v3814_v3  ;;  %2482 = vrot.lane.b32.xlu1 %v5782_v18, %s4584_s24  ;;  %2630 = vst [vmem:[#allocation1 + $0x10] ss:$2 sm:$0xff] %v5690_v0  ;;  %v2567_v18 = vld [vmem:[%s4725_s9 + $0x1c] sm:$0xf]  ;;  %v3736_v7 = vld [vmem:[#allocation2 + $0x450] sm:$0xff] }
 0x336   : > { %4132 = vmatpush.msra.mxu2 %v3815_v13  ;;  %v5873_v37 = vld.sshfl [vmem:[#allocation1 + $0x20] sm:$0xff pattern:$0x75316420]  ;;  %v5894_v59 = vld.sshfl [vmem:[#allocation1 + $0x8] sm:$0xff pattern:$0x75316420] }
 0x337   : > { %4093 = vmatpush.msra.mxu0 %v3808_v16  ;;  %v2150_v21 = vpop.permute.xlu1 %2149  ;;  %2632 = vst [vmem:[#allocation1 + $0x20] ss:$2 sm:$0xff] %v5715_v17  ;;  %v5897_v38 = vld.sshfl [vmem:[#allocation1] sm:$0xff pattern:$0x75316420] }
 0x338   : > { %4133 = vmatpush.msra.mxu2 %v3809_v15  ;;  %2486 = vrot.lane.b32.xlu0 %v5780_v10, %s4584_s24  ;;  %v2160_v2 = vsel %vm2157_vm2, %v2148_v19, %v2150_v21  ;;  %v2161_v22 = vsel %vm2157_vm2, %v2150_v21, %v5784_v31  ;;  %v2530_v10 = vld.sshfl [vmem:[#allocation1 + $0x30] sm:$0xff pattern:$0x75316420]  ;;  %2684 = vst [vmem:[#allocation1 + $0x1] ss:$2 sm:$0xff] %v5676_v53 }
 0x339   : > { %2172 = vst [vmem:[#allocation2 + $0x1e0] sm:$0xf0] %v2160_v2  ;;  %4094 = vmatpush.msra.mxu0 %v3802_v23 }
 0x33a   : > { %4134 = vmatpush.msra.mxu2 %v3803_v20  ;;  %v2154_v27 = vpop.permute.xlu0 %2153  ;;  %2173 = vst [vmem:[#allocation2 + $0x390] sm:$0xf0] %v2161_v22  ;;  %2531 = vrot.lane.b32.xlu2 %v5801_v30, %s4585_s25  ;;  %v3784_v30 = vld [vmem:[#allocation2 + $0x4e8] sm:$0xff] }
 0x33b   : > { %v2162_v29 = vsel %vm2157_vm2, %v5784_v31, %v2154_v27  ;;  %4095 = vmatpush.msra.mxu0 %v3796_v28  ;;  %2579 = vst [vmem:[#allocation1 + $0x31] ss:$2 sm:$0xff] %v2567_v18  ;;  %v3779_v31 = vld [vmem:[#allocation2 + $0x3e0] sm:$0xff] }
 0x33c   : > { %4135 = vmatpush.msra.mxu2 %v3797_v24  ;;  %2174 = vst [vmem:[#allocation2 + $0x2c0] sm:$0xf0] %v2162_v29  ;;  %v5869_v34 = vpop.permute.xlu2 %2258  ;;  %v2637_v3 = vld.sshfl [vmem:[#allocation1 + $0x10] sm:$0xff pattern:$0x75316420] }
 0x33d   : > { %4096 = vmatpush.msra.mxu0 %v3790_v32  ;;  %2488 = vrot.lane.b32.xlu1 %v5817_v36, %s4584_s24  ;;  %v3755_v36 = vld [vmem:[#allocation2 + $0x188] sm:$0xff]  ;;  %v2638_v20 = vld.sshfl [vmem:[#allocation1 + $0x18] sm:$0xff pattern:$0x75316420]  ;;  %s4600_s24 = smov 44  }
 0x33e   : > { %4136 = vmatpush.msra.mxu2 %v3791_v26  ;;  %v5916_v16 = vld.sshfl [vmem:[#allocation1 + $0x28] sm:$0xff pattern:$0x75316420]  ;;  %v2639_v21 = vld.sshfl [vmem:[#allocation1 + $0x20] sm:$0xff pattern:$0x75316420] }
 0x33f   : > { %4097 = vmatpush.msra.mxu0 %v3784_v30  ;;  %v2156_v41 = vpop.permute.xlu1 %2155  ;;  %2686 = vst [vmem:[#allocation1 + $0x11] ss:$2 sm:$0xff] %v5690_v0  ;;  %v5929_v2 = vld.sshfl [vmem:[#allocation1 + $0x8] sm:$0xff pattern:$0x75316420] }
 0x340   : > { %4137 = vmatpush.msra.mxu2 %v3785_v33  ;;  %2533 = vrot.lane.b32.xlu0 %v5797_v11, %s4585_s25  ;;  %v2163_v42 = vsel %vm2157_vm2, %v2154_v27, %v2156_v41  ;;  %v3766_v11 = vld [vmem:[#allocation2 + $0x2a0] sm:$0xff]  ;;  %2688 = vst [vmem:[#allocation1 + $0x21] ss:$2 sm:$0xff] %v5715_v17  ;;  %v2691_v22 = vld.sshfl [vmem:[#allocation1] sm:$0xff pattern:$0x75316420] }
 0x341   : > { %2175 = vst [vmem:[#allocation2 + $0x228] sm:$0xf0] %v2163_v42  ;;  %4098 = vmatpush.msra.mxu0 %v3778_v40  ;;  %vm3045_vm2 = vcmask 596992  }
 0x342   : > { %4138 = vmatpush.msra.mxu2 %v3779_v31  ;;  %v2201_v45 = vpop.permute.xlu0 %2200  ;;  %2537 = vrot.lane.b32.xlu2 %v5825_v1, %s4585_s25  ;;  %v3749_v1 = vld [vmem:[#allocation2 + $0x590] sm:$0xff]  ;;  %v2586_v13 = vld.sshfl [vmem:[#allocation1 + $0x30] sm:$0xff pattern:$0x75316420]  ;;  %2739 = vst [vmem:[#allocation1] ss:$2 sm:$0xff] %v5676_v53 }
 0x343   : > { %v2213_v49 = vsel %vm2212_vm3, %v5806_v39, %v2201_v45  ;;  %4099 = vmatpush.msra.mxu0 %v3772_v46 }
 0x344   : > { %4139 = vmatpush.msra.mxu2 %v3773_v44  ;;  %2225 = vst [vmem:[#allocation2 + $0x5b0] sm:$0xf] %v2213_v49  ;;  %v5885_v51 = vpop.permute.xlu2 %2264 }
 0x345   : > { %4100 = vmatpush.msra.mxu0 %v3766_v11  ;;  %2535 = vrot.lane.b32.xlu1 %v5821_v57, %s4585_s25 }
 0x346   : > { %4140 = vmatpush.msra.mxu2 %v3767_v50  ;;  %v5945_v29 = vld.sshfl [vmem:[#allocation1 + $0x10] sm:$0xff pattern:$0x75316420]  ;;  %v2694_v32 = vld.sshfl [vmem:[#allocation1 + $0x18] sm:$0xff pattern:$0x75316420] }
 0x347   : > { %4101 = vmatpush.msra.mxu0 %v3760_v52  ;;  %v2203_v54 = vpop.permute.xlu1 %2202  ;;  %v5959_v31 = vld.sshfl [vmem:[#allocation1 + $0x28] sm:$0xff pattern:$0x75316420]  ;;  %2741 = vst [vmem:[#allocation1 + $0x10] ss:$2 sm:$0xff] %v5690_v0 }
 0x348   : > { %4141 = vmatpush.msra.mxu2 %v3761_v43  ;;  %2539 = vrot.lane.b32.xlu0 %v5830_v47, %s4585_s25  ;;  %v2214_v39 = vsel %vm2212_vm3, %v2201_v45, %v2203_v54  ;;  %v2215_v55 = vsel %vm2212_vm3, %v2203_v54, %v5823_v61 }
 0x349   : > { %2226 = vst [vmem:[#allocation2 + $0xc0] sm:$0xf] %v2214_v39  ;;  %4102 = vmatpush.msra.mxu0 %v3754_v58  ;;  %v5957_v30 = vld.sshfl [vmem:[#allocation1 + $0x8] sm:$0xff pattern:$0x75316420] }
 0x34a   : > { %4142 = vmatpush.msra.mxu2 %v3755_v36  ;;  %2227 = vst [vmem:[#allocation2 + $0xd8] sm:$0xf] %v2215_v55  ;;  %v2207_v57 = vpop.permute.xlu0 %2206  ;;  %2543 = vrot.lane.b32.xlu2 %v2530_v10, %s4585_s25  ;;  %v2678_v10 = vld [vmem:[%s4725_s9 + $0x1c] sm:$0xf] }
 0x34b   : > { %v2216_v47 = vsel %vm2212_vm3, %v5823_v61, %v2207_v57  ;;  %4103 = vmatpush.msra.mxu0 %v3748_v63  ;;  %v2734_v36 = vld [vmem:[%s4725_s9 + $0x1c] sm:$0xf] }
 0x34c   : > { %4143 = vmatpush.msra.mxu2 %v3749_v1  ;;  %2228 = vst [vmem:[#allocation2 + $0x428] sm:$0xf] %v2216_v47  ;;  %v5902_v56 = vpop.permute.xlu2 %2311 }
 0x34d   : > { %4104 = vmatpush.msra.mxu0 %v3742_v6  ;;  %2541 = vrot.lane.b32.xlu1 %v5832_v4, %s4585_s25  ;;  %v2623_v4 = vld [vmem:[%s4725_s9 + $0x1c] sm:$0xf]  ;;  %s4601_s25 = smov 43  }
 0x34e   : > { %4144 = vmatpush.msra.mxu2 %v3743_v48  ;;  %2634 = vst [vmem:[#allocation1 + $0x30] ss:$2 sm:$0xff] %v2623_v4  ;;  %v5974_v46 = vld.sshfl [vmem:[#allocation1 + $0x10] sm:$0xff pattern:$0x75316420] }
 0x34f   : > { %4105 = vmatpush.msra.mxu0 %v3736_v7  ;;  %v2209_v19 = vpop.permute.xlu1 %2208  ;;  %v5976_v49 = vld.sshfl [vmem:[#allocation1 + $0x18] sm:$0xff pattern:$0x75316420] }
 0x350   : > { %4145 = vmatpush.msra.mxu2 %v3737_v62  ;;  %2587 = vrot.lane.b32.xlu0 %v5842_v8, %s4586_s27  ;;  %v2217_v61 = vsel %vm2212_vm3, %v2207_v57, %v2209_v19  ;;  %v2218_v25 = vsel %vm2212_vm3, %v2209_v19, %v5849_v14  ;;  %2797 = vst [vmem:[#allocation1 + $0x11] ss:$2 sm:$0xff] %v5690_v0  ;;  %vm3100_vm3 = vcmask 588800  }
 0x351   : > { %4146 = vmatmul.f32.vlgmr.msra.gmra.mxu2 %v5756_v60  ;;  %4106 = vmatmul.f32.vlgmr.msra.gmra.mxu0 %v5756_v60  ;;  %2229 = vst [vmem:[#allocation2 + $0x30] sm:$0xf] %v2217_v61 }
 0x352   : > { %2230 = vst [vmem:[#allocation2 + $0x410] sm:$0xf] %v2218_v25  ;;  %v2255_v15 = vpop.permute.xlu0 %2254  ;;  %2591 = vrot.lane.b32.xlu2 %v5854_v5, %s4586_s27 }
 0x354   : > { %v5918_v8 = vpop.permute.xlu2 %2317 }
 0x355   : > { %2589 = vrot.lane.b32.xlu1 %v5844_v12, %s4586_s27  ;;  %v2641_v28 = vld.sshfl [vmem:[#allocation1 + $0x30] sm:$0xff pattern:$0x75316420] }
 0x356   : > { %2690 = vst [vmem:[#allocation1 + $0x31] ss:$2 sm:$0xff] %v2678_v10 }
 0x357   : > { %v2257_v60 = vpop.permute.xlu1 %2256  ;;  %v6000_v57 = vld.sshfl [vmem:[#allocation1 + $0x10] sm:$0xff pattern:$0x75316420]  ;;  %v6004_v63 = vld.sshfl [vmem:[#allocation1 + $0x18] sm:$0xff pattern:$0x75316420] }
 0x358   : > { %2593 = vrot.lane.b32.xlu0 %v5856_v9, %s4586_s27  ;;  %v2269_v14 = vsel %vm2268_vm4, %v2255_v15, %v2257_v60  ;;  %v2270_v5 = vsel %vm2268_vm4, %v2257_v60, %v5869_v34  ;;  %2852 = vst [vmem:[#allocation1 + $0x10] ss:$2 sm:$0xff] %v5690_v0  ;;  %v2789_v60 = vld [vmem:[%s4725_s9 + $0x1c] sm:$0xf] }
 0x359   : > { %2281 = vst [vmem:[#allocation2 + $0x5b0] sm:$0xf0] %v2269_v14 }
 0x35a   : > { %2282 = vst [vmem:[#allocation2 + $0xc0] sm:$0xf0] %v2270_v5  ;;  %v2261_v23 = vpop.permute.xlu0 %2260  ;;  %2597 = vrot.lane.b32.xlu2 %v5871_v35, %s4586_s27  ;;  %v5953_v35 = vld.sshfl [vmem:[#allocation1] sm:$0xff pattern:$0x75316420] }
 0x35b   : > { %v2271_v12 = vsel %vm2268_vm4, %v5869_v34, %v2261_v23  ;;  %v5951_v34 = vld.sshfl [vmem:[#allocation1 + $0x20] sm:$0xff pattern:$0x75316420]  ;;  %2795 = vst [vmem:[#allocation1 + $0x1] ss:$2 sm:$0xff] %v5676_v53 }
 0x35c   : > { %2283 = vst [vmem:[#allocation2 + $0xd8] sm:$0xf0] %v2271_v12  ;;  %v5936_v9 = vpop.permute.xlu2 %2365 }
 0x35d   : > { %2595 = vrot.lane.b32.xlu1 %v5873_v37, %s4586_s27  ;;  %2743 = vst [vmem:[#allocation1 + $0x20] ss:$2 sm:$0xff] %v5715_v17  ;;  %v2697_v39 = vld.sshfl [vmem:[#allocation1 + $0x30] sm:$0xff pattern:$0x75316420] }
 0x35e   : > { %2745 = vst [vmem:[#allocation1 + $0x30] ss:$2 sm:$0xff] %v2734_v36 }
 0x35f   : > { %v2263_v18 = vpop.permute.xlu1 %2262  ;;  %v6022_v61 = vld.sshfl [vmem:[#allocation1 + $0x10] sm:$0xff pattern:$0x75316420]  ;;  %v6024_v25 = vld.sshfl [vmem:[#allocation1 + $0x18] sm:$0xff pattern:$0x75316420] }
 0x360   : > { %2599 = vrot.lane.b32.xlu0 %v2586_v13, %s4586_s27  ;;  %v2272_v24 = vsel %vm2268_vm4, %v2261_v23, %v2263_v18  ;;  %v2273_v27 = vsel %vm2268_vm4, %v2263_v18, %v5885_v51  ;;  %2908 = vst [vmem:[#allocation1 + $0x11] ss:$2 sm:$0xff] %v5690_v0  ;;  %v6064_v18 = vld [vmem:[%s4725_s9 + $0xc] sm:$0xff]  ;;  %s4602_s27 = smov 46  }
 0x361   : > { %2284 = vst [vmem:[#allocation2 + $0x428] sm:$0xf0] %v2272_v24 }
 0x362   : > { %2285 = vst [vmem:[#allocation2 + $0x30] sm:$0xf0] %v2273_v27  ;;  %v2267_v26 = vpop.permute.xlu0 %2266  ;;  %2644 = vrot.lane.b32.xlu2 %v5894_v59, %s4587_s28  ;;  %v5980_v50 = vld.sshfl [vmem:[#allocation1 + $0x8] sm:$0xff pattern:$0x75316420] }
 0x363   : > { %v2274_v33 = vsel %vm2268_vm4, %v5885_v51, %v2267_v26  ;;  %v5982_v51 = vld.sshfl [vmem:[#allocation1] sm:$0xff pattern:$0x75316420]  ;;  %vm3655_vm4 = vcmask 326656  }
 0x364   : > { %2286 = vst [vmem:[#allocation2 + $0x410] sm:$0xf0] %v2274_v33  ;;  %v5955_v37 = vpop.permute.xlu2 %2371  ;;  %v5996_v1 = vld.sshfl [vmem:[#allocation1 + $0x28] sm:$0xff pattern:$0x75316420] }
 0x365   : > { %2642 = vrot.lane.b32.xlu1 %v5897_v38, %s4587_s28  ;;  %2850 = vst [vmem:[#allocation1] ss:$2 sm:$0xff] %v5676_v53  ;;  %v5998_v59 = vld.sshfl [vmem:[#allocation1 + $0x20] sm:$0xff pattern:$0x75316420] }
 0x366   : > { %2799 = vst [vmem:[#allocation1 + $0x21] ss:$2 sm:$0xff] %v5715_v17  ;;  %v2752_v0 = vld.sshfl [vmem:[#allocation1 + $0x30] sm:$0xff pattern:$0x75316420] }
 0x367   : > { %v2310_v41 = vpop.permute.xlu1 %2309  ;;  %v6050_v14 = vld.sshfl [vmem:[#allocation1 + $0x10] sm:$0xff pattern:$0x75316420]  ;;  %v6052_v5 = vld.sshfl [vmem:[#allocation1 + $0x18] sm:$0xff pattern:$0x75316420] }
 0x368   : > { %2646 = vrot.lane.b32.xlu0 %v2637_v3, %s4587_s28  ;;  %v2324_v42 = vsel %vm2323_vm5, %v2310_v41, %v5902_v56  ;;  %v6033_v3 = vld [vmem:[%s4725_s9 + $0x4] sm:$0xff]  ;;  %2801 = vst [vmem:[#allocation1 + $0x31] ss:$2 sm:$0xff] %v2789_v60 }
 0x369   : > { %2336 = vst [vmem:[#allocation2 + $0x208] sm:$0xf] %v2324_v42 }
 0x36a   : > { %v2314_v40 = vpop.permute.xlu0 %2313  ;;  %2650 = vrot.lane.b32.xlu2 %v2639_v21, %s4587_s28  ;;  %2963 = vst [vmem:[#allocation1 + $0x10] ss:$2 sm:$0xff] %v6064_v18 }
 0x36b   : > { %v2325_v44 = vsel %vm2323_vm5, %v5902_v56, %v2314_v40 }
 0x36c   : > { %2337 = vst [vmem:[#allocation2 + $0x4a8] sm:$0xf] %v2325_v44  ;;  %v5972_v45 = vpop.permute.xlu2 %2377  ;;  %v6006_v47 = vld.sshfl [vmem:[#allocation1 + $0x8] sm:$0xff pattern:$0x75316420] }
 0x36d   : > { %2648 = vrot.lane.b32.xlu1 %v2638_v20, %s4587_s28  ;;  %v6008_v48 = vld.sshfl [vmem:[#allocation1] sm:$0xff pattern:$0x75316420]  ;;  %v6057_v23 = vld.sshfl [vmem:[#allocation1 + $0x28] sm:$0xff pattern:$0x75316420] }
 0x36e   : > { %2906 = vst [vmem:[#allocation1 + $0x1] ss:$2 sm:$0xff] %v5676_v53  ;;  %v6059_v12 = vld.sshfl [vmem:[#allocation1 + $0x20] sm:$0xff pattern:$0x75316420] }
 0x36f   : > { %v2316_v11 = vpop.permute.xlu1 %2315  ;;  %2854 = vst [vmem:[#allocation1 + $0x20] ss:$2 sm:$0xff] %v5715_v17  ;;  %v2808_v41 = vld.sshfl [vmem:[#allocation1 + $0x30] sm:$0xff pattern:$0x75316420] }
 0x370   : > { %2652 = vrot.lane.b32.xlu0 %v5916_v16, %s4587_s28  ;;  %v2326_v43 = vsel %vm2323_vm5, %v2314_v40, %v2316_v11  ;;  %v2327_v52 = vsel %vm2323_vm5, %v2316_v11, %v5918_v8  ;;  %v2845_v40 = vld [vmem:[%s4725_s9 + $0x1c] sm:$0xf] }
 0x371   : > { %2338 = vst [vmem:[#allocation2 + $0x5b8] sm:$0xf] %v2326_v43 }
 0x372   : > { %v2320_v54 = vpop.permute.xlu0 %2319  ;;  %2339 = vst [vmem:[#allocation2 + $0x218] sm:$0xf] %v2327_v52  ;;  %2698 = vrot.lane.b32.xlu2 %v2691_v22, %s4588_s5 }
 0x373   : > { %v2328_v55 = vsel %vm2323_vm5, %v5918_v8, %v2320_v54  ;;  %2856 = vst [vmem:[#allocation1 + $0x30] ss:$2 sm:$0xff] %v2845_v40  ;;  %v2956_v40 = vld [vmem:[%s4725_s9 + $0x1c] sm:$0xf] }
 0x374   : > { %2340 = vst [vmem:[#allocation2 + $0x368] sm:$0xf] %v2328_v55  ;;  %v5994_v58 = vpop.permute.xlu2 %2424 }
 0x375   : > { %2654 = vrot.lane.b32.xlu1 %v2641_v28, %s4587_s28  ;;  %v6035_v4 = vld.sshfl [vmem:[#allocation1] sm:$0xff pattern:$0x75316420]  ;;  %v6038_v16 = vld.sshfl [vmem:[#allocation1 + $0x8] sm:$0xff pattern:$0x75316420] }
 0x376   : > { %2961 = vst [vmem:[#allocation1] ss:$2 sm:$0xff] %v6033_v3  ;;  %v6109_v11 = vld.sshfl [vmem:[#allocation1 + $0x20] sm:$0xff pattern:$0x75316420]  ;;  %s4603_s28 = smov 45  }
 0x377   : > { %v2322_v38 = vpop.permute.xlu1 %2321  ;;  %v6113_v52 = vld.sshfl [vmem:[#allocation1 + $0x28] sm:$0xff pattern:$0x75316420] }
 0x378   : > { %2700 = vrot.lane.b32.xlu0 %v5929_v2, %s4588_s5  ;;  %v2329_v6 = vsel %vm2323_vm5, %v2320_v54, %v2322_v38  ;;  %2910 = vst [vmem:[#allocation1 + $0x21] ss:$2 sm:$0xff] %v5715_v17  ;;  %vm3711_vm5 = vcmask 318464  }
 0x379   : > { %2341 = vst [vmem:[#allocation2 + $0x298] sm:$0xf] %v2329_v6 }
 0x37a   : > { %v2368_v56 = vpop.permute.xlu0 %2367  ;;  %2704 = vrot.lane.b32.xlu2 %v2694_v32, %s4588_s5 }
 0x37b   : > { %v2380_v62 = vsel %vm2379_vm6, %v5936_v9, %v2368_v56 }
 0x37c   : > { %2392 = vst [vmem:[#allocation2 + $0x208] sm:$0xf0] %v2380_v62  ;;  %v6018_v7 = vpop.permute.xlu2 %2430  ;;  %v2900_v62 = vld [vmem:[%s4725_s9 + $0x1c] sm:$0xf] }
 0x37d   : > { %2702 = vrot.lane.b32.xlu1 %v5945_v29, %s4588_s5  ;;  %v6066_v24 = vld.sshfl [vmem:[#allocation1 + $0x8] sm:$0xff pattern:$0x75316420]  ;;  %v6068_v27 = vld.sshfl [vmem:[#allocation1] sm:$0xff pattern:$0x75316420] }
 0x37e   : > { %3017 = vst [vmem:[#allocation1 + $0x1] ss:$2 sm:$0xff] %v6033_v3 }
 0x37f   : > { %v2370_v19 = vpop.permute.xlu1 %2369 }
 0x380   : > { %2706 = vrot.lane.b32.xlu0 %v5951_v34, %s4588_s5  ;;  %v2381_v13 = vsel %vm2379_vm6, %v2368_v56, %v2370_v19  ;;  %v2382_v53 = vsel %vm2379_vm6, %v2370_v19, %v5955_v37  ;;  %v2863_v56 = vld.sshfl [vmem:[#allocation1 + $0x30] sm:$0xff pattern:$0x75316420] }
 0x381   : > { %2393 = vst [vmem:[#allocation2 + $0x4a8] sm:$0xf0] %v2381_v13 }
 0x382   : > { %2394 = vst [vmem:[#allocation2 + $0x5b8] sm:$0xf0] %v2382_v53  ;;  %v2374_v15 = vpop.permute.xlu0 %2373  ;;  %2710 = vrot.lane.b32.xlu2 %v2697_v39, %s4588_s5 }
 0x383   : > { %v2383_v20 = vsel %vm2379_vm6, %v5955_v37, %v2374_v15  ;;  %v6090_v37 = vld.sshfl [vmem:[#allocation1 + $0x18] sm:$0xff pattern:$0x75316420]  ;;  %2912 = vst [vmem:[#allocation1 + $0x31] ss:$2 sm:$0xff] %v2900_v62 }
 0x384   : > { %2395 = vst [vmem:[#allocation2 + $0x218] sm:$0xf0] %v2383_v20  ;;  %v6043_v8 = vpop.permute.xlu2 %2478 }
 0x385   : > { %2708 = vrot.lane.b32.xlu1 %v5959_v31, %s4588_s5  ;;  %v6096_v31 = vld.sshfl [vmem:[#allocation1] sm:$0xff pattern:$0x75316420]  ;;  %s4604_s5 = smov 70  }
 0x387   : > { %v2376_v21 = vpop.permute.xlu1 %2375 }
 0x388   : > { %2753 = vrot.lane.b32.xlu0 %v5953_v35, %s4589_s6  ;;  %v2384_v2 = vsel %vm2379_vm6, %v2374_v15, %v2376_v21  ;;  %v2385_v22 = vsel %vm2379_vm6, %v2376_v21, %v5972_v45  ;;  %v6088_v35 = vld.sshfl [vmem:[#allocation1 + $0x10] sm:$0xff pattern:$0x75316420]  ;;  %vm3544_vm6 = vcmask 343040  }
 0x389   : > { %2396 = vst [vmem:[#allocation2 + $0x368] sm:$0xf0] %v2384_v2 }
 0x38a   : > { %v2421_v9 = vpop.permute.xlu0 %2420  ;;  %2757 = vrot.lane.b32.xlu2 %v5974_v46, %s4589_s6  ;;  %2397 = vst [vmem:[#allocation2 + $0x298] sm:$0xf0] %v2385_v22 }
 0x38b   : > { %3019 = vst [vmem:[#allocation1 + $0x11] ss:$2 sm:$0xff] %v6064_v18 }
 0x38c   : > { %v6070_v28 = vpop.permute.xlu2 %2484 }
 0x38d   : > { %2755 = vrot.lane.b32.xlu1 %v5957_v30, %s4589_s6  ;;  %v6092_v30 = vld.sshfl [vmem:[#allocation1 + $0x8] sm:$0xff pattern:$0x75316420] }
 0x38e   : > { %3072 = vst [vmem:[#allocation1] ss:$2 sm:$0xff] %v6033_v3 }
 0x38f   : > { %v2423_v10 = vpop.permute.xlu1 %2422 }
 0x390   : > { %2759 = vrot.lane.b32.xlu0 %v5976_v49, %s4589_s6  ;;  %v2435_v29 = vsel %vm2434_vm7, %v2421_v9, %v2423_v10  ;;  %v2436_v26 = vsel %vm2434_vm7, %v2423_v10, %v5994_v58 }
 0x391   : > { %2447 = vst [vmem:[#allocation2 + $0x420] sm:$0xf] %v2435_v29 }
 0x392   : > { %v2427_v32 = vpop.permute.xlu0 %2426  ;;  %2763 = vrot.lane.b32.xlu2 %v5996_v1, %s4589_s6  ;;  %2448 = vst [vmem:[#allocation2 + $0x88] sm:$0xf] %v2436_v26  ;;  %v6118_v36 = vld.sshfl [vmem:[#allocation1 + $0x10] sm:$0xff pattern:$0x75316420] }
 0x393   : > { %v2437_v33 = vsel %vm2434_vm7, %v5994_v58, %v2427_v32 }
 0x394   : > { %2449 = vst [vmem:[#allocation2 + $0x130] sm:$0xf] %v2437_v33  ;;  %v6086_v34 = vpop.permute.xlu2 %2531 }
 0x395   : > { %2761 = vrot.lane.b32.xlu1 %v5998_v59, %s4589_s6  ;;  %v6122_v54 = vld.sshfl [vmem:[#allocation1] sm:$0xff pattern:$0x75316420]  ;;  %v6127_v55 = vld.sshfl [vmem:[#allocation1 + $0x8] sm:$0xff pattern:$0x75316420] }
 0x396   : > { %3128 = vst [vmem:[#allocation1 + $0x1] ss:$2 sm:$0xff] %v6033_v3 }
 0x397   : > { %v2429_v42 = vpop.permute.xlu1 %2428 }
 0x398   : > { %2765 = vrot.lane.b32.xlu0 %v2752_v0, %s4589_s6  ;;  %v2438_v44 = vsel %vm2434_vm7, %v2427_v32, %v2429_v42  ;;  %v2439_v45 = vsel %vm2434_vm7, %v2429_v42, %v6018_v7  ;;  %v6163_v0 = vld.sshfl [vmem:[#allocation1 + $0x20] sm:$0xff pattern:$0x75316420]  ;;  %s4605_s6 = smov 69  }
 0x399   : > { %2450 = vst [vmem:[#allocation2 + $0x5f0] sm:$0xf] %v2438_v44 }
 0x39a   : > { %v2433_v46 = vpop.permute.xlu0 %2432  ;;  %2811 = vrot.lane.b32.xlu2 %v5980_v50, %s4590_s7  ;;  %2451 = vst [vmem:[#allocation2 + $0x230] sm:$0xf] %v2439_v45  ;;  %v6120_v50 = vld.sshfl [vmem:[#allocation1 + $0x18] sm:$0xff pattern:$0x75316420] }
 0x39b   : > { %v2440_v49 = vsel %vm2434_vm7, %v6018_v7, %v2433_v46  ;;  %3074 = vst [vmem:[#allocation1 + $0x10] ss:$2 sm:$0xff] %v6064_v18  ;;  %vm3600_vm7 = vcmask 334848  }
 0x39c   : > { %2452 = vst [vmem:[#allocation2 + $0x2e0] sm:$0xf] %v2440_v49  ;;  %v6111_v43 = vpop.permute.xlu2 %2537 }
 0x39d   : > { %2809 = vrot.lane.b32.xlu1 %v5982_v51, %s4590_s7  ;;  %v6151_v13 = vld.sshfl [vmem:[#allocation1] sm:$0xff pattern:$0x75316420]  ;;  %v6155_v53 = vld.sshfl [vmem:[#allocation1 + $0x8] sm:$0xff pattern:$0x75316420] }
 0x39e   : > { %3183 = vst [vmem:[#allocation1] ss:$2 sm:$0xff] %v6033_v3 }
 0x39f   : > { %v2477_v39 = vpop.permute.xlu1 %2476 }
 0x3a0   : > { %2813 = vrot.lane.b32.xlu0 %v6000_v57, %s4590_s7  ;;  %v2491_v58 = vsel %vm2490_vm8, %v2477_v39, %v6043_v8 }
 0x3a1   : > { %2503 = vst [vmem:[#allocation2 + $0x420] sm:$0xf0] %v2491_v58 }
 0x3a2   : > { %v2481_v51 = vpop.permute.xlu0 %2480  ;;  %2817 = vrot.lane.b32.xlu2 %v6059_v12, %s4590_s7  ;;  %v6140_v57 = vld.sshfl [vmem:[#allocation1 + $0x10] sm:$0xff pattern:$0x75316420]  ;;  %v6142_v38 = vld.sshfl [vmem:[#allocation1 + $0x18] sm:$0xff pattern:$0x75316420] }
 0x3a3   : > { %v2492_v1 = vsel %vm2490_vm8, %v6043_v8, %v2481_v51  ;;  %3130 = vst [vmem:[#allocation1 + $0x11] ss:$2 sm:$0xff] %v6064_v18  ;;  %v6161_v8 = vld.sshfl [vmem:[#allocation1 + $0x28] sm:$0xff pattern:$0x75316420] }
 0x3a4   : > { %2504 = vst [vmem:[#allocation2 + $0x88] sm:$0xf0] %v2492_v1  ;;  %v6136_v59 = vpop.permute.xlu2 %2543 }
 0x3a5   : > { %2815 = vrot.lane.b32.xlu1 %v6004_v63, %s4590_s7  ;;  %2965 = vst [vmem:[#allocation1 + $0x20] ss:$2 sm:$0xff] %v5715_v17  ;;  %v6182_v12 = vld.sshfl [vmem:[#allocation1] sm:$0xff pattern:$0x75316420] }
 0x3a7   : > { %v2483_v6 = vpop.permute.xlu1 %2482 }
 0x3a8   : > { %2819 = vrot.lane.b32.xlu0 %v6057_v23, %s4590_s7  ;;  %v2493_v7 = vsel %vm2490_vm8, %v2481_v51, %v2483_v6  ;;  %v2494_v19 = vsel %vm2490_vm8, %v2483_v6, %v6070_v28  ;;  %v6238_v51 = vld [vmem:[%s4725_s9 + $0x14] sm:$0xff] }
 0x3a9   : > { %2505 = vst [vmem:[#allocation2 + $0x130] sm:$0xf0] %v2493_v7 }
 0x3aa   : > { %v2487_v63 = vpop.permute.xlu0 %2486  ;;  %2864 = vrot.lane.b32.xlu2 %v6008_v48, %s4591_s8  ;;  %2506 = vst [vmem:[#allocation2 + $0x5f0] sm:$0xf0] %v2494_v19  ;;  %v6168_v48 = vld.sshfl [vmem:[#allocation1 + $0x10] sm:$0xff pattern:$0x75316420] }
 0x3ab   : > { %v2495_v15 = vsel %vm2490_vm8, %v6070_v28, %v2487_v63  ;;  %v6170_v21 = vld.sshfl [vmem:[#allocation1 + $0x18] sm:$0xff pattern:$0x75316420] }
 0x3ac   : > { %2507 = vst [vmem:[#allocation2 + $0x230] sm:$0xf0] %v2495_v15  ;;  %v6159_v20 = vpop.permute.xlu2 %2591  ;;  %v6233_v39 = vld.sshfl [vmem:[#allocation1 + $0x28] sm:$0xff pattern:$0x75316420] }
 0x3ad   : > { %2821 = vrot.lane.b32.xlu1 %v2808_v41, %s4590_s7  ;;  %3185 = vst [vmem:[#allocation1 + $0x10] ss:$2 sm:$0xff] %v6064_v18  ;;  %v2919_v41 = vld.sshfl [vmem:[#allocation1 + $0x30] sm:$0xff pattern:$0x75316420]  ;;  %s4606_s7 = smov 71  }
 0x3ae   : > { %2967 = vst [vmem:[#allocation1 + $0x30] ss:$2 sm:$0xff] %v2956_v40  ;;  %v2972_v58 = vld.sshfl [vmem:[#allocation1 + $0x20] sm:$0xff pattern:$0x75316420] }
 0x3af   : > { %v2489_v60 = vpop.permute.xlu1 %2488  ;;  %3021 = vst [vmem:[#allocation1 + $0x21] ss:$2 sm:$0xff] %v6238_v51 }
 0x3b0   : > { %2866 = vrot.lane.b32.xlu0 %v6006_v47, %s4591_s8  ;;  %v2496_v2 = vsel %vm2490_vm8, %v2487_v63, %v2489_v60  ;;  %v6184_v47 = vld.sshfl [vmem:[#allocation1 + $0x8] sm:$0xff pattern:$0x75316420]  ;;  %vm3433_vm8 = vcmask 359424  }
 0x3b1   : > { %2508 = vst [vmem:[#allocation2 + $0x2e0] sm:$0xf0] %v2496_v2 }
 0x3b2   : > { %v2534_v22 = vpop.permute.xlu0 %2533  ;;  %2870 = vrot.lane.b32.xlu2 %v6024_v25, %s4591_s8  ;;  %3239 = vst [vmem:[#allocation1 + $0x1] ss:$2 sm:$0xff] %v6033_v3 }
 0x3b3   : > { %v2546_v17 = vsel %vm2545_vm9, %v6086_v34, %v2534_v22 }
 0x3b4   : > { %2558 = vst [vmem:[#allocation2 + $0x110] sm:$0xf] %v2546_v17  ;;  %v6180_v23 = vpop.permute.xlu2 %2597  ;;  %v6189_v9 = vld.sshfl [vmem:[#allocation1 + $0x10] sm:$0xff pattern:$0x75316420] }
 0x3b5   : > { %2868 = vrot.lane.b32.xlu1 %v6022_v61, %s4591_s8  ;;  %v6191_v28 = vld.sshfl [vmem:[#allocation1 + $0x18] sm:$0xff pattern:$0x75316420]  ;;  %v2974_v15 = vld.sshfl [vmem:[#allocation1 + $0x30] sm:$0xff pattern:$0x75316420] }
 0x3b6   : > { %3241 = vst [vmem:[#allocation1 + $0x11] ss:$2 sm:$0xff] %v6064_v18 }
 0x3b7   : > { %v2536_v25 = vpop.permute.xlu1 %2535 }
 0x3b8   : > { %2872 = vrot.lane.b32.xlu0 %v6109_v11, %s4591_s8  ;;  %v2547_v10 = vsel %vm2545_vm9, %v2534_v22, %v2536_v25  ;;  %v2548_v29 = vsel %vm2545_vm9, %v2536_v25, %v6111_v43  ;;  %v6271_v22 = vld.sshfl [vmem:[#allocation1 + $0x20] sm:$0xff pattern:$0x75316420]  ;;  %v6275_v25 = vld.sshfl [vmem:[#allocation1 + $0x28] sm:$0xff pattern:$0x75316420] }
 0x3b9   : > { %2559 = vst [vmem:[#allocation2 + $0xa8] sm:$0xf] %v2547_v10  ;;  %v6204_v33 = vld.sshfl [vmem:[#allocation1] sm:$0xff pattern:$0x75316420] }
 0x3ba   : > { %v2540_v61 = vpop.permute.xlu0 %2539  ;;  %2876 = vrot.lane.b32.xlu2 %v2863_v56, %s4591_s8  ;;  %2560 = vst [vmem:[#allocation2 + $0x190] sm:$0xf] %v2548_v29  ;;  %v6206_v34 = vld.sshfl [vmem:[#allocation1 + $0x8] sm:$0xff pattern:$0x75316420] }
 0x3bb   : > { %v2549_v26 = vsel %vm2545_vm9, %v6111_v43, %v2540_v61  ;;  %3294 = vst [vmem:[#allocation1] ss:$2 sm:$0xff] %v6033_v3 }
 0x3bc   : > { %2561 = vst [vmem:[#allocation2 + $0x1a8] sm:$0xf] %v2549_v26  ;;  %v6202_v32 = vpop.permute.xlu2 %2644 }
 0x3bd   : > { %2874 = vrot.lane.b32.xlu1 %v6113_v52, %s4591_s8  ;;  %v6214_v44 = vld.sshfl [vmem:[#allocation1 + $0x10] sm:$0xff pattern:$0x75316420]  ;;  %v6219_v49 = vld.sshfl [vmem:[#allocation1 + $0x18] sm:$0xff pattern:$0x75316420] }
 0x3be   : > { %3296 = vst [vmem:[#allocation1 + $0x10] ss:$2 sm:$0xff] %v6064_v18 }
 0x3bf   : > { %v2542_v42 = vpop.permute.xlu1 %2541  ;;  %3076 = vst [vmem:[#allocation1 + $0x20] ss:$2 sm:$0xff] %v6238_v51 }
 0x3c0   : > { %2920 = vrot.lane.b32.xlu0 %v6035_v4, %s4592_s18  ;;  %v2550_v45 = vsel %vm2545_vm9, %v2540_v61, %v2542_v42  ;;  %v2551_v46 = vsel %vm2545_vm9, %v2542_v42, %v6136_v59  ;;  %vm3489_vm9 = vcmask 351232  }
 0x3c1   : > { %2562 = vst [vmem:[#allocation2 + $0x398] sm:$0xf] %v2550_v45 }
 0x3c2   : > { %v2588_v11 = vpop.permute.xlu0 %2587  ;;  %2924 = vrot.lane.b32.xlu2 %v6050_v14, %s4592_s18  ;;  %2563 = vst [vmem:[#allocation2 + $0x470] sm:$0xf] %v2551_v46  ;;  %v6226_v43 = vld.sshfl [vmem:[#allocation1] sm:$0xff pattern:$0x75316420] }
 0x3c3   : > { %v6228_v52 = vld.sshfl [vmem:[#allocation1 + $0x8] sm:$0xff pattern:$0x75316420] }
 0x3c4   : > { %v6223_v4 = vpop.permute.xlu2 %2650  ;;  %3350 = vst [vmem:[#allocation1 + $0x1] ss:$2 sm:$0xff] %v6033_v3 }
 0x3c5   : > { %2922 = vrot.lane.b32.xlu1 %v6038_v16, %s4592_s18  ;;  %v6248_v6 = vld.sshfl [vmem:[#allocation1 + $0x10] sm:$0xff pattern:$0x75316420]  ;;  %v6252_v62 = vld.sshfl [vmem:[#allocation1 + $0x18] sm:$0xff pattern:$0x75316420] }
 0x3c6   : > { %3352 = vst [vmem:[#allocation1 + $0x11] ss:$2 sm:$0xff] %v6064_v18  ;;  %v6299_v40 = vld.sshfl [vmem:[#allocation1 + $0x20] sm:$0xff pattern:$0x75316420] }
 0x3c7   : > { %v2590_v14 = vpop.permute.xlu1 %2589  ;;  %v6301_v45 = vld.sshfl [vmem:[#allocation1 + $0x28] sm:$0xff pattern:$0x75316420] }
 0x3c8   : > { %2926 = vrot.lane.b32.xlu0 %v6052_v5, %s4592_s18  ;;  %v2602_v1 = vsel %vm2601_vm10, %v2588_v11, %v2590_v14  ;;  %v2603_v59 = vsel %vm2601_vm10, %v2590_v14, %v6159_v20  ;;  %3132 = vst [vmem:[#allocation1 + $0x21] ss:$2 sm:$0xff] %v6238_v51 }
 0x3c9   : > { %2614 = vst [vmem:[#allocation2 + $0x110] sm:$0xf0] %v2602_v1 }
 0x3ca   : > { %v2594_v16 = vpop.permute.xlu0 %2593  ;;  %2930 = vrot.lane.b32.xlu2 %v6161_v8, %s4592_s18  ;;  %2615 = vst [vmem:[#allocation2 + $0xa8] sm:$0xf0] %v2603_v59 }
 0x3cb   : > { %v2604_v5 = vsel %vm2601_vm10, %v6159_v20, %v2594_v16  ;;  %v6254_v7 = vld.sshfl [vmem:[#allocation1] sm:$0xff pattern:$0x75316420]  ;;  %v6256_v19 = vld.sshfl [vmem:[#allocation1 + $0x8] sm:$0xff pattern:$0x75316420] }
 0x3cc   : > { %2616 = vst [vmem:[#allocation2 + $0x190] sm:$0xf0] %v2604_v5  ;;  %v6250_v56 = vpop.permute.xlu2 %2698  ;;  %v3011_v20 = vld [vmem:[%s4725_s9 + $0x1c] sm:$0xf] }
 0x3cd   : > { %2928 = vrot.lane.b32.xlu1 %v6163_v0, %s4592_s18  ;;  %3405 = vst [vmem:[#allocation1] ss:$2 sm:$0xff] %v6033_v3  ;;  %v6284_v29 = vld.sshfl [vmem:[#allocation1 + $0x10] sm:$0xff pattern:$0x75316420] }
 0x3ce   : > { %3023 = vst [vmem:[#allocation1 + $0x31] ss:$2 sm:$0xff] %v3011_v20 }
 0x3cf   : > { %v2596_v63 = vpop.permute.xlu1 %2595  ;;  %v6329_v5 = vld.sshfl [vmem:[#allocation1 + $0x28] sm:$0xff pattern:$0x75316420] }
 0x3d0   : > { %2932 = vrot.lane.b32.xlu0 %v2919_v41, %s4592_s18  ;;  %v2605_v8 = vsel %vm2601_vm10, %v2594_v16, %v2596_v63  ;;  %v2606_v60 = vsel %vm2601_vm10, %v2596_v63, %v6180_v23  ;;  %v6327_v16 = vld.sshfl [vmem:[#allocation1 + $0x20] sm:$0xff pattern:$0x75316420]  ;;  %6935 = vst [vmem:[#allocation12_spill] sm:$0xff] %v6329_v5  ;;  %s4287_s18 = smul.u32 48, %s4721_s4 }
 0x3d1   : > { %2617 = vst [vmem:[#allocation2 + $0x1a8] sm:$0xf0] %v2605_v8 }
 0x3d2   : > { %v2600_v2 = vpop.permute.xlu0 %2599  ;;  %2977 = vrot.lane.b32.xlu2 %v6066_v24, %s4593_s23  ;;  %2618 = vst [vmem:[#allocation2 + $0x398] sm:$0xf0] %v2606_v60 }
 0x3d3   : > { %v2607_v0 = vsel %vm2601_vm10, %v6180_v23, %v2600_v2  ;;  %v6287_v23 = vld.sshfl [vmem:[#allocation1 + $0x18] sm:$0xff pattern:$0x75316420]  ;;  %3187 = vst [vmem:[#allocation1 + $0x20] ss:$2 sm:$0xff] %v6238_v51  ;;  %vm3322_vm10 = vcmask 375808  }
 0x3d4   : > { %2619 = vst [vmem:[#allocation2 + $0x470] sm:$0xf0] %v2607_v0  ;;  %v6273_v17 = vpop.permute.xlu2 %2704  ;;  %v6278_v10 = vld.sshfl [vmem:[#allocation1] sm:$0xff pattern:$0x75316420] }
 0x3d5   : > { %2975 = vrot.lane.b32.xlu1 %v6068_v27, %s4593_s23  ;;  %v6282_v24 = vld.sshfl [vmem:[#allocation1 + $0x8] sm:$0xff pattern:$0x75316420]  ;;  %3407 = vst [vmem:[#allocation1 + $0x10] ss:$2 sm:$0xff] %v6064_v18 }
 0x3d6   : > { %3461 = vst [vmem:[#allocation1 + $0x1] ss:$2 sm:$0xff] %v6033_v3 }
 0x3d7   : > { %v2643_v61 = vpop.permute.xlu1 %2642 }
 0x3d8   : > { %2979 = vrot.lane.b32.xlu0 %v6088_v35, %s4593_s23  ;;  %v2657_v26 = vsel %vm2656_vm11, %v2643_v61, %v6202_v32 }
 0x3d9   : > { %2669 = vst [vmem:[#allocation2 + $0xe0] sm:$0xf] %v2657_v26  ;;  %v3030_v26 = vld.sshfl [vmem:[#allocation1 + $0x30] sm:$0xff pattern:$0x75316420] }
 0x3da   : > { %v2647_v41 = vpop.permute.xlu0 %2646  ;;  %2983 = vrot.lane.b32.xlu2 %v2972_v58, %s4593_s23  ;;  %v6352_v0 = vld.sshfl [vmem:[#allocation1 + $0x20] sm:$0xff pattern:$0x75316420]  ;;  %v6354_v61 = vld.sshfl [vmem:[#allocation1 + $0x28] sm:$0xff pattern:$0x75316420] }
 0x3db   : > { %v2658_v27 = vsel %vm2656_vm11, %v6202_v32, %v2647_v41  ;;  %3243 = vst [vmem:[#allocation1 + $0x21] ss:$2 sm:$0xff] %v6238_v51 }
 0x3dc   : > { %2670 = vst [vmem:[#allocation2 + $0xd0] sm:$0xf] %v2658_v27  ;;  %v6297_v42 = vpop.permute.xlu2 %2710  ;;  %v6310_v11 = vld.sshfl [vmem:[#allocation1 + $0x10] sm:$0xff pattern:$0x75316420] }
 0x3dd   : > { %2981 = vrot.lane.b32.xlu1 %v6090_v37, %s4593_s23  ;;  %v6306_v35 = vld.sshfl [vmem:[#allocation1] sm:$0xff pattern:$0x75316420]  ;;  %v6308_v46 = vld.sshfl [vmem:[#allocation1 + $0x8] sm:$0xff pattern:$0x75316420] }
 0x3de   : > { %3516 = vst [vmem:[#allocation1] ss:$2 sm:$0xff] %v6033_v3  ;;  %v6315_v14 = vld.sshfl [vmem:[#allocation1 + $0x18] sm:$0xff pattern:$0x75316420] }
 0x3df   : > { %v2649_v32 = vpop.permute.xlu1 %2648  ;;  %3463 = vst [vmem:[#allocation1 + $0x11] ss:$2 sm:$0xff] %v6064_v18 }
 0x3e0   : > { %2985 = vrot.lane.b32.xlu0 %v6233_v39, %s4593_s23  ;;  %v2659_v58 = vsel %vm2656_vm11, %v2647_v41, %v2649_v32  ;;  %v2660_v37 = vsel %vm2656_vm11, %v2649_v32, %v6223_v4 }
 0x3e1   : > { %2671 = vst [vmem:[#allocation2 + $0x38] sm:$0xf] %v2659_v58 }
 0x3e2   : > { %v2653_v1 = vpop.permute.xlu0 %2652  ;;  %3031 = vrot.lane.b32.xlu2 %v6096_v31, %s4594_s10  ;;  %2672 = vst [vmem:[#allocation2 + $0x240] sm:$0xf] %v2660_v37 }
 0x3e3   : > { %v2661_v39 = vsel %vm2656_vm11, %v6223_v4, %v2653_v1 }
 0x3e4   : > { %2673 = vst [vmem:[#allocation2 + $0x280] sm:$0xf] %v2661_v39  ;;  %v6325_v59 = vpop.permute.xlu2 %2757  ;;  %v6378_v39 = vld.sshfl [vmem:[#allocation1 + $0x20] sm:$0xff pattern:$0x75316420] }
 0x3e5   : > { %2987 = vrot.lane.b32.xlu1 %v2974_v15, %s4593_s23  ;;  %v6333_v63 = vld.sshfl [vmem:[#allocation1] sm:$0xff pattern:$0x75316420]  ;;  %v6335_v20 = vld.sshfl [vmem:[#allocation1 + $0x8] sm:$0xff pattern:$0x75316420] }
 0x3e6   : > { %v6339_v4 = vld.sshfl [vmem:[#allocation1 + $0x10] sm:$0xff pattern:$0x75316420]  ;;  %v6341_v8 = vld.sshfl [vmem:[#allocation1 + $0x18] sm:$0xff pattern:$0x75316420] }
 0x3e7   : > { %v2655_v31 = vpop.permute.xlu1 %2654  ;;  %3518 = vst [vmem:[#allocation1 + $0x10] ss:$2 sm:$0xff] %v6064_v18  ;;  %s203_s23 = scalar_lea.vmem [#allocation8], %s4287_s18 }
 0x3e8   : > { %3033 = vrot.lane.b32.xlu0 %v6092_v30, %s4594_s10  ;;  %v2662_v60 = vsel %vm2656_vm11, %v2653_v1, %v2655_v31  ;;  %3572 = vst [vmem:[#allocation1 + $0x1] ss:$2 sm:$0xff] %v6033_v3  ;;  %v6380_v31 = vld.sshfl [vmem:[#allocation1 + $0x28] sm:$0xff pattern:$0x75316420]  ;;  %vm3378_vm11 = vcmask 367616  }
 0x3e9   : > { %2674 = vst [vmem:[#allocation2 + $0x518] sm:$0xf] %v2662_v60  ;;  %v3067_v60 = vld [vmem:[%s4725_s9 + $0x1c] sm:$0xf] }
 0x3ea   : > { %v2701_v15 = vpop.permute.xlu0 %2700  ;;  %3037 = vrot.lane.b32.xlu2 %v6120_v50, %s4594_s10  ;;  %3298 = vst [vmem:[#allocation1 + $0x20] ss:$2 sm:$0xff] %v6238_v51 }
 0x3eb   : > { %v2713_v2 = vsel %vm2712_vm12, %v6250_v56, %v2701_v15  ;;  %3078 = vst [vmem:[#allocation1 + $0x30] ss:$2 sm:$0xff] %v3067_v60 }
 0x3ec   : > { %2725 = vst [vmem:[#allocation2 + $0xe0] sm:$0xf0] %v2713_v2  ;;  %v6350_v30 = vpop.permute.xlu2 %2763 }
 0x3ed   : > { %3035 = vrot.lane.b32.xlu1 %v6118_v36, %s4594_s10 }
 0x3ee   : > { %v6361_v56 = vld.sshfl [vmem:[#allocation1 + $0x10] sm:$0xff pattern:$0x75316420]  ;;  %v6363_v41 = vld.sshfl [vmem:[#allocation1 + $0x18] sm:$0xff pattern:$0x75316420] }
 0x3ef   : > { %v2703_v50 = vpop.permute.xlu1 %2702  ;;  %3574 = vst [vmem:[#allocation1 + $0x11] ss:$2 sm:$0xff] %v6064_v18  ;;  %v6374_v37 = vld.sshfl [vmem:[#allocation1] sm:$0xff pattern:$0x75316420] }
 0x3f0   : > { %3039 = vrot.lane.b32.xlu0 %v6271_v22, %s4594_s10  ;;  %v2714_v27 = vsel %vm2712_vm12, %v2701_v15, %v2703_v50  ;;  %v2715_v32 = vsel %vm2712_vm12, %v2703_v50, %v6273_v17  ;;  %v6376_v1 = vld.sshfl [vmem:[#allocation1 + $0x8] sm:$0xff pattern:$0x75316420] }
 0x3f1   : > { %2726 = vst [vmem:[#allocation2 + $0xd0] sm:$0xf0] %v2714_v27  ;;  %v3122_v27 = vld [vmem:[%s4725_s9 + $0x1c] sm:$0xf] }
 0x3f2   : > { %v2707_v36 = vpop.permute.xlu0 %2706  ;;  %3043 = vrot.lane.b32.xlu2 %v3030_v26, %s4594_s10  ;;  %2727 = vst [vmem:[#allocation2 + $0x38] sm:$0xf0] %v2715_v32  ;;  %v6402_v32 = vld.sshfl [vmem:[#allocation1 + $0x20] sm:$0xff pattern:$0x75316420] }
 0x3f3   : > { %v2716_v22 = vsel %vm2712_vm12, %v6273_v17, %v2707_v36  ;;  %3627 = vst [vmem:[#allocation1] ss:$2 sm:$0xff] %v6033_v3 }
 0x3f4   : > { %2728 = vst [vmem:[#allocation2 + $0x240] sm:$0xf0] %v2716_v22  ;;  %v6372_v58 = vpop.permute.xlu2 %2811 }
 0x3f5   : > { %3041 = vrot.lane.b32.xlu1 %v6275_v25, %s4594_s10  ;;  %s4288_s10 = smul.u32 48, %s4649_s16 }
 0x3f6   : > { %v6388_v15 = vld.sshfl [vmem:[#allocation1 + $0x10] sm:$0xff pattern:$0x75316420]  ;;  %v6393_v50 = vld.sshfl [vmem:[#allocation1 + $0x18] sm:$0xff pattern:$0x75316420] }
 0x3f7   : > { %v2709_v17 = vpop.permute.xlu1 %2708  ;;  %3629 = vst [vmem:[#allocation1 + $0x10] ss:$2 sm:$0xff] %v6064_v18 }
 0x3f8   : > { %3086 = vrot.lane.b32.xlu0 %v6122_v54, %s4595_s11  ;;  %v2717_v2 = vsel %vm2712_vm12, %v2707_v36, %v2709_v17  ;;  %v2718_v26 = vsel %vm2712_vm12, %v2709_v17, %v6297_v42  ;;  %v6404_v36 = vld.sshfl [vmem:[#allocation1 + $0x28] sm:$0xff pattern:$0x75316420]  ;;  %v6407_v42 = vld.sshfl [vmem:[#allocation1 + $0x30] sm:$0xff pattern:$0x75316420] }
 0x3f9   : > { %2729 = vst [vmem:[#allocation2 + $0x280] sm:$0xf0] %v2717_v2  ;;  %vm3211_vm12 = vcmask 572416  }
 0x3fa   : > { %v2754_v25 = vpop.permute.xlu0 %2753  ;;  %3090 = vrot.lane.b32.xlu2 %v6140_v57, %s4595_s11  ;;  %2730 = vst [vmem:[#allocation2 + $0x518] sm:$0xf0] %v2718_v26  ;;  %v3635_v22 = vld.sshfl [vmem:[#allocation1 + $0x8] sm:$0xff pattern:$0x75316420] }
 0x3fb   : > { %3354 = vst [vmem:[#allocation1 + $0x21] ss:$2 sm:$0xff] %v6238_v51  ;;  %v6413_v60 = vld.sshfl [vmem:[#allocation1] sm:$0xff pattern:$0x75316420] }
 0x3fc   : > { %v6399_v54 = vpop.permute.xlu2 %2817  ;;  %6936 = vst [vmem:[#allocation13_spill] sm:$0xff] %v6407_v42  ;;  %v3178_v26 = vld [vmem:[%s4725_s9 + $0x1c] sm:$0xf] }
 0x3fd   : > { %3088 = vrot.lane.b32.xlu1 %v6127_v55, %s4595_s11  ;;  %3134 = vst [vmem:[#allocation1 + $0x31] ss:$2 sm:$0xff] %v3122_v27 }
 0x3fe   : > { %3683 = vst [vmem:[#allocation1 + $0x1] ss:$2 sm:$0xff] %v6033_v3  ;;  %v3636_v27 = vld.sshfl [vmem:[#allocation1 + $0x10] sm:$0xff pattern:$0x75316420] }
 0x3ff   : > { %v2756_v57 = vpop.permute.xlu1 %2755 }
 0x400   : > { %3092 = vrot.lane.b32.xlu0 %v6142_v38, %s4595_s11  ;;  %v2768_v17 = vsel %vm2767_vm13, %v2754_v25, %v2756_v57  ;;  %v2769_v2 = vsel %vm2767_vm13, %v2756_v57, %v6325_v59  ;;  %v6425_v25 = vld.sshfl [vmem:[#allocation1 + $0x18] sm:$0xff pattern:$0x75316420] }
 0x401   : > { %2780 = vst [vmem:[#allocation2 + $0x148] sm:$0xf] %v2768_v17 }
 0x402   : > { %v2760_v5 = vpop.permute.xlu0 %2759  ;;  %2781 = vst [vmem:[#allocation2 + $0x508] sm:$0xf] %v2769_v2  ;;  %3645 = vrot.lane.b32.xlu2 %v3636_v27, %s4596_s17  ;;  %v6427_v42 = vld.sshfl [vmem:[#allocation1 + $0x20] sm:$0xff pattern:$0x75316420] }
 0x403   : > { %v2770_v55 = vsel %vm2767_vm13, %v6325_v59, %v2760_v5  ;;  %v6429_v57 = vld.sshfl [vmem:[#allocation1 + $0x28] sm:$0xff pattern:$0x75316420]  ;;  %3685 = vst [vmem:[#allocation1 + $0x11] ss:$2 sm:$0xff] %v6064_v18 }
 0x404   : > { %2782 = vst [vmem:[#allocation2 + $0x3d0] sm:$0xf] %v2770_v55  ;;  %v6423_v38 = vpop.permute.xlu2 %2864  ;;  %v6432_v3 = vld.sshfl [vmem:[#allocation1 + $0x30] sm:$0xff pattern:$0x75316420] }
 0x405   : > { %3409 = vst [vmem:[#allocation1 + $0x20] ss:$2 sm:$0xff] %v6238_v51  ;;  %3643 = vrot.lane.b32.xlu1 %v3635_v22, %s4596_s17  ;;  %v3691_v59 = vld.sshfl [vmem:[#allocation1 + $0x8] sm:$0xff pattern:$0x75316420] }
 0x406   : > { %6937 = vst [vmem:[#allocation14_spill] sm:$0xff] %v6432_v3  ;;  %v3233_v22 = vld [vmem:[%s4725_s9 + $0x1c] sm:$0xf] }
 0x407   : > { %3189 = vst [vmem:[#allocation1 + $0x30] ss:$2 sm:$0xff] %v3178_v26  ;;  %v2762_v17 = vpop.permute.xlu1 %2761 }
 0x408   : > { %3699 = vrot.lane.b32.xlu0 %v3691_v59, %s4597_s20  ;;  %v2771_v2 = vsel %vm2767_vm13, %v2760_v5, %v2762_v17  ;;  %v2772_v55 = vsel %vm2767_vm13, %v2762_v17, %v6350_v30 }
 0x409   : > { %2783 = vst [vmem:[#allocation2 + $0x68] sm:$0xf] %v2771_v2 }
 0x40a   : > { %v2766_v27 = vpop.permute.xlu0 %2765  ;;  %2784 = vst [vmem:[#allocation2 + $0x358] sm:$0xf] %v2772_v55  ;;  %3532 = vrot.lane.b32.xlu2 %v6335_v20, %s4598_s21  ;;  %v3289_v55 = vld [vmem:[%s4725_s9 + $0x1c] sm:$0xf] }
 0x40b   : > { %v2773_v3 = vsel %vm2767_vm13, %v6350_v30, %v2766_v27  ;;  %v3692_v30 = vld.sshfl [vmem:[#allocation1 + $0x10] sm:$0xff pattern:$0x75316420]  ;;  %vm3267_vm13 = vcmask 564224  }
 0x40c   : > { %2785 = vst [vmem:[#allocation2 + $0x70] sm:$0xf] %v2773_v3  ;;  %v6445_v18 = vpop.permute.xlu2 %2870  ;;  %v6447_v26 = vld.sshfl [vmem:[#allocation1 + $0x20] sm:$0xff pattern:$0x75316420] }
 0x40d   : > { %v6449_v5 = vld.sshfl [vmem:[#allocation1 + $0x28] sm:$0xff pattern:$0x75316420]  ;;  %3701 = vrot.lane.b32.xlu1 %v3692_v30, %s4597_s20 }
 0x40e   : > { %3465 = vst [vmem:[#allocation1 + $0x21] ss:$2 sm:$0xff] %v6238_v51  ;;  %v6452_v59 = vld.sshfl [vmem:[#allocation1 + $0x30] sm:$0xff pattern:$0x75316420] }
 0x40f   : > { %3245 = vst [vmem:[#allocation1 + $0x31] ss:$2 sm:$0xff] %v3233_v22  ;;  %v2810_v17 = vpop.permute.xlu1 %2809 }
 0x410   : > { %3534 = vrot.lane.b32.xlu0 %v6361_v56, %s4598_s21  ;;  %v2824_v20 = vsel %vm2823_vm14, %v2810_v17, %v6372_v58 }
 0x411   : > { %2836 = vst [vmem:[#allocation2 + $0x148] sm:$0xf0] %v2824_v20 }
 0x412   : > { %v2814_v3 = vpop.permute.xlu0 %2813  ;;  %3590 = vrot.lane.b32.xlu2 %v6388_v15, %s4599_s22 }
 0x413   : > { %v2825_v2 = vsel %vm2823_vm14, %v6372_v58, %v2814_v3 }
 0x414   : > { %2837 = vst [vmem:[#allocation2 + $0x508] sm:$0xf0] %v2825_v2  ;;  %v2877_v27 = vpop.permute.xlu2 %2876 }
 0x415   : > { %v6464_v22 = vld.sshfl [vmem:[#allocation1 + $0x20] sm:$0xff pattern:$0x75316420]  ;;  %v6466_v30 = vld.sshfl [vmem:[#allocation1 + $0x28] sm:$0xff pattern:$0x75316420]  ;;  %3588 = vrot.lane.b32.xlu1 %v6376_v1, %s4599_s22 }
 0x416   : > { %3520 = vst [vmem:[#allocation1 + $0x20] ss:$2 sm:$0xff] %v6238_v51  ;;  %v6469_v56 = vld.sshfl [vmem:[#allocation1 + $0x30] sm:$0xff pattern:$0x75316420] }
 0x417   : > { %3300 = vst [vmem:[#allocation1 + $0x30] ss:$2 sm:$0xff] %v3289_v55  ;;  %v2816_v17 = vpop.permute.xlu1 %2815  ;;  %v3344_v55 = vld [vmem:[%s4725_s9 + $0x1c] sm:$0xf] }
 0x418   : > { %3421 = vrot.lane.b32.xlu0 %v6282_v24, %s4600_s24  ;;  %v2826_v58 = vsel %vm2823_vm14, %v2814_v3, %v2816_v17  ;;  %v2827_v15 = vsel %vm2823_vm14, %v2816_v17, %v6399_v54 }
 0x419   : > { %2838 = vst [vmem:[#allocation2 + $0x3d0] sm:$0xf0] %v2826_v58  ;;  %v3400_v58 = vld [vmem:[%s4725_s9 + $0x1c] sm:$0xf] }
 0x41a   : > { %v2820_v20 = vpop.permute.xlu0 %2819  ;;  %2839 = vst [vmem:[#allocation2 + $0x68] sm:$0xf0] %v2827_v15  ;;  %3477 = vrot.lane.b32.xlu2 %v6308_v46, %s4601_s25 }
 0x41b   : > { %v2828_v2 = vsel %vm2823_vm14, %v6399_v54, %v2820_v20 }
 0x41c   : > { %2840 = vst [vmem:[#allocation2 + $0x358] sm:$0xf0] %v2828_v2  ;;  %v6483_v1 = vpop.permute.xlu2 %2924 }
 0x41d   : > { %3423 = vrot.lane.b32.xlu1 %v6310_v11, %s4600_s24 }
 0x41e   : > { %v6485_v24 = vld.sshfl [vmem:[#allocation1 + $0x30] sm:$0xff pattern:$0x75316420] }
 0x41f   : > { %3356 = vst [vmem:[#allocation1 + $0x31] ss:$2 sm:$0xff] %v3344_v55  ;;  %v2822_v3 = vpop.permute.xlu1 %2821  ;;  %v3455_v55 = vld [vmem:[%s4725_s9 + $0x1c] sm:$0xf] }
 0x420   : > { %3479 = vrot.lane.b32.xlu0 %v6339_v4, %s4601_s25  ;;  %v2829_v54 = vsel %vm2823_vm14, %v2820_v20, %v2822_v3  ;;  %vm3156_vm14 = vcmask 580608  }
 0x421   : > { %2841 = vst [vmem:[#allocation2 + $0x70] sm:$0xf0] %v2829_v54 }
 0x422   : > { %v2867_v17 = vpop.permute.xlu0 %2866  ;;  %3312 = vrot.lane.b32.xlu2 %v6248_v6, %s4602_s27 }
 0x423   : > { %v2879_v46 = vsel %vm2878_vm15, %v6423_v38, %v2867_v17 }
 0x424   : > { %2891 = vst [vmem:[#allocation2 + $0xb8] sm:$0xf] %v2879_v46  ;;  %v6497_v15 = vpop.permute.xlu2 %2930  ;;  %v6517_v46 = vld.sshfl [vmem:[#allocation1 + $0x28] sm:$0xff pattern:$0x75316420] }
 0x425   : > { %3310 = vrot.lane.b32.xlu1 %v6228_v52, %s4602_s27 }
 0x426   : > { %v6499_v11 = vld.sshfl [vmem:[#allocation1 + $0x30] sm:$0xff pattern:$0x75316420] }
 0x427   : > { %3411 = vst [vmem:[#allocation1 + $0x30] ss:$2 sm:$0xff] %v3400_v58  ;;  %v2869_v4 = vpop.permute.xlu1 %2868 }
 0x428   : > { %3366 = vrot.lane.b32.xlu0 %v6256_v19, %s4603_s28  ;;  %v2880_v38 = vsel %vm2878_vm15, %v2867_v17, %v2869_v4  ;;  %v2881_v20 = vsel %vm2878_vm15, %v2869_v4, %v6445_v18  ;;  %v3690_v19 = vld.sshfl [vmem:[#allocation1] sm:$0xff pattern:$0x75316420] }
 0x429   : > { %2892 = vst [vmem:[#allocation2 + $0x10] sm:$0xf] %v2880_v38  ;;  %v6515_v17 = vld.sshfl [vmem:[#allocation1 + $0x20] sm:$0xff pattern:$0x75316420] }
 0x42a   : > { %v2873_v6 = vpop.permute.xlu0 %2872  ;;  %2893 = vst [vmem:[#allocation2 + $0x20] sm:$0xf] %v2881_v20  ;;  %3641 = vrot.lane.b32.xlu2 %v6413_v60, %s4596_s17  ;;  %v3511_v4 = vld [vmem:[%s4725_s9 + $0x1c] sm:$0xf] }
 0x42b   : > { %v2882_v2 = vsel %vm2878_vm15, %v6445_v18, %v2873_v6  ;;  %3576 = vst [vmem:[#allocation1 + $0x21] ss:$2 sm:$0xff] %v6238_v51 }
 0x42c   : > { %2894 = vst [vmem:[#allocation2 + $0x78] sm:$0xf] %v2882_v2  ;;  %v2978_v52 = vpop.permute.xlu2 %2977 }
 0x42d   : > { %3368 = vrot.lane.b32.xlu1 %v6284_v29, %s4603_s28 }
 0x42e   : > { %v6513_v3 = vld.sshfl [vmem:[#allocation1 + $0x30] sm:$0xff pattern:$0x75316420] }
 0x42f   : > { %3467 = vst [vmem:[#allocation1 + $0x31] ss:$2 sm:$0xff] %v3455_v55  ;;  %v2875_v54 = vpop.permute.xlu1 %2874 }
 0x430   : > { %3697 = vrot.lane.b32.xlu0 %v3690_v19, %s4597_s20  ;;  %v2883_v18 = vsel %vm2878_vm15, %v2873_v6, %v2875_v54  ;;  %v2884_v60 = vsel %vm2878_vm15, %v2875_v54, %v2877_v27 }
 0x431   : > { %2895 = vst [vmem:[#allocation2 + $0x210] sm:$0xf] %v2883_v18 }
 0x432   : > { %v2921_v58 = vpop.permute.xlu0 %2920  ;;  %2896 = vst [vmem:[#allocation2 + $0x558] sm:$0xf] %v2884_v60  ;;  %3201 = vrot.lane.b32.xlu2 %v6189_v9, %s4604_s5  ;;  %v6530_v2 = vld.sshfl [vmem:[#allocation1 + $0x20] sm:$0xff pattern:$0x75316420] }
 0x433   : > { %v6532_v6 = vld.sshfl [vmem:[#allocation1 + $0x28] sm:$0xff pattern:$0x75316420] }
 0x434   : > { %v2984_v38 = vpop.permute.xlu2 %2983  ;;  %3631 = vst [vmem:[#allocation1 + $0x20] ss:$2 sm:$0xff] %v6238_v51 }
 0x435   : > { %3199 = vrot.lane.b32.xlu1 %v6184_v47, %s4604_s5 }
 0x436   : > { %v6528_v20 = vld.sshfl [vmem:[#allocation1 + $0x30] sm:$0xff pattern:$0x75316420] }
 0x437   : > { %3522 = vst [vmem:[#allocation1 + $0x30] ss:$2 sm:$0xff] %v3511_v4  ;;  %v2923_v29 = vpop.permute.xlu1 %2922 }
 0x438   : > { %3255 = vrot.lane.b32.xlu0 %v6206_v34, %s4605_s6  ;;  %v2935_v27 = vsel %vm2934_vm0, %v2921_v58, %v2923_v29  ;;  %v2936_v9 = vsel %vm2934_vm0, %v2923_v29, %v6483_v1 }
 0x439   : > { %2947 = vst [vmem:[#allocation2 + $0xb8] sm:$0xf0] %v2935_v27 }
 0x43a   : > { %v2927_v55 = vpop.permute.xlu0 %2926  ;;  %2948 = vst [vmem:[#allocation2 + $0x10] sm:$0xf0] %v2936_v9  ;;  %3530 = vrot.lane.b32.xlu2 %v6333_v63, %s4598_s21 }
 0x43b   : > { %v2937_v19 = vsel %vm2934_vm0, %v6483_v1, %v2927_v55  ;;  %v3638_v60 = vld.sshfl [vmem:[#allocation1 + $0x20] sm:$0xff pattern:$0x75316420]  ;;  %v6553_v58 = vld.sshfl [vmem:[#allocation1 + $0x28] sm:$0xff pattern:$0x75316420] }
 0x43c   : > { %2949 = vst [vmem:[#allocation2 + $0x20] sm:$0xf0] %v2937_v19  ;;  %v3032_v47 = vpop.permute.xlu2 %3031 }
 0x43d   : > { %3257 = vrot.lane.b32.xlu1 %v6214_v44, %s4605_s6  ;;  %3687 = vst [vmem:[#allocation1 + $0x21] ss:$2 sm:$0xff] %v6238_v51 }
 0x43f   : > { %v2929_v54 = vpop.permute.xlu1 %2928 }
 0x440   : > { %3586 = vrot.lane.b32.xlu0 %v6374_v37, %s4599_s22  ;;  %v2938_v34 = vsel %vm2934_vm0, %v2927_v55, %v2929_v54  ;;  %v2939_v18 = vsel %vm2934_vm0, %v2929_v54, %v6497_v15  ;;  %v6591_v54 = vld.sshfl [vmem:[#allocation1 + $0x30] sm:$0xff pattern:$0x75316420] }
 0x441   : > { %2950 = vst [vmem:[#allocation2 + $0x78] sm:$0xf0] %v2938_v34  ;;  %v3566_v34 = vld [vmem:[%s4725_s9 + $0x1c] sm:$0xf] }
 0x442   : > { %v2933_v1 = vpop.permute.xlu0 %2932  ;;  %2951 = vst [vmem:[#allocation2 + $0x210] sm:$0xf0] %v2939_v18  ;;  %3146 = vrot.lane.b32.xlu2 %v6168_v48, %s4606_s7 }
 0x443   : > { %v2940_v63 = vsel %vm2934_vm0, %v6497_v15, %v2933_v1  ;;  %3578 = vst [vmem:[#allocation1 + $0x31] ss:$2 sm:$0xff] %v3566_v34 }
 0x444   : > { %2952 = vst [vmem:[#allocation2 + $0x558] sm:$0xf0] %v2940_v63  ;;  %v3038_v44 = vpop.permute.xlu2 %3037 }
 0x445   : > { %3144 = vrot.lane.b32.xlu1 %v6155_v53, %s4606_s7 }
 0x447   : > { %v2976_v37 = vpop.permute.xlu1 %2975 }
 0x448   : > { %3419 = vrot.lane.b32.xlu0 %v6278_v10, %s4600_s24  ;;  %v2990_v4 = vsel %vm2989_vm1, %v2976_v37, %v2978_v52 }
 0x449   : > { %3002 = vst [vmem:[#allocation2 + $0x588] sm:$0xf] %v2990_v4  ;;  %v3622_v4 = vld [vmem:[%s4725_s9 + $0x1c] sm:$0xf] }
 0x44a   : > { %v2980_v29 = vpop.permute.xlu0 %2979  ;;  %3308 = vrot.lane.b32.xlu2 %v6226_v43, %s4602_s27 }
 0x44b   : > { %v2991_v15 = vsel %vm2989_vm1, %v2978_v52, %v2980_v29 }
 0x44c   : > { %3003 = vst [vmem:[#allocation2 + $0x48] sm:$0xf] %v2991_v15  ;;  %v3044_v48 = vpop.permute.xlu2 %3043 }
 0x44d   : > { %3475 = vrot.lane.b32.xlu1 %v6306_v35, %s4601_s25 }
 0x44f   : > { %v2982_v51 = vpop.permute.xlu1 %2981 }
 0x450   : > { %3364 = vrot.lane.b32.xlu0 %v6254_v7, %s4603_s28  ;;  %v2992_v53 = vsel %vm2989_vm1, %v2980_v29, %v2982_v51  ;;  %v2993_v10 = vsel %vm2989_vm1, %v2982_v51, %v2984_v38 }
 0x451   : > { %3004 = vst [vmem:[#allocation2 + $0x118] sm:$0xf] %v2992_v53 }
 0x452   : > { %v2986_v27 = vpop.permute.xlu0 %2985  ;;  %3005 = vst [vmem:[#allocation2 + $0x478] sm:$0xf] %v2993_v10  ;;  %3253 = vrot.lane.b32.xlu2 %v6204_v33, %s4605_s6  ;;  %v3693_v33 = vld.sshfl [vmem:[#allocation1 + $0x18] sm:$0xff pattern:$0x75316420] }
 0x453   : > { %v2994_v52 = vsel %vm2989_vm1, %v2984_v38, %v2986_v27 }
 0x454   : > { %3006 = vst [vmem:[#allocation2 + $0x3f8] sm:$0xf] %v2994_v52  ;;  %v3091_v43 = vpop.permute.xlu2 %3090 }
 0x455   : > { %3197 = vrot.lane.b32.xlu1 %v6182_v12, %s4604_s5 }
 0x457   : > { %v2988_v9 = vpop.permute.xlu1 %2987 }
 0x458   : > { %3142 = vrot.lane.b32.xlu0 %v6151_v13, %s4606_s7  ;;  %v2995_v7 = vsel %vm2989_vm1, %v2986_v27, %v2988_v9 }
 0x459   : > { %3007 = vst [vmem:[#allocation2 + $0x380] sm:$0xf] %v2995_v7 }
 0x45a   : > { %v3034_v35 = vpop.permute.xlu0 %3033  ;;  %3649 = vrot.lane.b32.xlu2 %v3638_v60, %s4596_s17 }
 0x45b   : > { %v3046_v38 = vsel %vm3045_vm2, %v3032_v47, %v3034_v35 }
 0x45c   : > { %3058 = vst [vmem:[#allocation2 + $0x588] sm:$0xf0] %v3046_v38  ;;  %v6584_v55 = vpop.permute.xlu2 %3645 }
 0x45d   : > { %3647 = vrot.lane.b32.xlu1 %v6425_v25, %s4596_s17  ;;  %v3694_v25 = vld.sshfl [vmem:[#allocation1 + $0x20] sm:$0xff pattern:$0x75316420] }
 0x45f   : > { %v3036_v19 = vpop.permute.xlu1 %3035 }
 0x460   : > { %3703 = vrot.lane.b32.xlu0 %v3693_v33, %s4597_s20  ;;  %v3047_v13 = vsel %vm3045_vm2, %v3034_v35, %v3036_v19  ;;  %v3048_v12 = vsel %vm3045_vm2, %v3036_v19, %v3038_v44 }
 0x461   : > { %3059 = vst [vmem:[#allocation2 + $0x48] sm:$0xf0] %v3047_v13 }
 0x462   : > { %v3040_v47 = vpop.permute.xlu0 %3039  ;;  %3060 = vst [vmem:[#allocation2 + $0x118] sm:$0xf0] %v3048_v12  ;;  %3536 = vrot.lane.b32.xlu2 %v6363_v41, %s4598_s21  ;;  %v6607_v41 = vld.sshfl [vmem:[#allocation1 + $0x30] sm:$0xff pattern:$0x75316420] }
 0x463   : > { %v3049_v18 = vsel %vm3045_vm2, %v3038_v44, %v3040_v47  ;;  %3633 = vst [vmem:[#allocation1 + $0x30] ss:$2 sm:$0xff] %v3622_v4 }
 0x464   : > { %3061 = vst [vmem:[#allocation2 + $0x478] sm:$0xf0] %v3049_v18  ;;  %v6597_v60 = vpop.permute.xlu2 %3532 }
 0x465   : > { %3705 = vrot.lane.b32.xlu1 %v3694_v25, %s4597_s20 }
 0x467   : > { %v3042_v1 = vpop.permute.xlu1 %3041 }
 0x468   : > { %3538 = vrot.lane.b32.xlu0 %v6515_v17, %s4598_s21  ;;  %v3050_v63 = vsel %vm3045_vm2, %v3040_v47, %v3042_v1  ;;  %v3051_v37 = vsel %vm3045_vm2, %v3042_v1, %v3044_v48 }
 0x469   : > { %3062 = vst [vmem:[#allocation2 + $0x3f8] sm:$0xf0] %v3050_v63 }
 0x46a   : > { %v3087_v44 = vpop.permute.xlu0 %3086  ;;  %3063 = vst [vmem:[#allocation2 + $0x380] sm:$0xf0] %v3051_v37  ;;  %3594 = vrot.lane.b32.xlu2 %v6530_v2, %s4599_s22  ;;  %v3677_v2 = vld [vmem:[%s4725_s9 + $0x1c] sm:$0xf] }
 0x46c   : > { %v6609_v29 = vpop.permute.xlu2 %3590 }
 0x46d   : > { %3592 = vrot.lane.b32.xlu1 %v6393_v50, %s4599_s22  ;;  %v3640_v50 = vld.sshfl [vmem:[#allocation1 + $0x30] sm:$0xff pattern:$0x75316420] }
 0x46e   : > { %3689 = vst [vmem:[#allocation1 + $0x31] ss:$2 sm:$0xff] %v3677_v2 }
 0x46f   : > { %v3089_v15 = vpop.permute.xlu1 %3088 }
 0x470   : > { %3425 = vrot.lane.b32.xlu0 %v6315_v14, %s4600_s24  ;;  %v3101_v17 = vsel %vm3100_vm3, %v3087_v44, %v3089_v15  ;;  %v3102_v48 = vsel %vm3100_vm3, %v3089_v15, %v3091_v43 }
 0x471   : > { %3113 = vst [vmem:[#allocation2 + $0x578] sm:$0xf] %v3101_v17 }
 0x472   : > { %v6617_v51 = vpop.permute.xlu0 %3092  ;;  %3114 = vst [vmem:[#allocation2 + $0x170] sm:$0xf] %v3102_v48  ;;  %3481 = vrot.lane.b32.xlu2 %v6341_v8, %s4601_s25 }
 0x473   : > { %v3103_v53 = vsel %vm3100_vm3, %v3091_v43, %v6617_v51 }
 0x474   : > { %3115 = vst [vmem:[#allocation2 + $0x1a0] sm:$0xf] %v3103_v53  ;;  %v6624_v10 = vpop.permute.xlu2 %3477 }
 0x475   : > { %3427 = vrot.lane.b32.xlu1 %v6447_v26, %s4600_s24 }
 0x477   : > { %v3644_v14 = vpop.permute.xlu1 %3643 }
 0x478   : > { %3483 = vrot.lane.b32.xlu0 %v6464_v22, %s4601_s25  ;;  %v3657_v27 = vsel %vm3655_vm4, %v3644_v14, %v6584_v55 }
 0x479   : > { %3669 = vst [vmem:[#allocation2 + $0x3f0] sm:$0xf] %v3657_v27 }
 0x47a   : > { %v6632_v52 = vpop.permute.xlu0 %3699  ;;  %3316 = vrot.lane.b32.xlu2 %v6402_v32, %s4602_s27 }
 0x47c   : > { %v6636_v8 = vpop.permute.xlu2 %3312 }
 0x47d   : > { %3314 = vrot.lane.b32.xlu1 %v6252_v62, %s4602_s27 }
 0x47f   : > { %v6642_v26 = vpop.permute.xlu1 %3701 }
 0x480   : > { %3370 = vrot.lane.b32.xlu0 %v6287_v23, %s4603_s28  ;;  %v3713_v43 = vsel %vm3711_vm5, %v6632_v52, %v6642_v26 }
 0x481   : > { %3725 = vst [vmem:[#allocation2 + $0x3f0] sm:$0xf0] %v3713_v43 }
 0x482   : > { %v6644_v22 = vpop.permute.xlu0 %3534  ;;  %3203 = vrot.lane.b32.xlu2 %v6191_v28, %s4604_s5 }
 0x483   : > { %v3546_v32 = vsel %vm3544_vm6, %v6597_v60, %v6644_v22 }
 0x484   : > { %3558 = vst [vmem:[#allocation2 + $0x448] sm:$0xf] %v3546_v32  ;;  %v3642_v62 = vpop.permute.xlu2 %3641 }
 0x485   : > { %v3656_v23 = vsel %vm3655_vm4, %v3642_v62, %v3644_v14  ;;  %3372 = vrot.lane.b32.xlu1 %v6427_v42, %s4603_s28 }
 0x486   : > { %3668 = vst [vmem:[#allocation2 + $0x128] sm:$0xf] %v3656_v23 }
 0x487   : > { %v6659_v9 = vpop.permute.xlu1 %3588 }
 0x488   : > { %3205 = vrot.lane.b32.xlu0 %v6352_v0, %s4604_s5  ;;  %v3602_v28 = vsel %vm3600_vm7, %v6659_v9, %v6609_v29  ;;  %v3919_v35 = vld [vmem:[#allocation2 + $0x3f0] sm:$0xff]  ;;  %v3695_v0 = vld.sshfl [vmem:[#allocation1 + $0x28] sm:$0xff pattern:$0x75316420] }
 0x489   : > { %3614 = vst [vmem:[#allocation2 + $0x448] sm:$0xf0] %v3602_v28  ;;  %3990 = vmatpush.msra.mxu3 %v3919_v35 }
 0x48a   : > { %v6661_v7 = vpop.permute.xlu0 %3421  ;;  %3261 = vrot.lane.b32.xlu2 %v6378_v39, %s4605_s6 }
 0x48c   : > { %v6668_v38 = vpop.permute.xlu2 %3201 }
 0x48d   : > { %3259 = vrot.lane.b32.xlu1 %v6219_v49, %s4605_s6  ;;  %v3696_v49 = vld.sshfl [vmem:[#allocation1 + $0x30] sm:$0xff pattern:$0x75316420] }
 0x48f   : > { %v6674_v42 = vpop.permute.xlu1 %3423 }
 0x490   : > { %3651 = vrot.lane.b32.xlu0 %v6553_v58, %s4596_s17  ;;  %v3435_v39 = vsel %vm3433_vm8, %v6661_v7, %v6674_v42  ;;  %v3913_v13 = vld [vmem:[#allocation2 + $0x448] sm:$0xff] }
 0x491   : > { %3447 = vst [vmem:[#allocation2 + $0x1b8] sm:$0xf] %v3435_v39  ;;  %3991 = vmatpush.msra.mxu3 %v3913_v13  ;;  %v3859_v39 = vld [vmem:[#allocation2 + $0xa8] sm:$0xff] }
 0x492   : > { %v6676_v33 = vpop.permute.xlu0 %3479  ;;  %3707 = vrot.lane.b32.xlu2 %v3695_v0, %s4597_s20  ;;  %v3853_v13 = vld [vmem:[#allocation2 + $0x88] sm:$0xff] }
 0x493   : > { %v3491_v19 = vsel %vm3489_vm9, %v6624_v10, %v6676_v33 }
 0x494   : > { %3503 = vst [vmem:[#allocation2 + $0x1b8] sm:$0xf0] %v3491_v19  ;;  %v3531_v58 = vpop.permute.xlu2 %3530 }
 0x495   : > { %v3545_v12 = vsel %vm3544_vm6, %v3531_v58, %v6597_v60  ;;  %3653 = vrot.lane.b32.xlu1 %v3640_v50, %s4596_s17  ;;  %v3847_v58 = vld [vmem:[#allocation2 + $0x4a8] sm:$0xff] }
 0x496   : > { %3557 = vst [vmem:[#allocation2 + $0x3e8] sm:$0xf] %v3545_v12 }
 0x497   : > { %v3311_v47 = vpop.permute.xlu1 %3310 }
 0x498   : > { %3709 = vrot.lane.b32.xlu0 %v3696_v49, %s4597_s20  ;;  %v3324_v18 = vsel %vm3322_vm10, %v3311_v47, %v6636_v8  ;;  %s4188_s20 = scalar_lea.hbm %s6929_s3, %s4288_s10 }
 0x499   : > { %3336 = vst [vmem:[#allocation2 + $0xa0] sm:$0xf] %v3324_v18 }
 0x49a   : > { %v6689_v34 = vpop.permute.xlu0 %3366  ;;  %3148 = vrot.lane.b32.xlu2 %v6170_v21, %s4606_s7 }
 0x49b   : > { %v3907_v25 = vld [vmem:[#allocation2 + $0x1b8] sm:$0xff] }
 0x49c   : > { %3992 = vmatpush.msra.mxu3 %v3907_v25  ;;  %v6695_v1 = vpop.permute.xlu2 %3146  ;;  %v3841_v25 = vld [vmem:[#allocation2 + $0xc0] sm:$0xff] }
 0x49d   : > { %3094 = vrot.lane.b32.xlu1 %v6299_v40, %s4595_s11 }
 0x49f   : > { %v6701_v60 = vpop.permute.xlu1 %3368 }
 0x4a0   : > { %3150 = vrot.lane.b32.xlu0 %v6327_v16, %s4606_s7  ;;  %v3380_v37 = vsel %vm3378_vm11, %v6689_v34, %v6701_v60 }
 0x4a1   : > { %3392 = vst [vmem:[#allocation2 + $0xa0] sm:$0xf0] %v3380_v37 }
 0x4a2   : > { %v3698_v63 = vpop.permute.xlu0 %3697  ;;  %3542 = vrot.lane.b32.xlu2 %v6591_v54, %s4598_s21 }
 0x4a3   : > { %v3712_v21 = vsel %vm3711_vm5, %v3698_v63, %v6632_v52 }
 0x4a4   : > { %3724 = vst [vmem:[#allocation2 + $0x128] sm:$0xf0] %v3712_v21  ;;  %v3309_v40 = vpop.permute.xlu2 %3308  ;;  %v3882_v21 = vld [vmem:[#allocation2 + $0x588] sm:$0xff] }
 0x4a5   : > { %v3323_v44 = vsel %vm3322_vm10, %v3309_v40, %v3311_v47  ;;  %3540 = vrot.lane.b32.xlu1 %v6517_v46, %s4598_s21  ;;  %v6940_v40 = vld [vmem:[#allocation12_spill] sm:$0xff]  ;;  %s4190_s21 = sshll.u32 %s203_s23, 4  ;;  %s4191_s21 = int_to_ptr.vmem [resolvable:$true] %s4190_s21 }
 0x4a6   : > { %3335 = vst [vmem:[#allocation2 + $0x1c8] sm:$0xf] %v3323_v44  ;;  %v3876_v44 = vld [vmem:[#allocation2 + $0xb8] sm:$0xff] }
 0x4a7   : > { %v3200_v16 = vpop.permute.xlu1 %3199 }
 0x4a8   : > { %3596 = vrot.lane.b32.xlu0 %v6532_v6, %s4599_s22  ;;  %v3213_v15 = vsel %vm3211_vm12, %v3200_v16, %v6668_v38  ;;  %v3901_v17 = vld [vmem:[#allocation2 + $0xa0] sm:$0xff] }
 0x4a9   : > { %3225 = vst [vmem:[#allocation2 + $0x320] sm:$0xf] %v3213_v15  ;;  %3993 = vmatpush.msra.mxu3 %v3901_v17 }
 0x4aa   : > { %v3256_v4 = vpop.permute.xlu0 %3255  ;;  %3429 = vrot.lane.b32.xlu2 %v6449_v5, %s4600_s24 }
 0x4ab   : > { %v3918_v54 = vld [vmem:[#allocation2 + $0x128] sm:$0xff] }
 0x4ac   : > { %3950 = vmatpush.msra.mxu1 %v3918_v54  ;;  %v3254_v48 = vpop.permute.xlu2 %3253  ;;  %v3870_v54 = vld [vmem:[#allocation2 + $0x148] sm:$0xff] }
 0x4ad   : > { %v3268_v46 = vsel %vm3267_vm13, %v3254_v48, %v3256_v4  ;;  %3598 = vrot.lane.b32.xlu1 %v6607_v41, %s4599_s22  ;;  %v3864_v48 = vld [vmem:[#allocation2 + $0xe0] sm:$0xff]  ;;  %s4192_s22 = sshll.u32 %s4188_s20, 4  ;;  %s4193_s22 = int_to_ptr.hbm [resolvable:$true] %s4192_s22 }
 0x4ae   : > { %3280 = vst [vmem:[#allocation2] sm:$0xf0] %v3268_v46 }
 0x4af   : > { %v6724_v6 = vpop.permute.xlu1 %3257 }
 0x4b0   : > { %3431 = vrot.lane.b32.xlu0 %v6513_v3, %s4600_s24  ;;  %v3269_v5 = vsel %vm3267_vm13, %v3256_v4, %v6724_v6  ;;  %s4177_s24 = scalar_lea.sflag [#allocation5], %s4721_s4 }
 0x4b1   : > { %3281 = vst [vmem:[#allocation2 + $0x320] sm:$0xf0] %v3269_v5  ;;  %v3858_v5 = vld [vmem:[#allocation2 + $0x110] sm:$0xff] }
 0x4b2   : > { %v3587_v2 = vpop.permute.xlu0 %3586  ;;  %3487 = vrot.lane.b32.xlu2 %v6528_v20, %s4601_s25 }
 0x4b3   : > { %v3601_v53 = vsel %vm3600_vm7, %v3587_v2, %v6659_v9  ;;  %v3871_v9 = vld [vmem:[#allocation2 + $0x508] sm:$0xff] }
 0x4b4   : > { %3613 = vst [vmem:[#allocation2 + $0x3e8] sm:$0xf0] %v3601_v53  ;;  %v6732_v50 = vpop.permute.xlu2 %3649  ;;  %v3852_v53 = vld [vmem:[#allocation2 + $0x420] sm:$0xff] }
 0x4b5   : > { %3485 = vrot.lane.b32.xlu1 %v6466_v30, %s4601_s25  ;;  %s4485_s25 = sshra.s32 %s4193_s22, 4  ;;  %s4486_s25 = int_to_ptr.hbm [resolvable:$true] %s4485_s25 }
 0x4b6   : > { %s4487_s16 = scalar_lea.hbm %s4486_s25, 48  ;;  %p4492_p9 = scmp.lt.s32.totalorder %s4486_s25, %s6929_s3 }
 0x4b7   : > { %v3145_v3 = vpop.permute.xlu1 %3144  ;;  %p4488_p1 = scmp.ne.s32.totalorder %s4486_s25, %s4487_s16 }
 0x4b8   : > { %3318 = vrot.lane.b32.xlu0 %v6404_v36, %s4602_s27  ;;  %v3158_v14 = vsel %vm3156_vm14, %v3145_v3, %v6695_v1  ;;  %v3895_v20 = vld [vmem:[#allocation2 + $0x320] sm:$0xff] }
 0x4b9   : > { %3170 = vst [vmem:[#allocation2 + $0x170] sm:$0xf0] %v3158_v14  ;;  %3994 = vmatpush.msra.mxu3 %v3895_v20  ;;  %p4489_p4 = pnand %p4488_p1, %p4694_p3 }
 0x4ba   : > { %v3420_v41 = vpop.permute.xlu0 %3419  ;;  %3374 = vrot.lane.b32.xlu2 %v6429_v57, %s4603_s28 }
 0x4bb   : > { %v3434_v27 = vsel %vm3433_vm8, %v3420_v41, %v6661_v7  ;;  %v3912_v52 = vld [vmem:[#allocation2 + $0x3e8] sm:$0xff]  ;;  %p4490_p8 = pneg %p4489_p4 }
 0x4bc   : > { %3446 = vst [vmem:[#allocation2 + $0x2d0] sm:$0xf] %v3434_v27  ;;  %3951 = vmatpush.msra.mxu1 %v3912_v52  ;;  %v6744_v30 = vpop.permute.xlu2 %3536  ;;  %v3846_v52 = vld [vmem:[#allocation2 + $0x208] sm:$0xff] }
 0x4bd   : > { %v3547_v36 = vsel %vm3544_vm6, %v6644_v22, %v6744_v30  ;;  %3320 = vrot.lane.b32.xlu1 %v6485_v24, %s4602_s27  ;;  %v3883_v22 = vld [vmem:[#allocation2 + $0x48] sm:$0xff] }
 0x4be   : > { %3559 = vst [vmem:[#allocation2 + $0x430] sm:$0xf] %v3547_v36 }
 0x4bf   : > { %v3476_v43 = vpop.permute.xlu1 %3475 }
 0x4c0   : > { %3376 = vrot.lane.b32.xlu0 %v6499_v11, %s4603_s28  ;;  %v3490_v32 = vsel %vm3489_vm9, %v3476_v43, %v6624_v10  ;;  %v3889_v23 = vld [vmem:[#allocation2 + $0x170] sm:$0xff]  ;;  %v3834_v43 = vld [vmem:[#allocation2 + $0x178] sm:$0xff] }
 0x4c1   : > { %3502 = vst [vmem:[#allocation2 + $0x2d0] sm:$0xf0] %v3490_v32  ;;  %3995 = vmatpush.msra.mxu3 %v3889_v23  ;;  %v3877_v11 = vld [vmem:[#allocation2 + $0x10] sm:$0xff] }
 0x4c2   : > { %v3365_v57 = vpop.permute.xlu0 %3364  ;;  %3209 = vrot.lane.b32.xlu2 %v6452_v59, %s4604_s5 }
 0x4c3   : > { %v3379_v62 = vsel %vm3378_vm11, %v3365_v57, %v6689_v34  ;;  %3996 = vmatpush.msra.mxu3 %v3883_v22 }
 0x4c4   : > { %3391 = vst [vmem:[#allocation2 + $0x1c8] sm:$0xf0] %v3379_v62  ;;  %v6759_v24 = vpop.permute.xlu2 %3594 }
 0x4c5   : > { %3207 = vrot.lane.b32.xlu1 %v6354_v61, %s4604_s5  ;;  %3997 = vmatpush.msra.mxu3 %v3877_v11  ;;  %v3865_v61 = vld [vmem:[#allocation2 + $0xd0] sm:$0xff]  ;;  %s4491_s5 = scalar_lea.hbm %s6929_s3, 96 }
 0x4c6   : > { %p4493_p10 = scmp.lt.s32.totalorder %s4491_s5, %s4487_s16 }
 0x4c7   : > { %v3198_v10 = vpop.permute.xlu1 %3197  ;;  %3998 = vmatpush.msra.mxu3 %v3871_v9 }
 0x4c8   : > { %3263 = vrot.lane.b32.xlu0 %v6380_v31, %s4605_s6  ;;  %v3212_v59 = vsel %vm3211_vm12, %v3198_v10, %v3200_v16  ;;  %v3906_v35 = vld [vmem:[#allocation2 + $0x2d0] sm:$0xff]  ;;  %p4494_p2 = por %p4493_p10, %p4492_p9 }
 0x4c9   : > { %3224 = vst [vmem:[#allocation2] sm:$0xf] %v3212_v59  ;;  %3952 = vmatpush.msra.mxu1 %v3906_v35  ;;  %3999 = vmatpush.msra.mxu3 %v3865_v61 }
 0x4ca   : > { %v3143_v7 = vpop.permute.xlu0 %3142  ;;  %3096 = vrot.lane.b32.xlu2 %v6301_v45, %s4595_s11  ;;  %v6938_v45 = vld [vmem:[#allocation13_spill] sm:$0xff]  ;;  %p4495_p11 = pnand %p4494_p2, %p4490_p8 }
 0x4cb   : > { %v3157_v28 = vsel %vm3156_vm14, %v3143_v7, %v3145_v3  ;;  %v3900_v31 = vld [vmem:[#allocation2 + $0x1c8] sm:$0xff]  ;;  %4000 = vmatpush.msra.mxu3 %v3859_v39 }
 0x4cc   : > { %3169 = vst [vmem:[#allocation2 + $0x578] sm:$0xf0] %v3157_v28  ;;  %v6769_v0 = vpop.permute.xlu2 %3481  ;;  %3953 = vmatpush.msra.mxu1 %v3900_v31 }
 0x4cd   : > { %v3492_v19 = vsel %vm3489_vm9, %v6676_v33, %v6769_v0  ;;  %3265 = vrot.lane.b32.xlu1 %v6469_v56, %s4605_s6  ;;  %4001 = vmatpush.msra.mxu3 %v3853_v13  ;;  %v6939_v56 = vld [vmem:[#allocation14_spill] sm:$0xff] }
 0x4ce   : > { %3504 = vst [vmem:[#allocation2 + $0x150] sm:$0xf0] %v3492_v19 }
 0x4cf   : > { %v3648_v49 = vpop.permute.xlu1 %3647  ;;  %4002 = vmatpush.msra.mxu3 %v3847_v58 }
 0x4d0   : > { %3098 = vrot.lane.b32.xlu0 %v6938_v45, %s4595_s11  ;;  %v3658_v47 = vsel %vm3655_vm4, %v6584_v55, %v3648_v49  ;;  %v3659_v34 = vsel %vm3655_vm4, %v3648_v49, %v6732_v50  ;;  %v3894_v18 = vld [vmem:[#allocation2] sm:$0xff]  ;;  %v3835_v55 = vld [vmem:[#allocation2 + $0x538] sm:$0xff] }
 0x4d1   : > { %3670 = vst [vmem:[#allocation2 + $0x238] sm:$0xf] %v3658_v47  ;;  %3954 = vmatpush.msra.mxu1 %v3894_v18  ;;  %4003 = vmatpush.msra.mxu3 %v3841_v25 }
 0x4d2   : > { %v3704_v12 = vpop.permute.xlu0 %3703  ;;  %3154 = vrot.lane.b32.xlu2 %v6939_v56, %s4606_s7  ;;  %3671 = vst [vmem:[#allocation2 + $0x290] sm:$0xf] %v3659_v34  ;;  %v6832_v56 = vld [vmem:[#allocation6 + $0x8] sm:$0xff] }
 0x4d3   : > { %v3714_v33 = vsel %vm3711_vm5, %v6642_v26, %v3704_v12  ;;  %v3888_v63 = vld [vmem:[#allocation2 + $0x578] sm:$0xff]  ;;  %4004 = vmatpush.msra.mxu3 %v3835_v55 }
 0x4d4   : > { %v6786_v37 = vpop.permute.xlu2 %3316  ;;  %3726 = vst [vmem:[#allocation2 + $0x238] sm:$0xf0] %v3714_v33  ;;  %3955 = vmatpush.msra.mxu1 %v3888_v63  ;;  %v3829_v26 = vld [vmem:[#allocation2 + $0x498] sm:$0xff] }
 0x4d5   : > { %3152 = vrot.lane.b32.xlu1 %v6940_v40, %s4606_s7  ;;  %4005 = vmatpush.msra.mxu3 %v3829_v26 }
 0x4d6   : > { %3956 = vmatpush.msra.mxu1 %v3882_v21  ;;  %4006 = vmatmul.f32.vlgmr.msra.gmra.mxu3 %v6832_v56 }
 0x4d7   : > { %v3706_v16 = vpop.permute.xlu1 %3705 }
 0x4d8   : > { %3957 = vmatpush.msra.mxu1 %v3876_v44  ;;  %v3715_v15 = vsel %vm3711_vm5, %v3704_v12, %v3706_v16 }
 0x4d9   : > { %3727 = vst [vmem:[#allocation2 + $0x290] sm:$0xf0] %v3715_v15  ;;  %v3884_v15 = vld [vmem:[#allocation2 + $0x118] sm:$0xff] }
 0x4da   : > { %v6790_v4 = vpop.permute.xlu0 %3538  ;;  %3958 = vmatpush.msra.mxu1 %v3870_v54 }
 0x4db   : > { %v3548_v17 = vsel %vm3544_vm6, %v6744_v30, %v6790_v4  ;;  %v3920_v62 = vld [vmem:[#allocation2 + $0x238] sm:$0xff] }
 0x4dc   : > { %3560 = vst [vmem:[#allocation2 + $0x180] sm:$0xf] %v3548_v17  ;;  %v3204_v46 = vpop.permute.xlu2 %3203  ;;  %3959 = vmatpush.msra.mxu1 %v3864_v48  ;;  %v3878_v17 = vld [vmem:[#allocation2 + $0x20] sm:$0xff] }
 0x4dd   : > { %v3214_v2 = vsel %vm3211_vm12, %v6668_v38, %v3204_v46  ;;  %v3840_v38 = vld [vmem:[#allocation2 + $0x5b0] sm:$0xff] }
 0x4de   : > { %3226 = vst [vmem:[#allocation2 + $0x158] sm:$0xf] %v3214_v2  ;;  %3960 = vmatpush.msra.mxu1 %v3858_v5  ;;  %v3872_v5 = vld [vmem:[#allocation2 + $0x3d0] sm:$0xff] }
 0x4df   : > { %v3593_v3 = vpop.permute.xlu1 %3592 }
 0x4e0   : > { %3961 = vmatpush.msra.mxu1 %v3852_v53  ;;  %v3603_v14 = vsel %vm3600_vm7, %v6609_v29, %v3593_v3  ;;  %v3604_v27 = vsel %vm3600_vm7, %v3593_v3, %v6759_v24  ;;  %v3921_v30 = vld [vmem:[#allocation2 + $0x290] sm:$0xff]  ;;  %v3828_v29 = vld [vmem:[#allocation2 + $0x458] sm:$0xff] }
 0x4e1   : > { %3615 = vst [vmem:[#allocation2 + $0x430] sm:$0xf0] %v3603_v14  ;;  %4070 = vmatpush.msrb.mxu3 %v3921_v30  ;;  %v3866_v53 = vld [vmem:[#allocation2 + $0x38] sm:$0xff]  ;;  %v3860_v14 = vld [vmem:[#allocation2 + $0x190] sm:$0xff] }
 0x4e2   : > { %v3426_v41 = vpop.permute.xlu0 %3425  ;;  %3962 = vmatpush.msra.mxu1 %v3846_v52  ;;  %3616 = vst [vmem:[#allocation2 + $0x180] sm:$0xf0] %v3604_v27  ;;  %v3854_v27 = vld [vmem:[#allocation2 + $0x130] sm:$0xff] }
 0x4e3   : > { %v3436_v20 = vsel %vm3433_vm8, %v6674_v42, %v3426_v41 }
 0x4e4   : > { %v6804_v36 = vpop.permute.xlu2 %3261  ;;  %3448 = vst [vmem:[#allocation2 + $0x150] sm:$0xf] %v3436_v20  ;;  %3963 = vmatpush.msra.mxu1 %v3840_v38 }
 0x4e6   : > { %3964 = vmatpush.msra.mxu1 %v3834_v43  ;;  %v3848_v43 = vld [vmem:[#allocation2 + $0x5b8] sm:$0xff] }
 0x4e7   : > { %v3428_v57 = vpop.permute.xlu1 %3427 }
 0x4e8   : > { %3965 = vmatpush.msra.mxu1 %v3828_v29  ;;  %v3437_v42 = vsel %vm3433_vm8, %v3426_v41, %v3428_v57  ;;  %v3914_v22 = vld [vmem:[#allocation2 + $0x430] sm:$0xff] }
 0x4e9   : > { %3449 = vst [vmem:[#allocation2 + $0x1b0] sm:$0xf] %v3437_v42  ;;  %v3915_v11 = vld [vmem:[#allocation2 + $0x180] sm:$0xff]  ;;  %3966 = vmatmul.f32.vlgmr.msra.gmra.mxu1 %v6832_v56  ;;  %v3885_v42 = vld [vmem:[#allocation2 + $0x478] sm:$0xff] }
 0x4ea   : > { %v6806_v32 = vpop.permute.xlu0 %3483  ;;  %4030 = vmatpush.msrb.mxu1 %v3920_v62  ;;  %4071 = vmatpush.msrb.mxu3 %v3915_v11 }
 0x4eb   : > { %v3493_v23 = vsel %vm3489_vm9, %v6769_v0, %v6806_v32  ;;  %v3908_v9 = vld [vmem:[#allocation2 + $0x150] sm:$0xff] }
 0x4ec   : > { %3505 = vst [vmem:[#allocation2 + $0x1b0] sm:$0xf0] %v3493_v23  ;;  %4031 = vmatpush.msrb.mxu1 %v3914_v22  ;;  %v3708_v10 = vpop.permute.xlu2 %3707  ;;  %v3836_v23 = vld [vmem:[#allocation2 + $0x1e0] sm:$0xff] }
 0x4ed   : > { %v3716_v7 = vsel %vm3711_vm5, %v3706_v16, %v3708_v10  ;;  %v3830_v22 = vld [vmem:[#allocation2 + $0x400] sm:$0xff] }
 0x4ee   : > { %4032 = vmatpush.msrb.mxu1 %v3908_v9  ;;  %3728 = vst [vmem:[#allocation2 + $0x568] sm:$0xf0] %v3716_v7 }
 0x4ef   : > { %v3315_v59 = vpop.permute.xlu1 %3314 }
 0x4f0   : > { %v3325_v35 = vsel %vm3322_vm10, %v6636_v8, %v3315_v59  ;;  %v3326_v61 = vsel %vm3322_vm10, %v3315_v59, %v6786_v37 }
 0x4f1   : > { %3337 = vst [vmem:[#allocation2 + $0x408] sm:$0xf] %v3325_v35 }
 0x4f2   : > { %v3371_v28 = vpop.permute.xlu0 %3370  ;;  %3338 = vst [vmem:[#allocation2 + $0x5f8] sm:$0xf] %v3326_v61 }
 0x4f3   : > { %v3381_v31 = vsel %vm3378_vm11, %v6701_v60, %v3371_v28  ;;  %v3909_v0 = vld [vmem:[#allocation2 + $0x1b0] sm:$0xff] }
 0x4f4   : > { %4072 = vmatpush.msrb.mxu3 %v3909_v0  ;;  %v3149_v39 = vpop.permute.xlu2 %3148  ;;  %3393 = vst [vmem:[#allocation2 + $0x408] sm:$0xf0] %v3381_v31  ;;  %v3861_v31 = vld [vmem:[#allocation2 + $0x1a8] sm:$0xff] }
 0x4f5   : > { %v3159_v19 = vsel %vm3156_vm14, %v6695_v1, %v3149_v39 }
 0x4f6   : > { %3171 = vst [vmem:[#allocation2 + $0x1a0] sm:$0xf0] %v3159_v19 }
 0x4f7   : > { %v3373_v45 = vpop.permute.xlu1 %3372 }
 0x4f8   : > { %v3382_v8 = vsel %vm3378_vm11, %v3371_v28, %v3373_v45  ;;  %v3867_v28 = vld [vmem:[#allocation2 + $0x240] sm:$0xff] }
 0x4f9   : > { %3394 = vst [vmem:[#allocation2 + $0x5f8] sm:$0xf0] %v3382_v8 }
 0x4fa   : > { %v6821_v13 = vpop.permute.xlu0 %3205 }
 0x4fb   : > { %v3215_v49 = vsel %vm3211_vm12, %v3204_v46, %v6821_v13  ;;  %v3902_v60 = vld [vmem:[#allocation2 + $0x408] sm:$0xff] }
 0x4fc   : > { %3227 = vst [vmem:[#allocation2 + $0x348] sm:$0xf] %v3215_v49  ;;  %v3543_v58 = vpop.permute.xlu2 %3542  ;;  %4033 = vmatpush.msrb.mxu1 %v3902_v60 }
 0x4fd   : > { %v3890_v44 = vld [vmem:[#allocation2 + $0x1a0] sm:$0xff] }
 0x4ff   : > { %v3260_v12 = vpop.permute.xlu1 %3259 }
 0x500   : > { %v3270_v34 = vsel %vm3267_vm13, %v6724_v6, %v3260_v12  ;;  %v3271_v1 = vsel %vm3267_vm13, %v3260_v12, %v6804_v36  ;;  %v3903_v18 = vld [vmem:[#allocation2 + $0x5f8] sm:$0xff]  ;;  %v3843_v12 = vld [vmem:[#allocation2 + $0x428] sm:$0xff] }
 0x501   : > { %3282 = vst [vmem:[#allocation2 + $0x158] sm:$0xf0] %v3270_v34  ;;  %4073 = vmatpush.msrb.mxu3 %v3903_v18  ;;  %v3831_v34 = vld [vmem:[#allocation2 + $0x5d8] sm:$0xff] }
 0x502   : > { %v3652_v47 = vpop.permute.xlu0 %3651  ;;  %3283 = vst [vmem:[#allocation2 + $0x348] sm:$0xf0] %v3271_v1 }
 0x503   : > { %v3660_v33 = vsel %vm3655_vm4, %v6732_v50, %v3652_v47 }
 0x504   : > { %v6834_v25 = vpop.permute.xlu2 %3429  ;;  %3672 = vst [vmem:[#allocation2 + $0x568] sm:$0xf] %v3660_v33 }
 0x505   : > { %v3438_v6 = vsel %vm3433_vm8, %v3428_v57, %v6834_v25  ;;  %v3842_v57 = vld [vmem:[#allocation2 + $0xd8] sm:$0xff] }
 0x506   : > { %3450 = vst [vmem:[#allocation2 + $0x220] sm:$0xf] %v3438_v6 }
 0x507   : > { %v3654_v63 = vpop.permute.xlu1 %3653 }
 0x508   : > { %v3661_v50 = vsel %vm3655_vm4, %v3652_v47, %v3654_v63  ;;  %v3896_v40 = vld [vmem:[#allocation2 + $0x158] sm:$0xff]  ;;  %v3837_v47 = vld [vmem:[#allocation2 + $0x390] sm:$0xff] }
 0x509   : > { %3673 = vst [vmem:[#allocation2 + $0x90] sm:$0xf] %v3661_v50  ;;  %4034 = vmatpush.msrb.mxu1 %v3896_v40  ;;  %v3897_v26 = vld [vmem:[#allocation2 + $0x348] sm:$0xff]  ;;  %v4607_v50 = vmov 0  }
 0x50a   : > { %v3710_v55 = vpop.permute.xlu0 %3709  ;;  %4074 = vmatpush.msrb.mxu3 %v3897_v26  ;;  %4410 = vset.pattern.permute.xlu0 %v4607_v50 }
 0x50b   : > { %v3717_v21 = vsel %vm3711_vm5, %v3708_v10, %v3710_v55  ;;  %4035 = vmatpush.msrb.mxu1 %v3890_v44  ;;  %v3922_v9 = vld [vmem:[#allocation2 + $0x568] sm:$0xff] }
 0x50c   : > { %3729 = vst [vmem:[#allocation2 + $0x90] sm:$0xf0] %v3717_v21  ;;  %v6842_v16 = vpop.permute.xlu2 %3487  ;;  %v3924_v21 = vld [vmem:[%s6928_s2] sm:$0xff] }
 0x50d   : > { %4036 = vmatpush.msrb.mxu1 %v3884_v15  ;;  %3927 = vperm.xlu0 %4410, %v3924_v21  }
 0x50f   : > { %v3095_v54 = vpop.permute.xlu1 %3094  ;;  %4037 = vmatpush.msrb.mxu1 %v3878_v17 }
 0x510   : > { %v3104_v46 = vsel %vm3100_vm3, %v6617_v51, %v3095_v54 }
 0x511   : > { %3116 = vst [vmem:[#allocation2 + $0x288] sm:$0xf] %v3104_v46  ;;  %4038 = vmatpush.msrb.mxu1 %v3872_v5 }
 0x512   : > { %v6844_v48 = vpop.permute.xlu0 %3150 }
 0x513   : > { %v3160_v2 = vsel %vm3156_vm14, %v3149_v39, %v6844_v48  ;;  %4039 = vmatpush.msrb.mxu1 %v3866_v53  ;;  %v3855_v39 = vld [vmem:[#allocation2 + $0x5f0] sm:$0xff] }
 0x514   : > { %3172 = vst [vmem:[#allocation2 + $0x288] sm:$0xf0] %v3160_v2  ;;  %v6850_v3 = vpop.permute.xlu2 %3374  ;;  %v3923_v1 = vld [vmem:[#allocation2 + $0x90] sm:$0xff] }
 0x515   : > { %v3383_v41 = vsel %vm3378_vm11, %v3373_v45, %v6850_v3  ;;  %4040 = vmatpush.msrb.mxu1 %v3860_v14  ;;  %v3849_v45 = vld [vmem:[#allocation2 + $0x218] sm:$0xff] }
 0x516   : > { %3395 = vst [vmem:[#allocation2 + $0x270] sm:$0xf0] %v3383_v41 }
 0x517   : > { %v3541_v20 = vpop.permute.xlu1 %3540  ;;  %4041 = vmatpush.msrb.mxu1 %v3854_v27 }
 0x518   : > { %v3549_v52 = vsel %vm3544_vm6, %v6790_v4, %v3541_v20  ;;  %v3550_v30 = vsel %vm3544_vm6, %v3541_v20, %v3543_v58  ;;  %v3879_v4 = vld [vmem:[#allocation2 + $0x78] sm:$0xff] }
 0x519   : > { %3561 = vst [vmem:[#allocation2 + $0x350] sm:$0xf] %v3549_v52  ;;  %4042 = vmatpush.msrb.mxu1 %v3848_v43  ;;  %v3887_v52 = vld [vmem:[#allocation2 + $0x380] sm:$0xff]  ;;  %v3874_v43 = vld [vmem:[#allocation2 + $0x358] sm:$0xff] }
 0x51a   : > { %v3597_v51 = vpop.permute.xlu0 %3596  ;;  %3562 = vst [vmem:[#allocation2 + $0x4c0] sm:$0xf] %v3550_v30  ;;  %v3880_v30 = vld [vmem:[#allocation2 + $0x210] sm:$0xff] }
 0x51b   : > { %v3605_v38 = vsel %vm3600_vm7, %v6759_v24, %v3597_v51  ;;  %v3891_v29 = vld [vmem:[#allocation2 + $0x288] sm:$0xff]  ;;  %4043 = vmatpush.msrb.mxu1 %v3842_v57  ;;  %v3869_v57 = vld [vmem:[#allocation2 + $0x518] sm:$0xff] }
 0x51c   : > { %4075 = vmatpush.msrb.mxu3 %v3891_v29  ;;  %v6859_v62 = vpop.permute.xlu2 %3209  ;;  %3617 = vst [vmem:[#allocation2 + $0x350] sm:$0xf0] %v3605_v38  ;;  %v3873_v24 = vld [vmem:[#allocation2 + $0x68] sm:$0xff]  ;;  %v3881_v38 = vld [vmem:[#allocation2 + $0x558] sm:$0xff]  ;;  %v3868_v29 = vld [vmem:[#allocation2 + $0x280] sm:$0xff] }
 0x51d   : > { %4044 = vmatpush.msrb.mxu1 %v3836_v23  ;;  %v3856_v23 = vld [vmem:[#allocation2 + $0x230] sm:$0xff] }
 0x51e   : > { %4076 = vmatpush.msrb.mxu3 %v3885_v42  ;;  %v3863_v42 = vld [vmem:[#allocation2 + $0x470] sm:$0xff] }
 0x51f   : > { %v3599_v11 = vpop.permute.xlu1 %3598  ;;  %4045 = vmatpush.msrb.mxu1 %v3830_v22  ;;  %v3850_v22 = vld [vmem:[#allocation2 + $0x368] sm:$0xff] }
 0x520   : > { %4077 = vmatpush.msrb.mxu3 %v3879_v4  ;;  %v3606_v7 = vsel %vm3600_vm7, %v3597_v51, %v3599_v11  ;;  %4046 = vmatmul.f32.vlgmr.msrb.gmra.mxu1 %v6832_v56  ;;  %v3886_v51 = vld [vmem:[#allocation2 + $0x3f8] sm:$0xff]  ;;  %v3857_v4 = vld [vmem:[#allocation2 + $0x2e0] sm:$0xff] }
 0x521   : > { %4110 = vmatpush.msra.mxu1 %v3922_v9  ;;  %3618 = vst [vmem:[#allocation2 + $0x4c0] sm:$0xf0] %v3606_v7  ;;  %v3851_v11 = vld [vmem:[#allocation2 + $0x298] sm:$0xff]  ;;  %v3838_v9 = vld [vmem:[#allocation2 + $0x2c0] sm:$0xff]  ;;  %v3839_v7 = vld [vmem:[#allocation2 + $0x228] sm:$0xff] }
 0x522   : > { %v3432_v10 = vpop.permute.xlu0 %3431  ;;  %4078 = vmatpush.msrb.mxu3 %v3873_v24  ;;  %v3844_v24 = vld [vmem:[#allocation2 + $0x30] sm:$0xff] }
 0x523   : > { %v3439_v59 = vsel %vm3433_vm8, %v6834_v25, %v3432_v10  ;;  %v3916_v35 = vld [vmem:[#allocation2 + $0x350] sm:$0xff] }
 0x524   : > { %3451 = vst [vmem:[#allocation2 + $0x1d8] sm:$0xf] %v3439_v59  ;;  %4079 = vmatpush.msrb.mxu3 %v3867_v28  ;;  %v3097_v61 = vpop.permute.xlu2 %3096  ;;  %4111 = vmatpush.msra.mxu1 %v3916_v35  ;;  %v3845_v10 = vld [vmem:[#allocation2 + $0x410] sm:$0xff]  ;;  %v3832_v59 = vld [vmem:[#allocation2 + $0xe8] sm:$0xff]  ;;  %v3833_v28 = vld [vmem:[#allocation2 + $0x160] sm:$0xff]  ;;  %v3947_v35 = vpop.f32.mrf.mxu0 }
 0x525   : > { %v3105_v0 = vsel %vm3100_vm3, %v3095_v54, %v3097_v61 }
 0x526   : > { %4080 = vmatpush.msrb.mxu3 %v3861_v31  ;;  %3117 = vst [vmem:[#allocation2 + $0x140] sm:$0xf] %v3105_v0  ;;  %v3987_v31 = vpop.f32.mrf.mxu2 }
 0x527   : > { %v3486_v19 = vpop.permute.xlu1 %3485 }
 0x528   : > { %4081 = vmatpush.msrb.mxu3 %v3855_v39  ;;  %v3494_v49 = vsel %vm3489_vm9, %v6806_v32, %v3486_v19  ;;  %v3495_v60 = vsel %vm3489_vm9, %v3486_v19, %v6842_v16  ;;  %v3917_v6 = vld [vmem:[#allocation2 + $0x4c0] sm:$0xff] }
 0x529   : > { %3506 = vst [vmem:[#allocation2 + $0x220] sm:$0xf0] %v3494_v49 }
 0x52a   : > { %v3319_v8 = vpop.permute.xlu0 %3318  ;;  %4082 = vmatpush.msrb.mxu3 %v3849_v45  ;;  %3507 = vst [vmem:[#allocation2 + $0x1d8] sm:$0xf0] %v3495_v60 }
 0x52b   : > { %v3327_v58 = vsel %vm3322_vm10, %v6786_v37, %v3319_v8 }
 0x52c   : > { %4083 = vmatpush.msrb.mxu3 %v3843_v12  ;;  %3339 = vst [vmem:[#allocation2 + $0x270] sm:$0xf] %v3327_v58  ;;  %v3155_v53 = vpop.permute.xlu2 %3154  ;;  %v4027_v0 = vpop.f32.mrf.mxu0 }
 0x52e   : > { %4084 = vmatpush.msrb.mxu3 %v3837_v47 }
 0x52f   : > { %v3321_v33 = vpop.permute.xlu1 %3320 }
 0x530   : > { %4085 = vmatpush.msrb.mxu3 %v3831_v34  ;;  %v3328_v18 = vsel %vm3322_vm10, %v3319_v8, %v3321_v33  ;;  %v3910_v37 = vld [vmem:[#allocation2 + $0x220] sm:$0xff]  ;;  %v4067_v34 = vpop.f32.mrf.mxu2 }
 0x531   : > { %4086 = vmatmul.f32.vlgmr.msrb.gmra.mxu3 %v6832_v56  ;;  %3340 = vst [vmem:[#allocation2 + $0x250] sm:$0xf] %v3328_v18  ;;  %4112 = vmatpush.msra.mxu1 %v3910_v37  ;;  %v3911_v63 = vld [vmem:[#allocation2 + $0x1d8] sm:$0xff] }
 0x532   : > { %4150 = vmatpush.msra.mxu3 %v3923_v1  ;;  %v3377_v32 = vpop.permute.xlu0 %3376 }
 0x533   : > { %v3384_v25 = vsel %vm3378_vm11, %v6850_v3, %v3377_v32  ;;  %v3904_v55 = vld [vmem:[#allocation2 + $0x270] sm:$0xff] }
 0x534   : > { %4151 = vmatpush.msra.mxu3 %v3917_v6  ;;  %3396 = vst [vmem:[#allocation2 + $0x250] sm:$0xf0] %v3384_v25  ;;  %4113 = vmatpush.msra.mxu1 %v3904_v55  ;;  %v4107_v32 = vpop.f32.mrf.mxu0 }
 0x536   : > { %4152 = vmatpush.msra.mxu3 %v3911_v63 }
 0x537   : > { %v3208_v40 = vpop.permute.xlu1 %3207 }
 0x538   : > { %v3216_v44 = vsel %vm3211_vm12, %v6821_v13, %v3208_v40  ;;  %v3217_v16 = vsel %vm3211_vm12, %v3208_v40, %v6859_v62  ;;  %v3862_v62 = vld [vmem:[#allocation2 + $0x398] sm:$0xff]  ;;  %v4147_v6 = vpop.f32.mrf.mxu2 }
 0x539   : > { %3228 = vst [vmem:[#allocation2 + $0x2d8] sm:$0xf] %v3216_v44 }
 0x53a   : > { %v3264_v26 = vpop.permute.xlu0 %3263  ;;  %3229 = vst [vmem:[#allocation2 + $0x168] sm:$0xf] %v3217_v16 }
 0x53b   : > { %v3272_v15 = vsel %vm3267_vm13, %v6804_v36, %v3264_v26  ;;  %v3905_v17 = vld [vmem:[#allocation2 + $0x250] sm:$0xff] }
 0x53c   : > { %4153 = vmatpush.msra.mxu3 %v3905_v17  ;;  %3284 = vst [vmem:[#allocation2 + $0x2d8] sm:$0xf0] %v3272_v15 }
 0x53f   : > { %v3266_v54 = vpop.permute.xlu1 %3265 }
 0x540   : > { %v3273_v2 = vsel %vm3267_vm13, %v3264_v26, %v3266_v54 }
 0x541   : > { %3285 = vst [vmem:[#allocation2 + $0x168] sm:$0xf0] %v3273_v2 }
 0x542   : > { %v3099_v46 = vpop.permute.xlu0 %3098 }
 0x543   : > { %v3106_v5 = vsel %vm3100_vm3, %v3097_v61, %v3099_v46  ;;  %v3898_v13 = vld [vmem:[#allocation2 + $0x2d8] sm:$0xff] }
 0x544   : > { %3118 = vst [vmem:[#allocation2 + $0x300] sm:$0xf] %v3106_v5  ;;  %4114 = vmatpush.msra.mxu1 %v3898_v13 }
 0x547   : > { %v3153_v3 = vpop.permute.xlu1 %3152 }
 0x548   : > { %v3161_v36 = vsel %vm3156_vm14, %v6844_v48, %v3153_v3  ;;  %v3162_v41 = vsel %vm3156_vm14, %v3153_v3, %v3155_v53  ;;  %v3899_v14 = vld [vmem:[#allocation2 + $0x168] sm:$0xff]  ;;  %v3875_v48 = vld [vmem:[#allocation2 + $0x70] sm:$0xff] }
 0x549   : > { %3173 = vst [vmem:[#allocation2 + $0x140] sm:$0xf0] %v3161_v36  ;;  %4154 = vmatpush.msra.mxu3 %v3899_v14 }
 0x54a   : > { %3174 = vst [vmem:[#allocation2 + $0x300] sm:$0xf0] %v3162_v41 }
 0x550   : > { %v3892_v27 = vld [vmem:[#allocation2 + $0x140] sm:$0xff] }
 0x551   : > { %4115 = vmatpush.msra.mxu1 %v3892_v27  ;;  %v3893_v20 = vld [vmem:[#allocation2 + $0x300] sm:$0xff] }
 0x552   : > { %4155 = vmatpush.msra.mxu3 %v3893_v20 }
 0x553   : > { %4116 = vmatpush.msra.mxu1 %v3886_v51 }
 0x554   : > { %4156 = vmatpush.msra.mxu3 %v3887_v52 }
 0x555   : > { %4117 = vmatpush.msra.mxu1 %v3880_v30 }
 0x556   : > { %4157 = vmatpush.msra.mxu3 %v3881_v38 }
 0x557   : > { %4118 = vmatpush.msra.mxu1 %v3874_v43 }
 0x558   : > { %4158 = vmatpush.msra.mxu3 %v3875_v48 }
 0x559   : > { %4119 = vmatpush.msra.mxu1 %v3868_v29  ;;  %v4007_v39 = vpop.f32.mrf.mxu3 }
 0x55a   : > { %4159 = vmatpush.msra.mxu3 %v3869_v57 }
 0x55b   : > { %4120 = vmatpush.msra.mxu1 %v3862_v62 }
 0x55c   : > { %4160 = vmatpush.msra.mxu3 %v3863_v42 }
 0x55d   : > { %4121 = vmatpush.msra.mxu1 %v3856_v23 }
 0x55e   : > { %4161 = vmatpush.msra.mxu3 %v3857_v4 }
 0x55f   : > { %4122 = vmatpush.msra.mxu1 %v3850_v22 }
 0x560   : > { %4162 = vmatpush.msra.mxu3 %v3851_v11 }
 0x561   : > { %4123 = vmatpush.msra.mxu1 %v3844_v24 }
 0x562   : > { %4163 = vmatpush.msra.mxu3 %v3845_v10 }
 0x563   : > { %4124 = vmatpush.msra.mxu1 %v3838_v9 }
 0x564   : > { %4164 = vmatpush.msra.mxu3 %v3839_v7 }
 0x565   : > { %4125 = vmatpush.msra.mxu1 %v3832_v59 }
 0x566   : > { %4165 = vmatpush.msra.mxu3 %v3833_v28  ;;  %4126 = vmatmul.f32.vlgmr.msra.gmra.mxu1 %v6832_v56  ;;  %v3967_v61 = vpop.f32.mrf.mxu1 }
 0x567   : > { %4166 = vmatmul.f32.vlgmr.msra.gmra.mxu3 %v6832_v56 }
 0x57f   : > { %v3928_v19 = vpop.permute.xlu0 %3927 }
 0x580   : > { %v3948_v8 = vadd.f32 %v3947_v35, %v3928_v19  ;;  %v3988_v49 = vadd.f32 %v3987_v31, %v3928_v19  ;;  %v4028_v60 = vadd.f32 %v4027_v0, %v3928_v19  ;;  %v4068_v56 = vadd.f32 %v4067_v34, %v3928_v19 }
 0x581   : > { %v4108_v18 = vadd.f32 %v4107_v32, %v3928_v19  ;;  %v4148_v63 = vadd.f32 %v4147_v6, %v3928_v19 }
 0x582   : > { %v3968_v58 = vadd.f32 %v3967_v61, %v3948_v8  ;;  %v4008_v12 = vadd.f32 %v4007_v39, %v3988_v49 }
 0x584   : > { %4170 = vst [vmem:[%s203_s23] sm:$0xff] %v3968_v58 }
 0x585   : > { %4171 = vst [vmem:[%s203_s23 + $0x8] sm:$0xff] %v4008_v12 }
 0x59d   : > { %v4047_v45 = vpop.f32.mrf.mxu1 }
 0x59e   : > { %v4048_v47 = vadd.f32 %v4047_v45, %v4028_v60 }
 0x5a0   : > { %4172 = vst [vmem:[%s203_s23 + $0x10] sm:$0xff] %v4048_v47 }
 0x5b4   : > { %v4087_v1 = vpop.f32.mrf.mxu3 }
 0x5b5   : > { %v4088_v33 = vadd.f32 %v4087_v1, %v4068_v56 }
 0x5b7   : > { %4173 = vst [vmem:[%s203_s23 + $0x18] sm:$0xff] %v4088_v33 }
 0x5e3   : > { %v4127_v25 = vpop.f32.mrf.mxu1 }
 0x5e4   : > { %v4128_v37 = vadd.f32 %v4127_v25, %v4108_v18 }
 0x5e6   : > { %4174 = vst [vmem:[%s203_s23 + $0x20] sm:$0xff] %v4128_v37 }
 0x5ea   : > { %v4167_v55 = vpop.f32.mrf.mxu3 }
 0x5eb   : > { %v4168_v50 = vadd.f32 %v4167_v55, %v4148_v63 }
 0x5ed   : > { %4175 = vst [vmem:[%s203_s23 + $0x28] sm:$0xff] %v4168_v50 }
 0x5ee   : > { %4498 = shalt.err (!%p4495_p11)
}
 0x5ef   : > { %4295 = dma.vmem_to_hbm [thread:$0]  (%p4694_p3), %s4191_s21, 768, %s4193_s22, %s4177_s24  }
 0x5f0 PF: > { %s4204_s4 = sand.u32 1, %s4529_s12   ;;  %p6941_p12 = scmp.ge.s32.totalorder %s4541_s15, 2 }
 0x5f1   : > { %s4205_s9 = scalar_lea.sflag [#allocation5], %s4204_s4 }
 0x5f2   : > { %p4306_p13 = pnand %p6941_p12, %p4663_p6 }
 0x5f4   : > { %p4307_p0 = pneg %p4306_p13 }
 0x5f6   : > { %4524 = dma.done.wait (%p4307_p0), %s4205_s9, 768  }
 0x5f7   : > { %4526 = vsyncadd (%p4307_p0), %s4205_s9, 4294966528  ;;  %p17_p5 = scmp.ge.s32.totalorder %s4681_s26, 4   ;;  %s6942_s12 = smov %s4533_s13 }
 0x5f8   : > { %s6943_s13 = smov %s4537_s14  ;;  %s6944_s14 = smov %s4690_s29 }
 0x5f9   : > { %s6945_s15 = smov %s4681_s26  ;;  %19 = sbr.rel (!%p17_p5) target bundleno = 6 (0x6), region = 304 }
 0x5fe   :  { %4211 = vsyncpa [#allocation4], 1 }
 0x5ff   :  { %4213 = vsyncpa [#allocation4 + $0x1], 1 }
 0x600   :  { %4214 = vsyncpa [#allocation7], 1 }
 0x601   :  { %4215 = vsyncpa [#allocation5], 1 }
 0x602   :  { %4217 = vsyncpa [#allocation5 + $0x1], 1 }

</bundles_post_ra>
